<compile_context>
chip_gen: v7x
topology: tpu7x:2x2x1
jax: 0.10.0
libtpu: 0.0.40
codegen_flags: <defaults>
</compile_context>

<pallas_src>
import functools

import jax
import jax.numpy as jnp
from jax.experimental import pallas as pl
from jax.experimental.pallas import tpu as pltpu

EPS = 1e-5
CONV_KS = (3, 3, 2, 2)          # kernel sizes of the 4 conv layers
VMEM_LIMIT = 32 * 1024 * 1024   # tight; leaves headroom on v7x (64 MiB VMEM)


def _round_up(x, m):
    return (x + m - 1) // m * m


# ----------------------------------------------------------------------------
# Pallas kernel 1: fused  out = [relu](A @ W + c)      (BN pre-folded into W/c)
# ----------------------------------------------------------------------------
def _matmul_bias_act_kernel(a_ref, w_ref, c_ref, o_ref, *, relu):
    acc = jnp.dot(a_ref[...], w_ref[...], preferred_element_type=jnp.float32)
    y = acc + c_ref[...]
    if relu:
        y = jnp.maximum(y, 0.0)
    o_ref[...] = y.astype(o_ref.dtype)


def fused_matmul(a, w, c, *, relu, out_dtype=jnp.float32, tm=512):
    """a:[M,K] (bf16) @ w:[K,N] (bf16) + c:[1,N] (f32) -> [M,N] out_dtype."""
    M, K = a.shape
    _, N = w.shape
    a = a.astype(jnp.bfloat16)
    w = w.astype(jnp.bfloat16)
    c = c.reshape(1, N).astype(jnp.float32)

    # Small M -> one full-extent block (no padding, no per-step overhead).
    # Large M -> tile by tm (multiple of 8); Pallas masks the partial tail.
    if M <= tm:
        tm = M
    grid_m = pl.cdiv(M, tm)

    # NOTE: W/c have constant index maps; with the (usually) 1-step grid their
    # double-buffering cost is nil.  pl.Buffered(1) could single-buffer them
    # for very large multi-step grids.
    return pl.pallas_call(
        functools.partial(_matmul_bias_act_kernel, relu=relu),
        out_shape=jax.ShapeDtypeStruct((M, N), out_dtype),
        grid_spec=pltpu.PrefetchScalarGridSpec(
            num_scalar_prefetch=0,
            grid=(grid_m,),
            in_specs=[
                pl.BlockSpec((tm, K), lambda i: (i, 0)),   # A tile
                pl.BlockSpec((K, N), lambda i: (0, 0)),    # folded weight
                pl.BlockSpec((1, N), lambda i: (0, 0)),    # folded bias/BN term
            ],
            out_specs=pl.BlockSpec((tm, N), lambda i: (i, 0)),
        ),
        compiler_params=pltpu.CompilerParams(
            dimension_semantics=("parallel",),
            vmem_limit_bytes=VMEM_LIMIT,
        ),
    )(a, w, c)


# ----------------------------------------------------------------------------
# Pallas kernel 2: fused MLP head
#   out = relu(relu(x @ W1 + c1) @ W2 + c2) @ W3 + b3
# (fc1+BN1d+ReLU, fc2+self.bn+ReLU, output Linear — one pallas_call)
# ----------------------------------------------------------------------------
def _mlp_head_kernel(x_ref, w1_ref, c1_ref, w2_ref, c2_ref, w3_ref, b3_ref,
                     o_ref):
    h1 = jnp.dot(x_ref[...], w1_ref[...],
                 preferred_element_type=jnp.float32) + c1_ref[...]
    h1 = jnp.maximum(h1, 0.0)
    h2 = jnp.dot(h1.astype(jnp.bfloat16), w2_ref[...],
                 preferred_element_type=jnp.float32) + c2_ref[...]
    h2 = jnp.maximum(h2, 0.0)
    o = jnp.dot(h2, w3_ref[...],
                preferred_element_type=jnp.float32) + b3_ref[...]
    o_ref[...] = o.astype(o_ref.dtype)


def mlp_head(x, w1, c1, w2, c2, w3, b3, *, tm=512):
    M, K = x.shape
    N1 = w1.shape[1]
    N2 = w2.shape[1]
    N3 = w3.shape[1]
    x = x.astype(jnp.bfloat16)
    if M <= tm:
        tm = M
    grid_m = pl.cdiv(M, tm)

    return pl.pallas_call(
        _mlp_head_kernel,
        out_shape=jax.ShapeDtypeStruct((M, N3), jnp.float32),
        grid_spec=pltpu.PrefetchScalarGridSpec(
            num_scalar_prefetch=0,
            grid=(grid_m,),
            in_specs=[
                pl.BlockSpec((tm, K), lambda i: (i, 0)),     # flattened acts
                pl.BlockSpec((K, N1), lambda i: (0, 0)),     # fc1 (folded, padded)
                pl.BlockSpec((1, N1), lambda i: (0, 0)),
                pl.BlockSpec((N1, N2), lambda i: (0, 0)),    # fc2 (folded, padded K)
                pl.BlockSpec((1, N2), lambda i: (0, 0)),
                pl.BlockSpec((N2, N3), lambda i: (0, 0)),    # output Linear
                pl.BlockSpec((1, N3), lambda i: (0, 0)),
            ],
            out_specs=pl.BlockSpec((tm, N3), lambda i: (i, 0)),
        ),
        compiler_params=pltpu.CompilerParams(
            dimension_semantics=("parallel",),
            vmem_limit_bytes=VMEM_LIMIT,
        ),
    )(x, w1, c1, w2, c2, w3, b3)


# ----------------------------------------------------------------------------
# Glue: im2col, maxpool
# ----------------------------------------------------------------------------
def im2col(x, k):
    """x: [N,H,W,C] -> patches [N*Ho*Wo, k*k*C] with feature order (ky,kx,c)."""
    n, h, w, c = x.shape
    ho, wo = h - k + 1, w - k + 1
    cols = []
    for ky in range(k):
        for kx in range(k):
            cols.append(x[:, ky:ky + ho, kx:kx + wo, :])
    p = jnp.stack(cols, axis=3)                    # [n, ho, wo, k*k, c]
    return p.reshape(n * ho * wo, k * k * c), (n, ho, wo)


def maxpool2x2(x):
    """[N,H,W,C] -> [N,H//2,W//2,C]  (stride-2, kernel-2, floor)."""
    n, h, w, c = x.shape
    ho, wo = h // 2, w // 2
    x = x[:, :ho * 2, :wo * 2, :].reshape(n, ho, 2, wo, 2, c)
    return x.max(axis=(2, 4))


# ----------------------------------------------------------------------------
# Parameters (deterministic, mirroring __init__ / __weight_init shapes)
# ----------------------------------------------------------------------------
def init_params(key, channels=1, img_dim=16, outneurons=10, last_hidden=40):
    def kaiming_uniform(k, shape, fan_in):
        bound = (6.0 / fan_in) ** 0.5
        return jax.random.uniform(k, shape, jnp.float32, -bound, bound)

    keys = jax.random.split(key, 16)
    p = {}
    conv_defs = [(256, channels, 3), (256, 256, 3), (128, 256, 2), (128, 128, 2)]
    h = img_dim
    for i, (co, ci, k) in enumerate(conv_defs):
        p[f"conv{i}_w"] = kaiming_uniform(keys[i], (co, ci, k, k), ci * k * k)
        p[f"conv{i}_b"] = jnp.zeros((co,), jnp.float32)      # constant_(bias, 0)
        p[f"bn{i}_gamma"] = jnp.ones((co,), jnp.float32)
        p[f"bn{i}_beta"] = jnp.zeros((co,), jnp.float32)
        p[f"bn{i}_mean"] = jnp.zeros((co,), jnp.float32)
        p[f"bn{i}_var"] = jnp.ones((co,), jnp.float32)
        h -= (k - 1)
        if i in (1, 3):
            h //= 2

    fc_in = 128 * h * h
    p["fc1_w"] = kaiming_uniform(keys[8], (fc_in, 500), fc_in)   # NCHW-flatten rows
    p["fc1_b"] = jnp.zeros((500,), jnp.float32)
    p["fcbn1_gamma"] = jnp.ones((500,), jnp.float32)
    p["fcbn1_beta"] = jnp.zeros((500,), jnp.float32)
    p["fcbn1_mean"] = jnp.zeros((500,), jnp.float32)
    p["fcbn1_var"] = jnp.ones((500,), jnp.float32)

    p["fc2_w"] = kaiming_uniform(keys[9], (500, last_hidden), 500)
    p["fc2_b"] = jnp.zeros((last_hidden,), jnp.float32)
    p["bn_gamma"] = jnp.ones((last_hidden,), jnp.float32)
    p["bn_beta"] = jnp.zeros((last_hidden,), jnp.float32)
    p["bn_mean"] = jnp.zeros((last_hidden,), jnp.float32)
    p["bn_var"] = jnp.ones((last_hidden,), jnp.float32)

    p["out_w"] = kaiming_uniform(keys[10], (last_hidden, outneurons), last_hidden)
    p["out_b"] = jnp.zeros((outneurons,), jnp.float32)
    return p


# ----------------------------------------------------------------------------
# One-time (load-time) parameter folding:
#   * flatten conv weights to (ky,kx,ci)->co matmul form, fold BN, cast bf16
#   * permute fc1 rows to NHWC-flatten order (kills the pre-flatten transpose)
#   * pad fc1's N (500) -> 512 lanes and fc2's K accordingly (zero pad)
# ----------------------------------------------------------------------------
def fold_params(params, img_dim):
    f = {}
    for i, k in enumerate(CONV_KS):
        w = params[f"conv{i}_w"]                          # [co, ci, k, k]
        co, ci = w.shape[0], w.shape[1]
        w_flat = jnp.transpose(w, (2, 3, 1, 0)).reshape(k * k * ci, co)
        inv = params[f"bn{i}_gamma"] / jnp.sqrt(params[f"bn{i}_var"] + EPS)
        f[f"conv{i}_w"] = (w_flat * inv[None, :]).astype(jnp.bfloat16)
        c = (params[f"conv{i}_b"] * inv
             + params[f"bn{i}_beta"] - params[f"bn{i}_mean"] * inv)
        f[f"conv{i}_c"] = c.reshape(1, co).astype(jnp.float32)

    # spatial size after the conv stack (same arithmetic as the module)
    h = img_dim
    for i, k in enumerate(CONV_KS):
        h -= (k - 1)
        if i in (1, 3):
            h //= 2
    C = 128

    # fc1: NCHW-flatten rows -> NHWC-flatten rows, fold BN, pad N 500 -> 512.
    w1 = params["fc1_w"]                                  # [(c,h,w) rows, 500]
    n1 = w1.shape[1]
    w1 = w1.reshape(C, h, h, n1).transpose(1, 2, 0, 3).reshape(C * h * h, n1)
    inv1 = params["fcbn1_gamma"] / jnp.sqrt(params["fcbn1_var"] + EPS)
    w1 = w1 * inv1[None, :]
    c1 = (params["fc1_b"] * inv1
          + params["fcbn1_beta"] - params["fcbn1_mean"] * inv1)
    n1p = _round_up(n1, 128)
    w1 = jnp.pad(w1, ((0, 0), (0, n1p - n1)))
    c1 = jnp.pad(c1, (0, n1p - n1))                       # ReLU(0)=0 for pad cols
    f["fc1_w"] = w1.astype(jnp.bfloat16)
    f["fc1_c"] = c1.reshape(1, n1p).astype(jnp.float32)

    # fc2: zero-pad K 500 -> 512 (padded fc1 activations are exactly 0), fold bn.
    w2 = jnp.pad(params["fc2_w"], ((0, n1p - n1), (0, 0)))
    n2 = w2.shape[1]
    inv2 = params["bn_gamma"] / jnp.sqrt(params["bn_var"] + EPS)
    w2 = w2 * inv2[None, :]
    c2 = (params["fc2_b"] * inv2
          + params["bn_beta"] - params["bn_mean"] * inv2)
    f["fc2_w"] = w2.astype(jnp.bfloat16)
    f["fc2_c"] = c2.reshape(1, n2).astype(jnp.float32)

    # output Linear: no BN / ReLU; tiny -> keep f32.
    f["out_w"] = params["out_w"].astype(jnp.float32)
    f["out_b"] = params["out_b"].reshape(1, -1).astype(jnp.float32)
    return f


# ----------------------------------------------------------------------------
# Forward pass (matches FashionMNIST_CNN.forward, first_layer_norm=False,
# Dropout1d(p=0.0) identity, BatchNorm in inference mode).
# ----------------------------------------------------------------------------
def forward(folded, x_nchw):
    x = jnp.transpose(x_nchw, (0, 2, 3, 1)).astype(jnp.bfloat16)  # NCHW -> NHWC

    # conv stack: (conv-bn-relu) x2 -> pool -> (conv-bn-relu) x2 -> pool
    for i, k in enumerate(CONV_KS):
        patches, (n, ho, wo) = im2col(x, k)
        y = fused_matmul(patches, folded[f"conv{i}_w"], folded[f"conv{i}_c"],
                         relu=True, out_dtype=jnp.bfloat16)
        x = y.reshape(n, ho, wo, -1)
        if i in (1, 3):
            x = maxpool2x2(x)

    # NHWC flatten directly (fc1 weight rows were permuted to match at fold time)
    x = x.reshape(x.shape[0], -1)

    # fc1+BN+ReLU, fc2+bn+ReLU, output Linear — one fused Pallas kernel.
    return mlp_head(x,
                    folded["fc1_w"], folded["fc1_c"],
                    folded["fc2_w"], folded["fc2_c"],
                    folded["out_w"], folded["out_b"])


if __name__ == "__main__":
    key = jax.random.PRNGKey(0)
    pkey, xkey = jax.random.split(key)

    BATCH, CHANNELS, IMG = 2, 1, 16           # small shapes (module default: 1x28x28)
    params = init_params(pkey, channels=CHANNELS, img_dim=IMG,
                         outneurons=10, last_hidden=40)
    folded = fold_params(params, img_dim=IMG)  # one-time, load-time prep
    x = jax.random.normal(xkey, (BATCH, CHANNELS, IMG, IMG), jnp.float32)

    out = jax.jit(forward)(folded, x)
    out = jax.block_until_ready(out)

    assert out.shape == (BATCH, 10), out.shape
    assert bool(jnp.all(jnp.isfinite(out)))
    print("KERNEL_OK")
</pallas_src>

<mosaic_0001>
module attributes {stable_mosaic.version = 11 : i64} {
  func.func @_matmul_bias_act_kernel(%arg0: i32, %arg1: memref<392x9xbf16, #tpu.memory_space<vmem>>, %arg2: memref<9x256xbf16, #tpu.memory_space<vmem>>, %arg3: memref<1x256xf32, #tpu.memory_space<vmem>>, %arg4: memref<392x256xbf16, #tpu.memory_space<vmem>>) attributes {dimension_semantics = [#tpu.dimension_semantics<parallel>], iteration_bounds = array<i64: 1>, scalar_prefetch = 0 : i64, scratch_operands = 0 : i64, tpu.core_type = #tpu.core_type<tc>, window_params = [{transform_indices = @transform_0, window_bounds = array<i64: 392, 9>}, {pipeline_mode = #tpu.pipeline_mode<synchronous>, transform_indices = @transform_1, window_bounds = array<i64: 9, 256>}, {pipeline_mode = #tpu.pipeline_mode<synchronous>, transform_indices = @transform_2, window_bounds = array<i64: 1, 256>}, {transform_indices = @transform_3, window_bounds = array<i64: 392, 256>}]} {
    %c0 = arith.constant 0 : index
    %c0_0 = arith.constant 0 : index
    %0 = vector.load %arg1[%c0, %c0_0] : memref<392x9xbf16, #tpu.memory_space<vmem>>, vector<392x9xbf16>
    %c0_1 = arith.constant 0 : index
    %c0_2 = arith.constant 0 : index
    %1 = vector.load %arg2[%c0_1, %c0_2] : memref<9x256xbf16, #tpu.memory_space<vmem>>, vector<9x256xbf16>
    %cst = arith.constant dense<0.000000e+00> : vector<392x256xf32>
    %2 = tpu.matmul %0, %1, %cst {dimension_numbers = #tpu.dot_dimension_numbers<[1], [0], [0], [1], [0, 0, 1, 1], [], []>} : vector<392x9xbf16>, vector<9x256xbf16>, vector<392x256xf32> -> vector<392x256xf32>
    %c0_3 = arith.constant 0 : index
    %c0_4 = arith.constant 0 : index
    %3 = vector.load %arg3[%c0_3, %c0_4] : memref<1x256xf32, #tpu.memory_space<vmem>>, vector<1x256xf32>
    %4 = vector.broadcast %3 : vector<1x256xf32> to vector<392x256xf32>
    %5 = arith.addf %2, %4 : vector<392x256xf32>
    %cst_5 = arith.constant 0.000000e+00 : f32
    %6 = vector.broadcast %cst_5 : f32 to vector<392x256xf32>
    %7 = arith.maximumf %5, %6 : vector<392x256xf32>
    %8 = arith.truncf %7 : vector<392x256xf32> to vector<392x256xbf16>
    %c0_6 = arith.constant 0 : index
    %c0_7 = arith.constant 0 : index
    %9 = vector.load %arg4[%c0_6, %c0_7] : memref<392x256xbf16, #tpu.memory_space<vmem>>, vector<392x256xbf16>
    tpu.vector_store %arg4[%c0_6, %c0_7], %8 {strides = array<i32>} : memref<392x256xbf16, #tpu.memory_space<vmem>>, vector<392x256xbf16>,
    return
  }
  func.func @transform_0(%arg0: i32) -> (i32, i32) {
    %c0_i32 = arith.constant 0 : i32
    %c0_i32_0 = arith.constant 0 : i32
    return %arg0, %c0_i32 : i32, i32
  }
  func.func @transform_1(%arg0: i32) -> (i32, i32) {
    %c0_i32 = arith.constant 0 : i32
    %c0_i32_0 = arith.constant 0 : i32
    %c0_i32_1 = arith.constant 0 : i32
    return %c0_i32, %c0_i32_0 : i32, i32
  }
  func.func @transform_2(%arg0: i32) -> (i32, i32) {
    %c0_i32 = arith.constant 0 : i32
    %c0_i32_0 = arith.constant 0 : i32
    %c0_i32_1 = arith.constant 0 : i32
    return %c0_i32, %c0_i32_0 : i32, i32
  }
  func.func @transform_3(%arg0: i32) -> (i32, i32) {
    %c0_i32 = arith.constant 0 : i32
    %c0_i32_0 = arith.constant 0 : i32
    return %arg0, %c0_i32 : i32, i32
  }
}

module attributes {stable_mosaic.version = 11 : i64} {
  func.func @_matmul_bias_act_kernel(%arg0: i32, %arg1: memref<288x2304xbf16, #tpu.memory_space<vmem>>, %arg2: memref<2304x256xbf16, #tpu.memory_space<vmem>>, %arg3: memref<1x256xf32, #tpu.memory_space<vmem>>, %arg4: memref<288x256xbf16, #tpu.memory_space<vmem>>) attributes {dimension_semantics = [#tpu.dimension_semantics<parallel>], iteration_bounds = array<i64: 1>, scalar_prefetch = 0 : i64, scratch_operands = 0 : i64, tpu.core_type = #tpu.core_type<tc>, window_params = [{transform_indices = @transform_0, window_bounds = array<i64: 288, 2304>}, {pipeline_mode = #tpu.pipeline_mode<synchronous>, transform_indices = @transform_1, window_bounds = array<i64: 2304, 256>}, {pipeline_mode = #tpu.pipeline_mode<synchronous>, transform_indices = @transform_2, window_bounds = array<i64: 1, 256>}, {transform_indices = @transform_3, window_bounds = array<i64: 288, 256>}]} {
    %c0 = arith.constant 0 : index
    %c0_0 = arith.constant 0 : index
    %0 = vector.load %arg1[%c0, %c0_0] : memref<288x2304xbf16, #tpu.memory_space<vmem>>, vector<288x2304xbf16>
    %c0_1 = arith.constant 0 : index
    %c0_2 = arith.constant 0 : index
    %1 = vector.load %arg2[%c0_1, %c0_2] : memref<2304x256xbf16, #tpu.memory_space<vmem>>, vector<2304x256xbf16>
    %cst = arith.constant dense<0.000000e+00> : vector<288x256xf32>
    %2 = tpu.matmul %0, %1, %cst {dimension_numbers = #tpu.dot_dimension_numbers<[1], [0], [0], [1], [0, 0, 1, 1], [], []>} : vector<288x2304xbf16>, vector<2304x256xbf16>, vector<288x256xf32> -> vector<288x256xf32>
    %c0_3 = arith.constant 0 : index
    %c0_4 = arith.constant 0 : index
    %3 = vector.load %arg3[%c0_3, %c0_4] : memref<1x256xf32, #tpu.memory_space<vmem>>, vector<1x256xf32>
    %4 = vector.broadcast %3 : vector<1x256xf32> to vector<288x256xf32>
    %5 = arith.addf %2, %4 : vector<288x256xf32>
    %cst_5 = arith.constant 0.000000e+00 : f32
    %6 = vector.broadcast %cst_5 : f32 to vector<288x256xf32>
    %7 = arith.maximumf %5, %6 : vector<288x256xf32>
    %8 = arith.truncf %7 : vector<288x256xf32> to vector<288x256xbf16>
    %c0_6 = arith.constant 0 : index
    %c0_7 = arith.constant 0 : index
    %9 = vector.load %arg4[%c0_6, %c0_7] : memref<288x256xbf16, #tpu.memory_space<vmem>>, vector<288x256xbf16>
    tpu.vector_store %arg4[%c0_6, %c0_7], %8 {strides = array<i32>} : memref<288x256xbf16, #tpu.memory_space<vmem>>, vector<288x256xbf16>,
    return
  }
  func.func @transform_0(%arg0: i32) -> (i32, i32) {
    %c0_i32 = arith.constant 0 : i32
    %c0_i32_0 = arith.constant 0 : i32
    return %arg0, %c0_i32 : i32, i32
  }
  func.func @transform_1(%arg0: i32) -> (i32, i32) {
    %c0_i32 = arith.constant 0 : i32
    %c0_i32_0 = arith.constant 0 : i32
    %c0_i32_1 = arith.constant 0 : i32
    return %c0_i32, %c0_i32_0 : i32, i32
  }
  func.func @transform_2(%arg0: i32) -> (i32, i32) {
    %c0_i32 = arith.constant 0 : i32
    %c0_i32_0 = arith.constant 0 : i32
    %c0_i32_1 = arith.constant 0 : i32
    return %c0_i32, %c0_i32_0 : i32, i32
  }
  func.func @transform_3(%arg0: i32) -> (i32, i32) {
    %c0_i32 = arith.constant 0 : i32
    %c0_i32_0 = arith.constant 0 : i32
    return %arg0, %c0_i32 : i32, i32
  }
}

module attributes {stable_mosaic.version = 11 : i64} {
  func.func @_matmul_bias_act_kernel(%arg0: i32, %arg1: memref<50x1024xbf16, #tpu.memory_space<vmem>>, %arg2: memref<1024x128xbf16, #tpu.memory_space<vmem>>, %arg3: memref<1x128xf32, #tpu.memory_space<vmem>>, %arg4: memref<50x128xbf16, #tpu.memory_space<vmem>>) attributes {dimension_semantics = [#tpu.dimension_semantics<parallel>], iteration_bounds = array<i64: 1>, scalar_prefetch = 0 : i64, scratch_operands = 0 : i64, tpu.core_type = #tpu.core_type<tc>, window_params = [{transform_indices = @transform_0, window_bounds = array<i64: 50, 1024>}, {pipeline_mode = #tpu.pipeline_mode<synchronous>, transform_indices = @transform_1, window_bounds = array<i64: 1024, 128>}, {pipeline_mode = #tpu.pipeline_mode<synchronous>, transform_indices = @transform_2, window_bounds = array<i64: 1, 128>}, {transform_indices = @transform_3, window_bounds = array<i64: 50, 128>}]} {
    %c0 = arith.constant 0 : index
    %c0_0 = arith.constant 0 : index
    %0 = vector.load %arg1[%c0, %c0_0] : memref<50x1024xbf16, #tpu.memory_space<vmem>>, vector<50x1024xbf16>
    %c0_1 = arith.constant 0 : index
    %c0_2 = arith.constant 0 : index
    %1 = vector.load %arg2[%c0_1, %c0_2] : memref<1024x128xbf16, #tpu.memory_space<vmem>>, vector<1024x128xbf16>
    %cst = arith.constant dense<0.000000e+00> : vector<50x128xf32>
    %2 = tpu.matmul %0, %1, %cst {dimension_numbers = #tpu.dot_dimension_numbers<[1], [0], [0], [1], [0, 0, 1, 1], [], []>} : vector<50x1024xbf16>, vector<1024x128xbf16>, vector<50x128xf32> -> vector<50x128xf32>
    %c0_3 = arith.constant 0 : index
    %c0_4 = arith.constant 0 : index
    %3 = vector.load %arg3[%c0_3, %c0_4] : memref<1x128xf32, #tpu.memory_space<vmem>>, vector<1x128xf32>
    %4 = vector.broadcast %3 : vector<1x128xf32> to vector<50x128xf32>
    %5 = arith.addf %2, %4 : vector<50x128xf32>
    %cst_5 = arith.constant 0.000000e+00 : f32
    %6 = vector.broadcast %cst_5 : f32 to vector<50x128xf32>
    %7 = arith.maximumf %5, %6 : vector<50x128xf32>
    %8 = arith.truncf %7 : vector<50x128xf32> to vector<50x128xbf16>
    %c0_6 = arith.constant 0 : index
    %c0_7 = arith.constant 0 : index
    %9 = vector.load %arg4[%c0_6, %c0_7] : memref<50x128xbf16, #tpu.memory_space<vmem>>, vector<50x128xbf16>
    tpu.vector_store %arg4[%c0_6, %c0_7], %8 {strides = array<i32>} : memref<50x128xbf16, #tpu.memory_space<vmem>>, vector<50x128xbf16>,
    return
  }
  func.func @transform_0(%arg0: i32) -> (i32, i32) {
    %c0_i32 = arith.constant 0 : i32
    %c0_i32_0 = arith.constant 0 : i32
    return %arg0, %c0_i32 : i32, i32
  }
  func.func @transform_1(%arg0: i32) -> (i32, i32) {
    %c0_i32 = arith.constant 0 : i32
    %c0_i32_0 = arith.constant 0 : i32
    %c0_i32_1 = arith.constant 0 : i32
    return %c0_i32, %c0_i32_0 : i32, i32
  }
  func.func @transform_2(%arg0: i32) -> (i32, i32) {
    %c0_i32 = arith.constant 0 : i32
    %c0_i32_0 = arith.constant 0 : i32
    %c0_i32_1 = arith.constant 0 : i32
    return %c0_i32, %c0_i32_0 : i32, i32
  }
  func.func @transform_3(%arg0: i32) -> (i32, i32) {
    %c0_i32 = arith.constant 0 : i32
    %c0_i32_0 = arith.constant 0 : i32
    return %arg0, %c0_i32 : i32, i32
  }
}

module attributes {stable_mosaic.version = 11 : i64} {
  func.func @_matmul_bias_act_kernel(%arg0: i32, %arg1: memref<32x512xbf16, #tpu.memory_space<vmem>>, %arg2: memref<512x128xbf16, #tpu.memory_space<vmem>>, %arg3: memref<1x128xf32, #tpu.memory_space<vmem>>, %arg4: memref<32x128xbf16, #tpu.memory_space<vmem>>) attributes {dimension_semantics = [#tpu.dimension_semantics<parallel>], iteration_bounds = array<i64: 1>, scalar_prefetch = 0 : i64, scratch_operands = 0 : i64, tpu.core_type = #tpu.core_type<tc>, window_params = [{transform_indices = @transform_0, window_bounds = array<i64: 32, 512>}, {pipeline_mode = #tpu.pipeline_mode<synchronous>, transform_indices = @transform_1, window_bounds = array<i64: 512, 128>}, {pipeline_mode = #tpu.pipeline_mode<synchronous>, transform_indices = @transform_2, window_bounds = array<i64: 1, 128>}, {transform_indices = @transform_3, window_bounds = array<i64: 32, 128>}]} {
    %c0 = arith.constant 0 : index
    %c0_0 = arith.constant 0 : index
    %0 = vector.load %arg1[%c0, %c0_0] : memref<32x512xbf16, #tpu.memory_space<vmem>>, vector<32x512xbf16>
    %c0_1 = arith.constant 0 : index
    %c0_2 = arith.constant 0 : index
    %1 = vector.load %arg2[%c0_1, %c0_2] : memref<512x128xbf16, #tpu.memory_space<vmem>>, vector<512x128xbf16>
    %cst = arith.constant dense<0.000000e+00> : vector<32x128xf32>
    %2 = tpu.matmul %0, %1, %cst {dimension_numbers = #tpu.dot_dimension_numbers<[1], [0], [0], [1], [0, 0, 1, 1], [], []>} : vector<32x512xbf16>, vector<512x128xbf16>, vector<32x128xf32> -> vector<32x128xf32>
    %c0_3 = arith.constant 0 : index
    %c0_4 = arith.constant 0 : index
    %3 = vector.load %arg3[%c0_3, %c0_4] : memref<1x128xf32, #tpu.memory_space<vmem>>, vector<1x128xf32>
    %4 = vector.broadcast %3 : vector<1x128xf32> to vector<32x128xf32>
    %5 = arith.addf %2, %4 : vector<32x128xf32>
    %cst_5 = arith.constant 0.000000e+00 : f32
    %6 = vector.broadcast %cst_5 : f32 to vector<32x128xf32>
    %7 = arith.maximumf %5, %6 : vector<32x128xf32>
    %8 = arith.truncf %7 : vector<32x128xf32> to vector<32x128xbf16>
    %c0_6 = arith.constant 0 : index
    %c0_7 = arith.constant 0 : index
    %9 = vector.load %arg4[%c0_6, %c0_7] : memref<32x128xbf16, #tpu.memory_space<vmem>>, vector<32x128xbf16>
    tpu.vector_store %arg4[%c0_6, %c0_7], %8 {strides = array<i32>} : memref<32x128xbf16, #tpu.memory_space<vmem>>, vector<32x128xbf16>,
    return
  }
  func.func @transform_0(%arg0: i32) -> (i32, i32) {
    %c0_i32 = arith.constant 0 : i32
    %c0_i32_0 = arith.constant 0 : i32
    return %arg0, %c0_i32 : i32, i32
  }
  func.func @transform_1(%arg0: i32) -> (i32, i32) {
    %c0_i32 = arith.constant 0 : i32
    %c0_i32_0 = arith.constant 0 : i32
    %c0_i32_1 = arith.constant 0 : i32
    return %c0_i32, %c0_i32_0 : i32, i32
  }
  func.func @transform_2(%arg0: i32) -> (i32, i32) {
    %c0_i32 = arith.constant 0 : i32
    %c0_i32_0 = arith.constant 0 : i32
    %c0_i32_1 = arith.constant 0 : i32
    return %c0_i32, %c0_i32_0 : i32, i32
  }
  func.func @transform_3(%arg0: i32) -> (i32, i32) {
    %c0_i32 = arith.constant 0 : i32
    %c0_i32_0 = arith.constant 0 : i32
    return %arg0, %c0_i32 : i32, i32
  }
}

module attributes {stable_mosaic.version = 11 : i64} {
  func.func @_mlp_head_kernel(%arg0: i32, %arg1: memref<2x512xbf16, #tpu.memory_space<vmem>>, %arg2: memref<512x512xbf16, #tpu.memory_space<vmem>>, %arg3: memref<1x512xf32, #tpu.memory_space<vmem>>, %arg4: memref<512x40xbf16, #tpu.memory_space<vmem>>, %arg5: memref<1x40xf32, #tpu.memory_space<vmem>>, %arg6: memref<40x10xf32, #tpu.memory_space<vmem>>, %arg7: memref<1x10xf32, #tpu.memory_space<vmem>>, %arg8: memref<2x10xf32, #tpu.memory_space<vmem>>) attributes {dimension_semantics = [#tpu.dimension_semantics<parallel>], iteration_bounds = array<i64: 1>, scalar_prefetch = 0 : i64, scratch_operands = 0 : i64, tpu.core_type = #tpu.core_type<tc>, window_params = [{transform_indices = @transform_0, window_bounds = array<i64: 2, 512>}, {pipeline_mode = #tpu.pipeline_mode<synchronous>, transform_indices = @transform_1, window_bounds = array<i64: 512, 512>}, {pipeline_mode = #tpu.pipeline_mode<synchronous>, transform_indices = @transform_2, window_bounds = array<i64: 1, 512>}, {pipeline_mode = #tpu.pipeline_mode<synchronous>, transform_indices = @transform_3, window_bounds = array<i64: 512, 40>}, {pipeline_mode = #tpu.pipeline_mode<synchronous>, transform_indices = @transform_4, window_bounds = array<i64: 1, 40>}, {pipeline_mode = #tpu.pipeline_mode<synchronous>, transform_indices = @transform_5, window_bounds = array<i64: 40, 10>}, {pipeline_mode = #tpu.pipeline_mode<synchronous>, transform_indices = @transform_6, window_bounds = array<i64: 1, 10>}, {transform_indices = @transform_7, window_bounds = array<i64: 2, 10>}]} {
    %c0 = arith.constant 0 : index
    %c0_0 = arith.constant 0 : index
    %0 = vector.load %arg1[%c0, %c0_0] : memref<2x512xbf16, #tpu.memory_space<vmem>>, vector<2x512xbf16>
    %c0_1 = arith.constant 0 : index
    %c0_2 = arith.constant 0 : index
    %1 = vector.load %arg2[%c0_1, %c0_2] : memref<512x512xbf16, #tpu.memory_space<vmem>>, vector<512x512xbf16>
    %cst = arith.constant dense<0.000000e+00> : vector<2x512xf32>
    %2 = tpu.matmul %0, %1, %cst {dimension_numbers = #tpu.dot_dimension_numbers<[1], [0], [0], [1], [0, 0, 1, 1], [], []>} : vector<2x512xbf16>, vector<512x512xbf16>, vector<2x512xf32> -> vector<2x512xf32>
    %c0_3 = arith.constant 0 : index
    %c0_4 = arith.constant 0 : index
    %3 = vector.load %arg3[%c0_3, %c0_4] : memref<1x512xf32, #tpu.memory_space<vmem>>, vector<1x512xf32>
    %4 = vector.broadcast %3 : vector<1x512xf32> to vector<2x512xf32>
    %5 = arith.addf %2, %4 : vector<2x512xf32>
    %cst_5 = arith.constant 0.000000e+00 : f32
    %6 = vector.broadcast %cst_5 : f32 to vector<2x512xf32>
    %7 = arith.maximumf %5, %6 : vector<2x512xf32>
    %8 = arith.truncf %7 : vector<2x512xf32> to vector<2x512xbf16>
    %c0_6 = arith.constant 0 : index
    %c0_7 = arith.constant 0 : index
    %9 = vector.load %arg4[%c0_6, %c0_7] : memref<512x40xbf16, #tpu.memory_space<vmem>>, vector<512x40xbf16>
    %cst_8 = arith.constant dense<0.000000e+00> : vector<2x40xf32>
    %10 = tpu.matmul %8, %9, %cst_8 {dimension_numbers = #tpu.dot_dimension_numbers<[1], [0], [0], [1], [0, 0, 1, 1], [], []>} : vector<2x512xbf16>, vector<512x40xbf16>, vector<2x40xf32> -> vector<2x40xf32>
    %c0_9 = arith.constant 0 : index
    %c0_10 = arith.constant 0 : index
    %11 = vector.load %arg5[%c0_9, %c0_10] : memref<1x40xf32, #tpu.memory_space<vmem>>, vector<1x40xf32>
    %12 = vector.broadcast %11 : vector<1x40xf32> to vector<2x40xf32>
    %13 = arith.addf %10, %12 : vector<2x40xf32>
    %cst_11 = arith.constant 0.000000e+00 : f32
    %14 = vector.broadcast %cst_11 : f32 to vector<2x40xf32>
    %15 = arith.maximumf %13, %14 : vector<2x40xf32>
    %c0_12 = arith.constant 0 : index
    %c0_13 = arith.constant 0 : index
    %16 = vector.load %arg6[%c0_12, %c0_13] : memref<40x10xf32, #tpu.memory_space<vmem>>, vector<40x10xf32>
    %cst_14 = arith.constant dense<0.000000e+00> : vector<2x10xf32>
    %17 = tpu.matmul %15, %16, %cst_14 {dimension_numbers = #tpu.dot_dimension_numbers<[1], [0], [0], [1], [0, 0, 1, 1], [], []>} : vector<2x40xf32>, vector<40x10xf32>, vector<2x10xf32> -> vector<2x10xf32>
    %c0_15 = arith.constant 0 : index
    %c0_16 = arith.constant 0 : index
    %18 = vector.load %arg7[%c0_15, %c0_16] : memref<1x10xf32, #tpu.memory_space<vmem>>, vector<1x10xf32>
    %19 = vector.broadcast %18 : vector<1x10xf32> to vector<2x10xf32>
    %20 = arith.addf %17, %19 : vector<2x10xf32>
    %c0_17 = arith.constant 0 : index
    %c0_18 = arith.constant 0 : index
    %21 = vector.load %arg8[%c0_17, %c0_18] : memref<2x10xf32, #tpu.memory_space<vmem>>, vector<2x10xf32>
    tpu.vector_store %arg8[%c0_17, %c0_18], %20 {strides = array<i32>} : memref<2x10xf32, #tpu.memory_space<vmem>>, vector<2x10xf32>,
    return
  }
  func.func @transform_0(%arg0: i32) -> (i32, i32) {
    %c0_i32 = arith.constant 0 : i32
    %c0_i32_0 = arith.constant 0 : i32
    return %arg0, %c0_i32 : i32, i32
  }
  func.func @transform_1(%arg0: i32) -> (i32, i32) {
    %c0_i32 = arith.constant 0 : i32
    %c0_i32_0 = arith.constant 0 : i32
    %c0_i32_1 = arith.constant 0 : i32
    return %c0_i32, %c0_i32_0 : i32, i32
  }
  func.func @transform_2(%arg0: i32) -> (i32, i32) {
    %c0_i32 = arith.constant 0 : i32
    %c0_i32_0 = arith.constant 0 : i32
    %c0_i32_1 = arith.constant 0 : i32
    return %c0_i32, %c0_i32_0 : i32, i32
  }
  func.func @transform_3(%arg0: i32) -> (i32, i32) {
    %c0_i32 = arith.constant 0 : i32
    %c0_i32_0 = arith.constant 0 : i32
    %c0_i32_1 = arith.constant 0 : i32
    return %c0_i32, %c0_i32_0 : i32, i32
  }
  func.func @transform_4(%arg0: i32) -> (i32, i32) {
    %c0_i32 = arith.constant 0 : i32
    %c0_i32_0 = arith.constant 0 : i32
    %c0_i32_1 = arith.constant 0 : i32
    return %c0_i32, %c0_i32_0 : i32, i32
  }
  func.func @transform_5(%arg0: i32) -> (i32, i32) {
    %c0_i32 = arith.constant 0 : i32
    %c0_i32_0 = arith.constant 0 : i32
    %c0_i32_1 = arith.constant 0 : i32
    return %c0_i32, %c0_i32_0 : i32, i32
  }
  func.func @transform_6(%arg0: i32) -> (i32, i32) {
    %c0_i32 = arith.constant 0 : i32
    %c0_i32_0 = arith.constant 0 : i32
    %c0_i32_1 = arith.constant 0 : i32
    return %c0_i32, %c0_i32_0 : i32, i32
  }
  func.func @transform_7(%arg0: i32) -> (i32, i32) {
    %c0_i32 = arith.constant 0 : i32
    %c0_i32_0 = arith.constant 0 : i32
    return %arg0, %c0_i32 : i32, i32
  }
}

</mosaic_0001>

<bundles_post_ra>
// kernel: forward.5
= control target key start
LH: loop header
LB: loop body
LE: loop exit
PB: predicated region body
PF: predicated region fallthrough
CT: control target
= control target key end

     0   :  { %8 = vsyncpa [#allocation3], 0  ;;  %s1709_s0 = inlined_call_operand.vmem [shape: bf16[392,9], index: 0, kind: input, shape index: {}]   ;;  %s1710_s1 = inlined_call_operand.hbm [shape: bf16[9,256], index: 1, kind: input, shape index: {}]   ;;  %s1711_s2 = inlined_call_operand.hbm [shape: f32[1,256], index: 2, kind: input, shape index: {}]   ;;  %s1712_s3 = inlined_call_operand.vmem [shape: bf16[392,256], index: 3, kind: output, shape index: {}]  }
   0x1   :  { %9 = vsyncpa [#allocation5], 0  ;;  %s1285_s12 = smov [#allocation2]   ;;  %s1237_s16 = scalar_lea.hbm %s1710_s1, 256 }
   0x2   :  { %s17_s13 = sshll.u32 %s1285_s12, 4  ;;  %p1238_p0 = scmp.ne.s32.totalorder %s1710_s1, %s1237_s16  ;;  %s18_s13 = int_to_ptr.vmem [resolvable:$true] %s17_s13 }
   0x3   :  { %p1241_p1 = scmp.lt.u32.totalorder %s1237_s16, %s1710_s1 }
   0x5   :  { %p1243_p2 = pnand %p1241_p1, %p1238_p0 }
   0x7   :  { %1246 = shalt.err (!%p1243_p2)
}
   0x8   :  { %s1247_s21 = scalar_lea.vmem %s18_s13, 256  ;;  %p1252_p4 = scmp.lt.s32.totalorder %s18_s13, %s18_s13 }
   0x9   :  { %p1248_p3 = scmp.ne.s32.totalorder %s18_s13, %s1247_s21  ;;  %p1253_p5 = scmp.lt.s32.totalorder %s1247_s21, %s1247_s21 }
   0xb   :  { %p1254_p6 = por %p1253_p5, %p1252_p4 }
   0xd   :  { %p1255_p7 = pnand %p1254_p6, %p1248_p3 }
   0xf   :  { %1258 = shalt.err (!%p1255_p7)
}
  0x10   :  { %s1286_s22 = smov 128   ;;  %s1287_s23 = smov 8  }
  0x11   :  { %23 = dma.hbm_to_vmem [thread:$0]  %s1710_s1, 256, %s18_s13, [#allocation3], %s1286_s22, %s1286_s22, %s1287_s23  }
  0x12   :  { %s1288_s26 = smov [#allocation4]   ;;  %s1259_s30 = scalar_lea.hbm %s1711_s2, 32 }
  0x13   :  { %s30_s27 = sshll.u32 %s1288_s26, 4  ;;  %p1260_p8 = scmp.ne.s32.totalorder %s1711_s2, %s1259_s30  ;;  %s31_s27 = int_to_ptr.vmem [resolvable:$true] %s30_s27 }
  0x14   :  { %p1263_p9 = scmp.lt.u32.totalorder %s1259_s30, %s1711_s2 }
  0x16   :  { %p1265_p10 = pnand %p1263_p9, %p1260_p8 }
  0x18   :  { %1268 = shalt.err (!%p1265_p10)
}
  0x19   :  { %s1269_s8 = scalar_lea.vmem %s31_s27, 32  ;;  %p1274_p12 = scmp.lt.s32.totalorder %s31_s27, %s31_s27 }
  0x1a   :  { %p1270_p11 = scmp.ne.s32.totalorder %s31_s27, %s1269_s8  ;;  %p1275_p13 = scmp.lt.s32.totalorder %s1269_s8, %s1269_s8 }
  0x1c   :  { %p1276_p0 = por %p1275_p13, %p1274_p12 }
  0x1e   :  { %p1277_p1 = pnand %p1276_p0, %p1270_p11 }
  0x20   :  { %1280 = shalt.err (!%p1277_p1)
}
  0x21   :  { %33 = dma.hbm_to_vmem [thread:$0]  %s1711_s2, 32, %s31_s27, [#allocation5]  }
  0x22   :  { %1281 = dma.done.wait [#allocation3], 256  }
  0x23   :  { %1282 = vsyncadd [#allocation3], 4294967040 }
  0x24   :  { %1283 = dma.done.wait [#allocation5], 32  }
  0x25   :  { %1284 = vsyncadd [#allocation5], 4294967264  ;;  %vm311_vm0 = vcmask 1043456   ;;  %v1289_v0 = vmov 0   ;;  %vm312_vm1 = vcmask 1044480   ;;  %v1290_v1 = vmov 65535  }
  0x26   :  { %353 = vmatprep.mubr.bf16.mxu0 %v1289_v0  ;;  %483 = vmatprep.mubr.bf16.mxu1 %v1289_v0  ;;  %v313_v2 = vsel %vm311_vm0, 4294967295, %v1290_v1  ;;  %v1209_v4 = vld [vmem:[#allocation2 + $0x4] ss:$8 sps:$4 sm:$0x1f]   ;;  %vm235_vm2 = vcmask 72704   ;;  %v1215_v11 = vld [vmem:[%s1709_s0 + $0x70] sm:$0xff]   ;;  %v94_v33 = vlaneseq }
  0x27   :  { %v314_v3 = vsel %vm312_vm1, %v313_v2, 0  ;;  %v1211_v5 = vld [vmem:[#allocation2] ss:$8 sps:$4 sm:$0x1f]   ;;  %v1216_v12 = vld [vmem:[%s1709_s0 + $0x10] sm:$0xff]   ;;  %v1217_v13 = vld [vmem:[%s1709_s0 + $0x78] sm:$0xff]  }
  0x28   :  { %v319_v6 = vand.u32 %v1209_v4, %v314_v3  ;;  %v316_v7 = vand.u32 %v1211_v5, %v314_v3  ;;  %v1212_v8 = vld [vmem:[%s1709_s0] sm:$0xff]   ;;  %v1213_v9 = vld [vmem:[%s1709_s0 + $0x68] sm:$0xff]   ;;  %v1218_v14 = vld [vmem:[%s1709_s0 + $0x18] sm:$0xff]   ;;  %v95_v34 = vshrl.u32 %v94_v33, 7 }
  0x29   :  { %v1214_v10 = vld [vmem:[%s1709_s0 + $0x8] sm:$0xff]   ;;  %v1219_v15 = vld [vmem:[%s1709_s0 + $0x80] sm:$0xff]   ;;  %v1223_v19 = vld [vmem:[%s1709_s0 + $0x90] sm:$0xff]  }
  0x2a   :  { %321 = vmatprep.subr.bf16.mxu0 %v319_v6  ;;  %1201 = vmatprep.subr.bf16.mxu1 %v319_v6  ;;  %v1220_v16 = vld [vmem:[%s1709_s0 + $0x20] sm:$0xff]   ;;  %v1221_v17 = vld [vmem:[%s1709_s0 + $0x88] sm:$0xff]   ;;  %v1224_v20 = vld [vmem:[%s1709_s0 + $0x30] sm:$0xff]   ;;  %v96_v35 = vsub.s32 0, %v95_v34  ;;  %v100_v37 = vsub.s32 1, %v95_v34 }
  0x2b   :  { %322 = vmatpush1.bf16.msra.mxu0 %v316_v7  ;;  %1202 = vmatpush1.bf16.msra.mxu1 %v316_v7  ;;  %v1222_v18 = vld [vmem:[%s1709_s0 + $0x28] sm:$0xff]   ;;  %v1225_v21 = vld [vmem:[%s1709_s0 + $0x98] sm:$0xff]   ;;  %v1227_v23 = vld [vmem:[%s1709_s0 + $0xa0] sm:$0xff]  }
  0x2c   :  { %v1226_v22 = vld [vmem:[%s1709_s0 + $0x38] sm:$0xff]   ;;  %v1228_v24 = vld [vmem:[%s1709_s0 + $0x40] sm:$0xff]   ;;  %v1229_v25 = vld [vmem:[%s1709_s0 + $0xa8] sm:$0xff]  }
  0x2d   :  { %v1230_v26 = vld [vmem:[%s1709_s0 + $0x48] sm:$0xff]   ;;  %v1231_v27 = vld [vmem:[%s1709_s0 + $0xb0] sm:$0xff]   ;;  %v1233_v29 = vld [vmem:[%s1709_s0 + $0xb8] sm:$0xff]  }
  0x2e   :  { %1078 = vmatmul.mubr.msk.bf16.vlgmr.msra.gmra.mrb[0].mxu0 %vm235_vm2, %v1212_v8  ;;  %1091 = vmatmul.mubr.msk.bf16.vlgmr.msra.gmra.mrb[0].mxu1 %vm235_vm2, %v1213_v9  ;;  %v1232_v28 = vld [vmem:[%s1709_s0 + $0x50] sm:$0xff]   ;;  %v1234_v30 = vld [vmem:[%s1709_s0 + $0x58] sm:$0xff]   ;;  %v1235_v31 = vld [vmem:[%s1709_s0 + $0xc0] ss:$0 sps:$4 sm:$0xff]  }
  0x2f   :  { %363 = vmatprep.mubr.bf16.mxu0 %v1289_v0  ;;  %493 = vmatprep.mubr.bf16.mxu1 %v1289_v0  ;;  %v1236_v32 = vld [vmem:[%s1709_s0 + $0x60] sm:$0xff]   ;;  %v92_v36 = vld [vmem:[#allocation4] sm:$0x3] }
  0x30   :  { %v1460_v38 = vrot.slane %v92_v36, %v96_v35  ;;  %v1462_v39 = vrot.slane %v92_v36, %v100_v37 }
  0x36   :  { %1079 = vmatmul.mubr.msk.bf16.gmra.mrb[4].mxu0 %vm235_vm2, %v1214_v10  ;;  %1092 = vmatmul.mubr.msk.bf16.gmra.mrb[4].mxu1 %vm235_vm2, %v1215_v11 }
  0x37   :  { %373 = vmatprep.mubr.bf16.mxu0 %v1289_v0  ;;  %503 = vmatprep.mubr.bf16.mxu1 %v1289_v0 }
  0x3e   :  { %1080 = vmatmul.mubr.msk.bf16.gmra.mrb[8].mxu0 %vm235_vm2, %v1216_v12  ;;  %1093 = vmatmul.mubr.msk.bf16.gmra.mrb[8].mxu1 %vm235_vm2, %v1217_v13 }
  0x3f   :  { %383 = vmatprep.mubr.bf16.mxu0 %v1289_v0  ;;  %513 = vmatprep.mubr.bf16.mxu1 %v1289_v0 }
  0x46   :  { %1081 = vmatmul.mubr.msk.bf16.gmra.mrb[12].mxu0 %vm235_vm2, %v1218_v14  ;;  %1094 = vmatmul.mubr.msk.bf16.gmra.mrb[12].mxu1 %vm235_vm2, %v1219_v15 }
  0x47   :  { %393 = vmatprep.mubr.bf16.mxu0 %v1289_v0  ;;  %523 = vmatprep.mubr.bf16.mxu1 %v1289_v0 }
  0x4e   :  { %1082 = vmatmul.mubr.msk.bf16.gmra.mrb[16].mxu0 %vm235_vm2, %v1220_v16  ;;  %1095 = vmatmul.mubr.msk.bf16.gmra.mrb[16].mxu1 %vm235_vm2, %v1221_v17 }
  0x4f   :  { %403 = vmatprep.mubr.bf16.mxu0 %v1289_v0  ;;  %533 = vmatprep.mubr.bf16.mxu1 %v1289_v0 }
  0x56   :  { %1083 = vmatmul.mubr.msk.bf16.gmra.mrb[20].mxu0 %vm235_vm2, %v1222_v18  ;;  %1096 = vmatmul.mubr.msk.bf16.gmra.mrb[20].mxu1 %vm235_vm2, %v1223_v19 }
  0x57   :  { %413 = vmatprep.mubr.bf16.mxu0 %v1289_v0  ;;  %543 = vmatprep.mubr.bf16.mxu1 %v1289_v0 }
  0x5e   :  { %1084 = vmatmul.mubr.msk.bf16.gmra.mrb[24].mxu0 %vm235_vm2, %v1224_v20  ;;  %1097 = vmatmul.mubr.msk.bf16.gmra.mrb[24].mxu1 %vm235_vm2, %v1225_v21 }
  0x5f   :  { %423 = vmatprep.mubr.bf16.mxu0 %v1289_v0  ;;  %553 = vmatprep.mubr.bf16.mxu1 %v1289_v0 }
  0x66   :  { %1085 = vmatmul.mubr.msk.bf16.gmra.mrb[28].mxu0 %vm235_vm2, %v1226_v22  ;;  %1098 = vmatmul.mubr.msk.bf16.gmra.mrb[28].mxu1 %vm235_vm2, %v1227_v23 }
  0x67   :  { %433 = vmatprep.mubr.bf16.mxu0 %v1289_v0  ;;  %563 = vmatprep.mubr.bf16.mxu1 %v1289_v0 }
  0x6e   :  { %1086 = vmatmul.mubr.msk.bf16.gmra.mrb[32].mxu0 %vm235_vm2, %v1228_v24  ;;  %1099 = vmatmul.mubr.msk.bf16.gmra.mrb[32].mxu1 %vm235_vm2, %v1229_v25 }
  0x6f   :  { %443 = vmatprep.mubr.bf16.mxu0 %v1289_v0  ;;  %573 = vmatprep.mubr.bf16.mxu1 %v1289_v0 }
  0x76   :  { %1087 = vmatmul.mubr.msk.bf16.gmra.mrb[36].mxu0 %vm235_vm2, %v1230_v26  ;;  %1100 = vmatmul.mubr.msk.bf16.gmra.mrb[36].mxu1 %vm235_vm2, %v1231_v27 }
  0x77   :  { %453 = vmatprep.mubr.bf16.mxu0 %v1289_v0  ;;  %583 = vmatprep.mubr.bf16.mxu1 %v1289_v0 }
  0x7e   :  { %1088 = vmatmul.mubr.msk.bf16.gmra.mrb[40].mxu0 %vm235_vm2, %v1232_v28  ;;  %1101 = vmatmul.mubr.msk.bf16.gmra.mrb[40].mxu1 %vm235_vm2, %v1233_v29 }
  0x7f   :  { %463 = vmatprep.mubr.bf16.mxu0 %v1289_v0  ;;  %593 = vmatprep.mubr.bf16.mxu1 %v1289_v0 }
  0x86   :  { %1089 = vmatmul.mubr.msk.bf16.gmra.mrb[44].mxu0 %vm235_vm2, %v1234_v30  ;;  %1102 = vmatmul.mubr.msk.bf16.gmra.mrb[44].mxu1 %vm235_vm2, %v1235_v31 }
  0x87   :  { %473 = vmatprep.mubr.bf16.mxu0 %v1289_v0 }
  0x8e   :  { %1090 = vmatmul.mubr.msk.bf16.gmra.mrb[48].mxu0 %vm235_vm2, %v1236_v32 }
 0x101   :  { %v355_v40 = vpop.f32.mrb[0].mxu0  ;;  %v485_v41 = vpop.f32.mrb[0].mxu1 }
 0x102   :  { %v356_v42 = vadd.f32 %v355_v40, %v1460_v38  ;;  %v357_v43 = vpop.f32.mrb[1].mxu0  ;;  %v486_v44 = vadd.f32 %v485_v41, %v1460_v38  ;;  %v487_v45 = vpop.f32.mrb[1].mxu1 }
 0x103   :  { %v358_v46 = vadd.f32 %v357_v43, %v1462_v39  ;;  %v359_v47 = vpop.f32.mrb[2].mxu0  ;;  %v488_v48 = vadd.f32 %v487_v45, %v1462_v39  ;;  %v489_v49 = vpop.f32.mrb[2].mxu1 }
 0x104   :  { %v602_v50 = vmax.f32 %v356_v42, 0.0  ;;  %v360_v51 = vadd.f32 %v359_v47, %v1460_v38  ;;  %v361_v52 = vpop.f32.mrb[3].mxu0  ;;  %v654_v53 = vmax.f32 %v486_v44, 0.0  ;;  %v490_v54 = vadd.f32 %v489_v49, %v1460_v38  ;;  %v491_v55 = vpop.f32.mrb[3].mxu1 }
 0x105   :  { %v603_v56 = vmax.f32 %v358_v46, 0.0  ;;  %v362_v57 = vadd.f32 %v361_v52, %v1462_v39  ;;  %v655_v58 = vmax.f32 %v488_v48, 0.0  ;;  %v492_v59 = vadd.f32 %v491_v55, %v1462_v39 }
 0x106   :  { %v604_v60 = vmax.f32 %v360_v51, 0.0  ;;  %v656_v61 = vmax.f32 %v490_v54, 0.0 }
 0x107   :  { %v1152_v62 = vpack.c.bf16 %v603_v56, %v602_v50  ;;  %v605_v63 = vmax.f32 %v362_v57, 0.0  ;;  %v1178_v0 = vpack.c.bf16 %v655_v58, %v654_v53  ;;  %v657_v1 = vmax.f32 %v492_v59, 0.0 }
 0x109   :  { %996 = vst [vmem:[%s1712_s3] sm:$0xff] %v1152_v62  ;;  %v1153_v2 = vpack.c.bf16 %v605_v63, %v604_v60  ;;  %v365_v3 = vpop.f32.mrb[4].mxu0  ;;  %1022 = vst [vmem:[%s1712_s3 + $0xd0] sm:$0xff] %v1178_v0  ;;  %v1179_v4 = vpack.c.bf16 %v657_v1, %v656_v61  ;;  %v495_v5 = vpop.f32.mrb[4].mxu1 }
 0x10a   :  { %v366_v6 = vadd.f32 %v365_v3, %v1460_v38  ;;  %v367_v7 = vpop.f32.mrb[5].mxu0  ;;  %v496_v8 = vadd.f32 %v495_v5, %v1460_v38  ;;  %v497_v9 = vpop.f32.mrb[5].mxu1 }
 0x10b   :  { %997 = vst [vmem:[%s1712_s3 + $0x8] sm:$0xff] %v1153_v2  ;;  %v368_v10 = vadd.f32 %v367_v7, %v1462_v39  ;;  %v369_v11 = vpop.f32.mrb[6].mxu0  ;;  %1023 = vst [vmem:[%s1712_s3 + $0xd8] sm:$0xff] %v1179_v4  ;;  %v498_v12 = vadd.f32 %v497_v9, %v1462_v39  ;;  %v499_v13 = vpop.f32.mrb[6].mxu1 }
 0x10c   :  { %v606_v14 = vmax.f32 %v366_v6, 0.0  ;;  %v370_v15 = vadd.f32 %v369_v11, %v1460_v38  ;;  %v371_v16 = vpop.f32.mrb[7].mxu0  ;;  %v658_v17 = vmax.f32 %v496_v8, 0.0  ;;  %v500_v18 = vadd.f32 %v499_v13, %v1460_v38  ;;  %v501_v19 = vpop.f32.mrb[7].mxu1 }
 0x10d   :  { %v607_v20 = vmax.f32 %v368_v10, 0.0  ;;  %v372_v21 = vadd.f32 %v371_v16, %v1462_v39  ;;  %v659_v22 = vmax.f32 %v498_v12, 0.0  ;;  %v502_v23 = vadd.f32 %v501_v19, %v1462_v39 }
 0x10e   :  { %v608_v24 = vmax.f32 %v370_v15, 0.0  ;;  %v660_v25 = vmax.f32 %v500_v18, 0.0 }
 0x10f   :  { %v1154_v26 = vpack.c.bf16 %v607_v20, %v606_v14  ;;  %v609_v27 = vmax.f32 %v372_v21, 0.0  ;;  %v1180_v28 = vpack.c.bf16 %v659_v22, %v658_v17  ;;  %v661_v29 = vmax.f32 %v502_v23, 0.0 }
 0x111   :  { %998 = vst [vmem:[%s1712_s3 + $0x10] sm:$0xff] %v1154_v26  ;;  %v1155_v30 = vpack.c.bf16 %v609_v27, %v608_v24  ;;  %v375_v31 = vpop.f32.mrb[8].mxu0  ;;  %1024 = vst [vmem:[%s1712_s3 + $0xe0] sm:$0xff] %v1180_v28  ;;  %v1181_v32 = vpack.c.bf16 %v661_v29, %v660_v25  ;;  %v505_v33 = vpop.f32.mrb[8].mxu1 }
 0x112   :  { %v376_v34 = vadd.f32 %v375_v31, %v1460_v38  ;;  %v377_v35 = vpop.f32.mrb[9].mxu0  ;;  %v506_v36 = vadd.f32 %v505_v33, %v1460_v38  ;;  %v507_v37 = vpop.f32.mrb[9].mxu1 }
 0x113   :  { %999 = vst [vmem:[%s1712_s3 + $0x18] sm:$0xff] %v1155_v30  ;;  %v378_v40 = vadd.f32 %v377_v35, %v1462_v39  ;;  %v379_v41 = vpop.f32.mrb[10].mxu0  ;;  %1025 = vst [vmem:[%s1712_s3 + $0xe8] sm:$0xff] %v1181_v32  ;;  %v508_v42 = vadd.f32 %v507_v37, %v1462_v39  ;;  %v509_v43 = vpop.f32.mrb[10].mxu1 }
 0x114   :  { %v610_v44 = vmax.f32 %v376_v34, 0.0  ;;  %v380_v45 = vadd.f32 %v379_v41, %v1460_v38  ;;  %v381_v46 = vpop.f32.mrb[11].mxu0  ;;  %v662_v47 = vmax.f32 %v506_v36, 0.0  ;;  %v510_v48 = vadd.f32 %v509_v43, %v1460_v38  ;;  %v511_v49 = vpop.f32.mrb[11].mxu1 }
 0x115   :  { %v611_v50 = vmax.f32 %v378_v40, 0.0  ;;  %v382_v51 = vadd.f32 %v381_v46, %v1462_v39  ;;  %v663_v52 = vmax.f32 %v508_v42, 0.0  ;;  %v512_v53 = vadd.f32 %v511_v49, %v1462_v39 }
 0x116   :  { %v612_v54 = vmax.f32 %v380_v45, 0.0  ;;  %v664_v55 = vmax.f32 %v510_v48, 0.0 }
 0x117   :  { %v1156_v56 = vpack.c.bf16 %v611_v50, %v610_v44  ;;  %v613_v57 = vmax.f32 %v382_v51, 0.0  ;;  %v1182_v58 = vpack.c.bf16 %v663_v52, %v662_v47  ;;  %v665_v59 = vmax.f32 %v512_v53, 0.0 }
 0x119   :  { %1000 = vst [vmem:[%s1712_s3 + $0x20] sm:$0xff] %v1156_v56  ;;  %v1157_v60 = vpack.c.bf16 %v613_v57, %v612_v54  ;;  %v385_v61 = vpop.f32.mrb[12].mxu0  ;;  %1026 = vst [vmem:[%s1712_s3 + $0xf0] sm:$0xff] %v1182_v58  ;;  %v1183_v62 = vpack.c.bf16 %v665_v59, %v664_v55  ;;  %v515_v63 = vpop.f32.mrb[12].mxu1 }
 0x11a   :  { %v386_v0 = vadd.f32 %v385_v61, %v1460_v38  ;;  %v387_v1 = vpop.f32.mrb[13].mxu0  ;;  %v516_v2 = vadd.f32 %v515_v63, %v1460_v38  ;;  %v517_v3 = vpop.f32.mrb[13].mxu1 }
 0x11b   :  { %1001 = vst [vmem:[%s1712_s3 + $0x28] sm:$0xff] %v1157_v60  ;;  %v388_v4 = vadd.f32 %v387_v1, %v1462_v39  ;;  %v389_v5 = vpop.f32.mrb[14].mxu0  ;;  %1027 = vst [vmem:[%s1712_s3 + $0xf8] sm:$0xff] %v1183_v62  ;;  %v518_v6 = vadd.f32 %v517_v3, %v1462_v39  ;;  %v519_v7 = vpop.f32.mrb[14].mxu1 }
 0x11c   :  { %v614_v8 = vmax.f32 %v386_v0, 0.0  ;;  %v390_v9 = vadd.f32 %v389_v5, %v1460_v38  ;;  %v391_v10 = vpop.f32.mrb[15].mxu0  ;;  %v666_v11 = vmax.f32 %v516_v2, 0.0  ;;  %v520_v12 = vadd.f32 %v519_v7, %v1460_v38  ;;  %v521_v13 = vpop.f32.mrb[15].mxu1 }
 0x11d   :  { %v615_v14 = vmax.f32 %v388_v4, 0.0  ;;  %v392_v15 = vadd.f32 %v391_v10, %v1462_v39  ;;  %v667_v16 = vmax.f32 %v518_v6, 0.0  ;;  %v522_v17 = vadd.f32 %v521_v13, %v1462_v39 }
 0x11e   :  { %v616_v18 = vmax.f32 %v390_v9, 0.0  ;;  %v668_v19 = vmax.f32 %v520_v12, 0.0 }
 0x11f   :  { %v1158_v20 = vpack.c.bf16 %v615_v14, %v614_v8  ;;  %v617_v21 = vmax.f32 %v392_v15, 0.0  ;;  %v1184_v22 = vpack.c.bf16 %v667_v16, %v666_v11  ;;  %v669_v23 = vmax.f32 %v522_v17, 0.0 }
 0x121   :  { %1002 = vst [vmem:[%s1712_s3 + $0x30] sm:$0xff] %v1158_v20  ;;  %v1159_v24 = vpack.c.bf16 %v617_v21, %v616_v18  ;;  %v395_v25 = vpop.f32.mrb[16].mxu0  ;;  %1028 = vst [vmem:[%s1712_s3 + $0x100] sm:$0xff] %v1184_v22  ;;  %v1185_v26 = vpack.c.bf16 %v669_v23, %v668_v19  ;;  %v525_v27 = vpop.f32.mrb[16].mxu1 }
 0x122   :  { %v396_v28 = vadd.f32 %v395_v25, %v1460_v38  ;;  %v397_v29 = vpop.f32.mrb[17].mxu0  ;;  %v526_v30 = vadd.f32 %v525_v27, %v1460_v38  ;;  %v527_v31 = vpop.f32.mrb[17].mxu1 }
 0x123   :  { %1003 = vst [vmem:[%s1712_s3 + $0x38] sm:$0xff] %v1159_v24  ;;  %v398_v32 = vadd.f32 %v397_v29, %v1462_v39  ;;  %v399_v33 = vpop.f32.mrb[18].mxu0  ;;  %1029 = vst [vmem:[%s1712_s3 + $0x108] sm:$0xff] %v1185_v26  ;;  %v528_v34 = vadd.f32 %v527_v31, %v1462_v39  ;;  %v529_v35 = vpop.f32.mrb[18].mxu1 }
 0x124   :  { %v618_v36 = vmax.f32 %v396_v28, 0.0  ;;  %v400_v37 = vadd.f32 %v399_v33, %v1460_v38  ;;  %v401_v40 = vpop.f32.mrb[19].mxu0  ;;  %v670_v41 = vmax.f32 %v526_v30, 0.0  ;;  %v530_v42 = vadd.f32 %v529_v35, %v1460_v38  ;;  %v531_v43 = vpop.f32.mrb[19].mxu1 }
 0x125   :  { %v619_v44 = vmax.f32 %v398_v32, 0.0  ;;  %v402_v45 = vadd.f32 %v401_v40, %v1462_v39  ;;  %v671_v46 = vmax.f32 %v528_v34, 0.0  ;;  %v532_v47 = vadd.f32 %v531_v43, %v1462_v39 }
 0x126   :  { %v620_v48 = vmax.f32 %v400_v37, 0.0  ;;  %v672_v49 = vmax.f32 %v530_v42, 0.0 }
 0x127   :  { %v1160_v50 = vpack.c.bf16 %v619_v44, %v618_v36  ;;  %v621_v51 = vmax.f32 %v402_v45, 0.0  ;;  %v1186_v52 = vpack.c.bf16 %v671_v46, %v670_v41  ;;  %v673_v53 = vmax.f32 %v532_v47, 0.0 }
 0x129   :  { %1004 = vst [vmem:[%s1712_s3 + $0x40] sm:$0xff] %v1160_v50  ;;  %v1161_v54 = vpack.c.bf16 %v621_v51, %v620_v48  ;;  %v405_v55 = vpop.f32.mrb[20].mxu0  ;;  %1030 = vst [vmem:[%s1712_s3 + $0x110] sm:$0xff] %v1186_v52  ;;  %v1187_v56 = vpack.c.bf16 %v673_v53, %v672_v49  ;;  %v535_v57 = vpop.f32.mrb[20].mxu1 }
 0x12a   :  { %v406_v58 = vadd.f32 %v405_v55, %v1460_v38  ;;  %v407_v59 = vpop.f32.mrb[21].mxu0  ;;  %v536_v60 = vadd.f32 %v535_v57, %v1460_v38  ;;  %v537_v61 = vpop.f32.mrb[21].mxu1 }
 0x12b   :  { %1005 = vst [vmem:[%s1712_s3 + $0x48] sm:$0xff] %v1161_v54  ;;  %v408_v62 = vadd.f32 %v407_v59, %v1462_v39  ;;  %v409_v63 = vpop.f32.mrb[22].mxu0  ;;  %1031 = vst [vmem:[%s1712_s3 + $0x118] sm:$0xff] %v1187_v56  ;;  %v538_v0 = vadd.f32 %v537_v61, %v1462_v39  ;;  %v539_v1 = vpop.f32.mrb[22].mxu1 }
 0x12c   :  { %v622_v2 = vmax.f32 %v406_v58, 0.0  ;;  %v410_v3 = vadd.f32 %v409_v63, %v1460_v38  ;;  %v411_v4 = vpop.f32.mrb[23].mxu0  ;;  %v674_v5 = vmax.f32 %v536_v60, 0.0  ;;  %v540_v6 = vadd.f32 %v539_v1, %v1460_v38  ;;  %v541_v7 = vpop.f32.mrb[23].mxu1 }
 0x12d   :  { %v623_v8 = vmax.f32 %v408_v62, 0.0  ;;  %v412_v9 = vadd.f32 %v411_v4, %v1462_v39  ;;  %v675_v10 = vmax.f32 %v538_v0, 0.0  ;;  %v542_v11 = vadd.f32 %v541_v7, %v1462_v39 }
 0x12e   :  { %v624_v12 = vmax.f32 %v410_v3, 0.0  ;;  %v676_v13 = vmax.f32 %v540_v6, 0.0 }
 0x12f   :  { %v1162_v14 = vpack.c.bf16 %v623_v8, %v622_v2  ;;  %v625_v15 = vmax.f32 %v412_v9, 0.0  ;;  %v1188_v16 = vpack.c.bf16 %v675_v10, %v674_v5  ;;  %v677_v17 = vmax.f32 %v542_v11, 0.0 }
 0x131   :  { %1006 = vst [vmem:[%s1712_s3 + $0x50] sm:$0xff] %v1162_v14  ;;  %v1163_v18 = vpack.c.bf16 %v625_v15, %v624_v12  ;;  %v415_v19 = vpop.f32.mrb[24].mxu0  ;;  %1032 = vst [vmem:[%s1712_s3 + $0x120] sm:$0xff] %v1188_v16  ;;  %v1189_v20 = vpack.c.bf16 %v677_v17, %v676_v13  ;;  %v545_v21 = vpop.f32.mrb[24].mxu1 }
 0x132   :  { %v416_v22 = vadd.f32 %v415_v19, %v1460_v38  ;;  %v417_v23 = vpop.f32.mrb[25].mxu0  ;;  %v546_v24 = vadd.f32 %v545_v21, %v1460_v38  ;;  %v547_v25 = vpop.f32.mrb[25].mxu1 }
 0x133   :  { %1007 = vst [vmem:[%s1712_s3 + $0x58] sm:$0xff] %v1163_v18  ;;  %v418_v26 = vadd.f32 %v417_v23, %v1462_v39  ;;  %v419_v27 = vpop.f32.mrb[26].mxu0  ;;  %1033 = vst [vmem:[%s1712_s3 + $0x128] sm:$0xff] %v1189_v20  ;;  %v548_v28 = vadd.f32 %v547_v25, %v1462_v39  ;;  %v549_v29 = vpop.f32.mrb[26].mxu1 }
 0x134   :  { %v626_v30 = vmax.f32 %v416_v22, 0.0  ;;  %v420_v31 = vadd.f32 %v419_v27, %v1460_v38  ;;  %v421_v32 = vpop.f32.mrb[27].mxu0  ;;  %v678_v33 = vmax.f32 %v546_v24, 0.0  ;;  %v550_v34 = vadd.f32 %v549_v29, %v1460_v38  ;;  %v551_v35 = vpop.f32.mrb[27].mxu1 }
 0x135   :  { %v627_v36 = vmax.f32 %v418_v26, 0.0  ;;  %v422_v37 = vadd.f32 %v421_v32, %v1462_v39  ;;  %v679_v40 = vmax.f32 %v548_v28, 0.0  ;;  %v552_v41 = vadd.f32 %v551_v35, %v1462_v39 }
 0x136   :  { %v628_v42 = vmax.f32 %v420_v31, 0.0  ;;  %v680_v43 = vmax.f32 %v550_v34, 0.0 }
 0x137   :  { %v1164_v44 = vpack.c.bf16 %v627_v36, %v626_v30  ;;  %v629_v45 = vmax.f32 %v422_v37, 0.0  ;;  %v1190_v46 = vpack.c.bf16 %v679_v40, %v678_v33  ;;  %v681_v47 = vmax.f32 %v552_v41, 0.0 }
 0x139   :  { %1008 = vst [vmem:[%s1712_s3 + $0x60] sm:$0xff] %v1164_v44  ;;  %v1165_v48 = vpack.c.bf16 %v629_v45, %v628_v42  ;;  %v425_v49 = vpop.f32.mrb[28].mxu0  ;;  %1034 = vst [vmem:[%s1712_s3 + $0x130] sm:$0xff] %v1190_v46  ;;  %v1191_v50 = vpack.c.bf16 %v681_v47, %v680_v43  ;;  %v555_v51 = vpop.f32.mrb[28].mxu1 }
 0x13a   :  { %v426_v52 = vadd.f32 %v425_v49, %v1460_v38  ;;  %v427_v53 = vpop.f32.mrb[29].mxu0  ;;  %v556_v54 = vadd.f32 %v555_v51, %v1460_v38  ;;  %v557_v55 = vpop.f32.mrb[29].mxu1 }
 0x13b   :  { %1009 = vst [vmem:[%s1712_s3 + $0x68] sm:$0xff] %v1165_v48  ;;  %v428_v56 = vadd.f32 %v427_v53, %v1462_v39  ;;  %v429_v57 = vpop.f32.mrb[30].mxu0  ;;  %1035 = vst [vmem:[%s1712_s3 + $0x138] sm:$0xff] %v1191_v50  ;;  %v558_v58 = vadd.f32 %v557_v55, %v1462_v39  ;;  %v559_v59 = vpop.f32.mrb[30].mxu1 }
 0x13c   :  { %v630_v60 = vmax.f32 %v426_v52, 0.0  ;;  %v430_v61 = vadd.f32 %v429_v57, %v1460_v38  ;;  %v431_v62 = vpop.f32.mrb[31].mxu0  ;;  %v682_v63 = vmax.f32 %v556_v54, 0.0  ;;  %v560_v0 = vadd.f32 %v559_v59, %v1460_v38  ;;  %v561_v1 = vpop.f32.mrb[31].mxu1 }
 0x13d   :  { %v631_v2 = vmax.f32 %v428_v56, 0.0  ;;  %v432_v3 = vadd.f32 %v431_v62, %v1462_v39  ;;  %v683_v4 = vmax.f32 %v558_v58, 0.0  ;;  %v562_v5 = vadd.f32 %v561_v1, %v1462_v39 }
 0x13e   :  { %v632_v6 = vmax.f32 %v430_v61, 0.0  ;;  %v684_v7 = vmax.f32 %v560_v0, 0.0 }
 0x13f   :  { %v1166_v8 = vpack.c.bf16 %v631_v2, %v630_v60  ;;  %v633_v9 = vmax.f32 %v432_v3, 0.0  ;;  %v1192_v10 = vpack.c.bf16 %v683_v4, %v682_v63  ;;  %v685_v11 = vmax.f32 %v562_v5, 0.0 }
 0x141   :  { %1010 = vst [vmem:[%s1712_s3 + $0x70] sm:$0xff] %v1166_v8  ;;  %v1167_v12 = vpack.c.bf16 %v633_v9, %v632_v6  ;;  %v435_v13 = vpop.f32.mrb[32].mxu0  ;;  %1036 = vst [vmem:[%s1712_s3 + $0x140] sm:$0xff] %v1192_v10  ;;  %v1193_v14 = vpack.c.bf16 %v685_v11, %v684_v7  ;;  %v565_v15 = vpop.f32.mrb[32].mxu1 }
 0x142   :  { %v436_v16 = vadd.f32 %v435_v13, %v1460_v38  ;;  %v437_v17 = vpop.f32.mrb[33].mxu0  ;;  %v566_v18 = vadd.f32 %v565_v15, %v1460_v38  ;;  %v567_v19 = vpop.f32.mrb[33].mxu1 }
 0x143   :  { %1011 = vst [vmem:[%s1712_s3 + $0x78] sm:$0xff] %v1167_v12  ;;  %v438_v20 = vadd.f32 %v437_v17, %v1462_v39  ;;  %v439_v21 = vpop.f32.mrb[34].mxu0  ;;  %1037 = vst [vmem:[%s1712_s3 + $0x148] sm:$0xff] %v1193_v14  ;;  %v568_v22 = vadd.f32 %v567_v19, %v1462_v39  ;;  %v569_v23 = vpop.f32.mrb[34].mxu1 }
 0x144   :  { %v634_v24 = vmax.f32 %v436_v16, 0.0  ;;  %v440_v25 = vadd.f32 %v439_v21, %v1460_v38  ;;  %v441_v26 = vpop.f32.mrb[35].mxu0  ;;  %v686_v27 = vmax.f32 %v566_v18, 0.0  ;;  %v570_v28 = vadd.f32 %v569_v23, %v1460_v38  ;;  %v571_v29 = vpop.f32.mrb[35].mxu1 }
 0x145   :  { %v635_v30 = vmax.f32 %v438_v20, 0.0  ;;  %v442_v31 = vadd.f32 %v441_v26, %v1462_v39  ;;  %v687_v32 = vmax.f32 %v568_v22, 0.0  ;;  %v572_v33 = vadd.f32 %v571_v29, %v1462_v39 }
 0x146   :  { %v636_v34 = vmax.f32 %v440_v25, 0.0  ;;  %v688_v35 = vmax.f32 %v570_v28, 0.0 }
 0x147   :  { %v1168_v36 = vpack.c.bf16 %v635_v30, %v634_v24  ;;  %v637_v37 = vmax.f32 %v442_v31, 0.0  ;;  %v1194_v40 = vpack.c.bf16 %v687_v32, %v686_v27  ;;  %v689_v41 = vmax.f32 %v572_v33, 0.0 }
 0x149   :  { %1012 = vst [vmem:[%s1712_s3 + $0x80] sm:$0xff] %v1168_v36  ;;  %v1169_v42 = vpack.c.bf16 %v637_v37, %v636_v34  ;;  %v445_v43 = vpop.f32.mrb[36].mxu0  ;;  %1038 = vst [vmem:[%s1712_s3 + $0x150] sm:$0xff] %v1194_v40  ;;  %v1195_v44 = vpack.c.bf16 %v689_v41, %v688_v35  ;;  %v575_v45 = vpop.f32.mrb[36].mxu1 }
 0x14a   :  { %v446_v46 = vadd.f32 %v445_v43, %v1460_v38  ;;  %v447_v47 = vpop.f32.mrb[37].mxu0  ;;  %v576_v48 = vadd.f32 %v575_v45, %v1460_v38  ;;  %v577_v49 = vpop.f32.mrb[37].mxu1 }
 0x14b   :  { %1013 = vst [vmem:[%s1712_s3 + $0x88] sm:$0xff] %v1169_v42  ;;  %v448_v50 = vadd.f32 %v447_v47, %v1462_v39  ;;  %v449_v51 = vpop.f32.mrb[38].mxu0  ;;  %1039 = vst [vmem:[%s1712_s3 + $0x158] sm:$0xff] %v1195_v44  ;;  %v578_v52 = vadd.f32 %v577_v49, %v1462_v39  ;;  %v579_v53 = vpop.f32.mrb[38].mxu1 }
 0x14c   :  { %v638_v54 = vmax.f32 %v446_v46, 0.0  ;;  %v450_v55 = vadd.f32 %v449_v51, %v1460_v38  ;;  %v451_v56 = vpop.f32.mrb[39].mxu0  ;;  %v690_v57 = vmax.f32 %v576_v48, 0.0  ;;  %v580_v58 = vadd.f32 %v579_v53, %v1460_v38  ;;  %v581_v59 = vpop.f32.mrb[39].mxu1 }
 0x14d   :  { %v639_v60 = vmax.f32 %v448_v50, 0.0  ;;  %v452_v61 = vadd.f32 %v451_v56, %v1462_v39  ;;  %v691_v62 = vmax.f32 %v578_v52, 0.0  ;;  %v582_v63 = vadd.f32 %v581_v59, %v1462_v39 }
 0x14e   :  { %v640_v0 = vmax.f32 %v450_v55, 0.0  ;;  %v692_v1 = vmax.f32 %v580_v58, 0.0 }
 0x14f   :  { %v1170_v2 = vpack.c.bf16 %v639_v60, %v638_v54  ;;  %v641_v3 = vmax.f32 %v452_v61, 0.0  ;;  %v1196_v4 = vpack.c.bf16 %v691_v62, %v690_v57  ;;  %v693_v5 = vmax.f32 %v582_v63, 0.0 }
 0x151   :  { %1014 = vst [vmem:[%s1712_s3 + $0x90] sm:$0xff] %v1170_v2  ;;  %v1171_v6 = vpack.c.bf16 %v641_v3, %v640_v0  ;;  %v455_v7 = vpop.f32.mrb[40].mxu0  ;;  %1040 = vst [vmem:[%s1712_s3 + $0x160] sm:$0xff] %v1196_v4  ;;  %v1197_v8 = vpack.c.bf16 %v693_v5, %v692_v1  ;;  %v585_v9 = vpop.f32.mrb[40].mxu1 }
 0x152   :  { %v456_v10 = vadd.f32 %v455_v7, %v1460_v38  ;;  %v457_v11 = vpop.f32.mrb[41].mxu0  ;;  %v586_v12 = vadd.f32 %v585_v9, %v1460_v38  ;;  %v587_v13 = vpop.f32.mrb[41].mxu1 }
 0x153   :  { %1015 = vst [vmem:[%s1712_s3 + $0x98] sm:$0xff] %v1171_v6  ;;  %v458_v14 = vadd.f32 %v457_v11, %v1462_v39  ;;  %v459_v15 = vpop.f32.mrb[42].mxu0  ;;  %1041 = vst [vmem:[%s1712_s3 + $0x168] sm:$0xff] %v1197_v8  ;;  %v588_v16 = vadd.f32 %v587_v13, %v1462_v39  ;;  %v589_v17 = vpop.f32.mrb[42].mxu1 }
 0x154   :  { %v642_v18 = vmax.f32 %v456_v10, 0.0  ;;  %v460_v19 = vadd.f32 %v459_v15, %v1460_v38  ;;  %v461_v20 = vpop.f32.mrb[43].mxu0  ;;  %v694_v21 = vmax.f32 %v586_v12, 0.0  ;;  %v590_v22 = vadd.f32 %v589_v17, %v1460_v38  ;;  %v591_v23 = vpop.f32.mrb[43].mxu1 }
 0x155   :  { %v643_v24 = vmax.f32 %v458_v14, 0.0  ;;  %v462_v25 = vadd.f32 %v461_v20, %v1462_v39  ;;  %v695_v26 = vmax.f32 %v588_v16, 0.0  ;;  %v592_v27 = vadd.f32 %v591_v23, %v1462_v39 }
 0x156   :  { %v644_v28 = vmax.f32 %v460_v19, 0.0  ;;  %v696_v29 = vmax.f32 %v590_v22, 0.0 }
 0x157   :  { %v1172_v30 = vpack.c.bf16 %v643_v24, %v642_v18  ;;  %v645_v31 = vmax.f32 %v462_v25, 0.0  ;;  %v1198_v32 = vpack.c.bf16 %v695_v26, %v694_v21  ;;  %v697_v33 = vmax.f32 %v592_v27, 0.0 }
 0x159   :  { %1016 = vst [vmem:[%s1712_s3 + $0xa0] sm:$0xff] %v1172_v30  ;;  %v1173_v34 = vpack.c.bf16 %v645_v31, %v644_v28  ;;  %v465_v35 = vpop.f32.mrb[44].mxu0  ;;  %1042 = vst [vmem:[%s1712_s3 + $0x170] sm:$0xff] %v1198_v32  ;;  %v1199_v36 = vpack.c.bf16 %v697_v33, %v696_v29  ;;  %v595_v37 = vpop.f32.mrb[44].mxu1 }
 0x15a   :  { %v466_v40 = vadd.f32 %v465_v35, %v1460_v38  ;;  %v467_v41 = vpop.f32.mrb[45].mxu0  ;;  %v596_v42 = vadd.f32 %v595_v37, %v1460_v38  ;;  %v597_v43 = vpop.f32.mrb[45].mxu1 }
 0x15b   :  { %1017 = vst [vmem:[%s1712_s3 + $0xa8] sm:$0xff] %v1173_v34  ;;  %v468_v44 = vadd.f32 %v467_v41, %v1462_v39  ;;  %v469_v45 = vpop.f32.mrb[46].mxu0  ;;  %1043 = vst [vmem:[%s1712_s3 + $0x178] sm:$0xff] %v1199_v36  ;;  %v598_v46 = vadd.f32 %v597_v43, %v1462_v39  ;;  %v599_v47 = vpop.f32.mrb[46].mxu1 }
 0x15c   :  { %v646_v48 = vmax.f32 %v466_v40, 0.0  ;;  %v470_v49 = vadd.f32 %v469_v45, %v1460_v38  ;;  %v471_v50 = vpop.f32.mrb[47].mxu0  ;;  %v698_v51 = vmax.f32 %v596_v42, 0.0  ;;  %v600_v52 = vpop.f32.mrb[47].mxu1 }
 0x15d   :  { %v647_v53 = vmax.f32 %v468_v44, 0.0  ;;  %v472_v54 = vadd.f32 %v471_v50, %v1462_v39  ;;  %v699_v55 = vmax.f32 %v598_v46, 0.0 }
 0x15e   :  { %v648_v56 = vmax.f32 %v470_v49, 0.0 }
 0x15f   :  { %v1174_v57 = vpack.c.bf16 %v647_v53, %v646_v48  ;;  %v649_v58 = vmax.f32 %v472_v54, 0.0  ;;  %v1200_v59 = vpack.c.bf16 %v699_v55, %v698_v51 }
 0x161   :  { %1018 = vst [vmem:[%s1712_s3 + $0xb0] sm:$0xff] %v1174_v57  ;;  %v1175_v60 = vpack.c.bf16 %v649_v58, %v648_v56  ;;  %v475_v61 = vpop.f32.mrb[48].mxu0  ;;  %1044 = vst [vmem:[%s1712_s3 + $0x180] sm:$0xff] %v1200_v59 }
 0x162   :  { %v476_v62 = vadd.f32 %v475_v61, %v1460_v38  ;;  %v477_v63 = vpop.f32.mrb[49].mxu0 }
 0x163   :  { %1019 = vst [vmem:[%s1712_s3 + $0xb8] sm:$0xff] %v1175_v60  ;;  %v478_v0 = vadd.f32 %v477_v63, %v1462_v39  ;;  %v479_v1 = vpop.f32.mrb[50].mxu0 }
 0x164   :  { %v650_v2 = vmax.f32 %v476_v62, 0.0  ;;  %v480_v3 = vadd.f32 %v479_v1, %v1460_v38  ;;  %v481_v4 = vpop.f32.mrb[51].mxu0 }
 0x165   :  { %v651_v5 = vmax.f32 %v478_v0, 0.0  ;;  %v482_v6 = vadd.f32 %v481_v4, %v1462_v39 }
 0x166   :  { %v652_v7 = vmax.f32 %v480_v3, 0.0 }
 0x167   :  { %v1176_v8 = vpack.c.bf16 %v651_v5, %v650_v2  ;;  %v653_v9 = vmax.f32 %v482_v6, 0.0 }
 0x169   :  { %1020 = vst [vmem:[%s1712_s3 + $0xc0] sm:$0xff] %v1176_v8  ;;  %v1177_v10 = vpack.c.bf16 %v653_v9, %v652_v7 }
 0x16b   :  { %1021 = vst [vmem:[%s1712_s3 + $0xc8] sm:$0xff] %v1177_v10 }
 0x16c   :  { %1049 = vsyncpa [#allocation3], 1 }
 0x16d   :  { %1050 = vsyncpa [#allocation5], 1 }

// kernel: forward.6
= control target key start
LH: loop header
LB: loop body
LE: loop exit
PB: predicated region body
PF: predicated region fallthrough
CT: control target
= control target key end

     0   :  { %s10483_s1 = inlined_call_operand.vmem [shape: bf16[2304,256], index: 1, kind: input, shape index: {}]   ;;  %s10484_s0 = inlined_call_operand.vmem [shape: bf16[288,2304], index: 0, kind: input, shape index: {}]   ;;  %s10485_s2 = inlined_call_operand.vmem [shape: f32[1,256], index: 2, kind: input, shape index: {}]   ;;  %s10486_s3 = inlined_call_operand.vmem [shape: bf16[288,256], index: 3, kind: output, shape index: {}]  }
   0x1   :  { %v7307_v0 = vld [vmem:[%s10483_s1 + $0x4] ss:$8 sps:$4 sm:$0xff]   ;;  %v7311_v2 = vld [vmem:[%s10483_s1] ss:$8 sps:$4 sm:$0xff]   ;;  %v7313_v4 = vld [vmem:[%s10483_s1 + $0x14] ss:$8 sps:$4 sm:$0xff]  }
   0x2   :  { %v7309_v1 = vld [vmem:[%s10483_s1 + $0x404] ss:$8 sps:$4 sm:$0xff]   ;;  %3698 = vmatprep.subr.bf16.mxu1 %v7307_v0  ;;  %v7312_v3 = vld [vmem:[%s10483_s1 + $0x400] ss:$8 sps:$4 sm:$0xff]   ;;  %v7315_v5 = vld [vmem:[%s10483_s1 + $0x414] ss:$8 sps:$4 sm:$0xff]  }
   0x3   :  { %4550 = vmatprep.subr.bf16.mxu0 %v7309_v1  ;;  %3699 = vmatpush1.bf16.msra.mxu1 %v7311_v2  ;;  %v7317_v6 = vld [vmem:[%s10483_s1 + $0x10] ss:$8 sps:$4 sm:$0xff]   ;;  %v7319_v8 = vld [vmem:[%s10483_s1 + $0x24] ss:$8 sps:$4 sm:$0xff]   ;;  %v7323_v10 = vld [vmem:[%s10483_s1 + $0x20] ss:$8 sps:$4 sm:$0xff]  }
   0x4   :  { %4551 = vmatpush1.bf16.msra.mxu0 %v7312_v3  ;;  %3700 = vmatprep.subr.bf16.mxu1 %v7313_v4  ;;  %v7318_v7 = vld [vmem:[%s10483_s1 + $0x410] ss:$8 sps:$4 sm:$0xff]   ;;  %v7321_v9 = vld [vmem:[%s10483_s1 + $0x424] ss:$8 sps:$4 sm:$0xff]   ;;  %v7324_v11 = vld [vmem:[%s10483_s1 + $0x420] ss:$8 sps:$4 sm:$0xff]  }
   0x5   :  { %4552 = vmatprep.subr.bf16.mxu0 %v7315_v5  ;;  %v7325_v12 = vld [vmem:[%s10483_s1 + $0x34] ss:$8 sps:$4 sm:$0xff]   ;;  %v7329_v14 = vld [vmem:[%s10483_s1 + $0x30] ss:$8 sps:$4 sm:$0xff]   ;;  %v7331_v16 = vld [vmem:[%s10483_s1 + $0x44] ss:$8 sps:$4 sm:$0xff]  }
   0x6   :  { %v7327_v13 = vld [vmem:[%s10483_s1 + $0x434] ss:$8 sps:$4 sm:$0xff]   ;;  %v7330_v15 = vld [vmem:[%s10483_s1 + $0x430] ss:$8 sps:$4 sm:$0xff]   ;;  %v7333_v17 = vld [vmem:[%s10483_s1 + $0x444] ss:$8 sps:$4 sm:$0xff]  }
   0x7   :  { %3701 = vmatpush1.bf16.msra.mxu1 %v7317_v6  ;;  %v7335_v18 = vld [vmem:[%s10483_s1 + $0x40] ss:$8 sps:$4 sm:$0xff]   ;;  %v7337_v20 = vld [vmem:[%s10483_s1 + $0x54] ss:$8 sps:$4 sm:$0xff]   ;;  %v7341_v22 = vld [vmem:[%s10483_s1 + $0x50] ss:$8 sps:$4 sm:$0xff]  }
   0x8   :  { %4553 = vmatpush1.bf16.msra.mxu0 %v7318_v7  ;;  %3702 = vmatprep.subr.bf16.mxu1 %v7319_v8  ;;  %v7336_v19 = vld [vmem:[%s10483_s1 + $0x440] ss:$8 sps:$4 sm:$0xff]   ;;  %v7339_v21 = vld [vmem:[%s10483_s1 + $0x454] ss:$8 sps:$4 sm:$0xff]   ;;  %v7342_v23 = vld [vmem:[%s10483_s1 + $0x450] ss:$8 sps:$4 sm:$0xff]  }
   0x9   :  { %4554 = vmatprep.subr.bf16.mxu0 %v7321_v9  ;;  %v7343_v24 = vld [vmem:[%s10483_s1 + $0x64] ss:$8 sps:$4 sm:$0xff]   ;;  %v7347_v26 = vld [vmem:[%s10483_s1 + $0x60] ss:$8 sps:$4 sm:$0xff]   ;;  %v7349_v28 = vld [vmem:[%s10483_s1 + $0x74] ss:$8 sps:$4 sm:$0xff]  }
   0xa   :  { %v7345_v25 = vld [vmem:[%s10483_s1 + $0x464] ss:$8 sps:$4 sm:$0xff]   ;;  %v7348_v27 = vld [vmem:[%s10483_s1 + $0x460] ss:$8 sps:$4 sm:$0xff]   ;;  %v7351_v29 = vld [vmem:[%s10483_s1 + $0x474] ss:$8 sps:$4 sm:$0xff]  }
   0xb   :  { %3703 = vmatpush1.bf16.msra.mxu1 %v7323_v10  ;;  %v7353_v30 = vld [vmem:[%s10483_s1 + $0x70] ss:$8 sps:$4 sm:$0xff]   ;;  %v7355_v32 = vld [vmem:[%s10483_s1 + $0x84] ss:$8 sps:$4 sm:$0xff]   ;;  %v7359_v34 = vld [vmem:[%s10483_s1 + $0x80] ss:$8 sps:$4 sm:$0xff]  }
   0xc   :  { %4555 = vmatpush1.bf16.msra.mxu0 %v7324_v11  ;;  %3704 = vmatprep.subr.bf16.mxu1 %v7325_v12  ;;  %v7354_v31 = vld [vmem:[%s10483_s1 + $0x470] ss:$8 sps:$4 sm:$0xff]   ;;  %v7357_v33 = vld [vmem:[%s10483_s1 + $0x484] ss:$8 sps:$4 sm:$0xff]   ;;  %v7360_v35 = vld [vmem:[%s10483_s1 + $0x480] ss:$8 sps:$4 sm:$0xff]  }
   0xd   :  { %4556 = vmatprep.subr.bf16.mxu0 %v7327_v13  ;;  %v7361_v36 = vld [vmem:[%s10483_s1 + $0x94] ss:$8 sps:$4 sm:$0xff]   ;;  %v7365_v38 = vld [vmem:[%s10483_s1 + $0x90] ss:$8 sps:$4 sm:$0xff]   ;;  %v7367_v40 = vld [vmem:[%s10483_s1 + $0xa4] ss:$8 sps:$4 sm:$0xff]  }
   0xe   :  { %v7363_v37 = vld [vmem:[%s10483_s1 + $0x494] ss:$8 sps:$4 sm:$0xff]   ;;  %v7366_v39 = vld [vmem:[%s10483_s1 + $0x490] ss:$8 sps:$4 sm:$0xff]   ;;  %v7369_v41 = vld [vmem:[%s10483_s1 + $0x4a4] ss:$8 sps:$4 sm:$0xff]  }
   0xf   :  { %3705 = vmatpush1.bf16.msra.mxu1 %v7329_v14  ;;  %v7371_v42 = vld [vmem:[%s10483_s1 + $0xa0] ss:$8 sps:$4 sm:$0xff]   ;;  %v7373_v44 = vld [vmem:[%s10483_s1 + $0xb4] ss:$8 sps:$4 sm:$0xff]   ;;  %v7377_v46 = vld [vmem:[%s10483_s1 + $0xb0] ss:$8 sps:$4 sm:$0xff]  }
  0x10   :  { %4557 = vmatpush1.bf16.msra.mxu0 %v7330_v15  ;;  %3706 = vmatprep.subr.bf16.mxu1 %v7331_v16  ;;  %v7372_v43 = vld [vmem:[%s10483_s1 + $0x4a0] ss:$8 sps:$4 sm:$0xff]   ;;  %v7375_v45 = vld [vmem:[%s10483_s1 + $0x4b4] ss:$8 sps:$4 sm:$0xff]   ;;  %v7378_v47 = vld [vmem:[%s10483_s1 + $0x4b0] ss:$8 sps:$4 sm:$0xff]  }
  0x11   :  { %4558 = vmatprep.subr.bf16.mxu0 %v7333_v17  ;;  %v7379_v48 = vld [vmem:[%s10483_s1 + $0xc4] ss:$8 sps:$4 sm:$0xff]   ;;  %v7383_v52 = vld [vmem:[%s10483_s1 + $0xc0] ss:$8 sps:$4 sm:$0xff]   ;;  %v7385_v54 = vld [vmem:[%s10483_s1 + $0xd4] ss:$8 sps:$4 sm:$0xff]  }
  0x12   :  { %v7405_v49 = vld [vmem:[%s10484_s0 + $0x4] ss:$72 sps:$4 sm:$0xff]   ;;  %v7384_v53 = vld [vmem:[%s10483_s1 + $0x4c0] ss:$8 sps:$4 sm:$0xff]   ;;  %v7387_v55 = vld [vmem:[%s10483_s1 + $0x4d4] ss:$8 sps:$4 sm:$0xff]  }
  0x13   :  { %3707 = vmatpush1.bf16.msra.mxu1 %v7335_v18  ;;  %v7381_v50 = vld [vmem:[%s10483_s1 + $0x4c4] ss:$8 sps:$4 sm:$0xff]   ;;  %3730 = vmatprep.mubr.bf16.mxu1 %v7405_v49  ;;  %v7389_v56 = vld [vmem:[%s10483_s1 + $0xd0] ss:$8 sps:$4 sm:$0xff]   ;;  %v7395_v60 = vld [vmem:[%s10483_s1 + $0xe0] ss:$8 sps:$4 sm:$0xff]  }
  0x14   :  { %4559 = vmatpush1.bf16.msra.mxu0 %v7336_v19  ;;  %3708 = vmatprep.subr.bf16.mxu1 %v7337_v20  ;;  %v7408_v51 = vld [vmem:[%s10484_s0 + $0x24] ss:$72 sps:$4 sm:$0xff]   ;;  %v7390_v57 = vld [vmem:[%s10483_s1 + $0x4d0] ss:$8 sps:$4 sm:$0xff]   ;;  %v7396_v61 = vld [vmem:[%s10483_s1 + $0x4e0] ss:$8 sps:$4 sm:$0xff]  }
  0x15   :  { %4560 = vmatprep.subr.bf16.mxu0 %v7339_v21  ;;  %4582 = vmatprep.mubr.bf16.mxu0 %v7408_v51  ;;  %v7391_v58 = vld [vmem:[%s10483_s1 + $0xe4] ss:$8 sps:$4 sm:$0xff]   ;;  %v7397_v62 = vld [vmem:[%s10483_s1 + $0xf4] ss:$8 sps:$4 sm:$0xff]   ;;  %v7401_v0 = vld [vmem:[%s10483_s1 + $0xf0] ss:$8 sps:$4 sm:$0xff]  }
  0x16   :  { %v7393_v59 = vld [vmem:[%s10483_s1 + $0x4e4] ss:$8 sps:$4 sm:$0xff]   ;;  %v7399_v63 = vld [vmem:[%s10483_s1 + $0x4f4] ss:$8 sps:$4 sm:$0xff]   ;;  %v7402_v1 = vld [vmem:[%s10483_s1 + $0x4f0] ss:$8 sps:$4 sm:$0xff]  }
  0x17   :  { %3709 = vmatpush1.bf16.msra.mxu1 %v7341_v22  ;;  %v7411_v2 = vld [vmem:[%s10483_s1 + $0x104] ss:$8 sps:$4 sm:$0xff]   ;;  %v7403_v4 = vld [vmem:[%s10484_s0] ss:$72 sps:$4 sm:$0xff]   ;;  %v7415_v8 = vld [vmem:[%s10484_s0 + $0x94] ss:$72 sps:$4 sm:$0xff]  }
  0x18   :  { %4561 = vmatpush1.bf16.msra.mxu0 %v7342_v23  ;;  %3710 = vmatprep.subr.bf16.mxu1 %v7343_v24  ;;  %v7414_v3 = vld [vmem:[%s10483_s1 + $0x504] ss:$8 sps:$4 sm:$0xff]   ;;  %v7406_v5 = vld [vmem:[%s10484_s0 + $0x20] ss:$72 sps:$4 sm:$0xff]   ;;  %v7417_v9 = vld [vmem:[%s10484_s0 + $0xb4] ss:$72 sps:$4 sm:$0xff]  }
  0x19   :  { %4562 = vmatprep.subr.bf16.mxu0 %v7345_v25  ;;  %v7409_v6 = vld [vmem:[%s10483_s1 + $0x100] ss:$8 sps:$4 sm:$0xff]   ;;  %v7421_v10 = vld [vmem:[%s10483_s1 + $0x514] ss:$8 sps:$4 sm:$0xff]   ;;  %v7419_v12 = vld [vmem:[%s10483_s1 + $0x510] ss:$8 sps:$4 sm:$0xff]  }
  0x1a   :  { %v7412_v7 = vld [vmem:[%s10483_s1 + $0x500] ss:$8 sps:$4 sm:$0xff]   ;;  %v7426_v11 = vld [vmem:[%s10483_s1 + $0x114] ss:$8 sps:$4 sm:$0xff]   ;;  %v7424_v13 = vld [vmem:[%s10483_s1 + $0x110] ss:$8 sps:$4 sm:$0xff]  }
  0x1b   :  { %3711 = vmatpush1.bf16.msra.mxu1 %v7347_v26  ;;  %v7429_v14 = vld [vmem:[%s10483_s1 + $0x524] ss:$8 sps:$4 sm:$0xff]   ;;  %v7422_v16 = vld [vmem:[%s10484_s0 + $0x90] ss:$72 sps:$4 sm:$0xff]   ;;  %v7427_v18 = vld [vmem:[%s10483_s1 + $0x520] ss:$8 sps:$4 sm:$0xff]  }
  0x1c   :  { %4563 = vmatpush1.bf16.msra.mxu0 %v7348_v27  ;;  %3712 = vmatprep.subr.bf16.mxu1 %v7349_v28  ;;  %v7441_v15 = vld [vmem:[%s10483_s1 + $0x124] ss:$8 sps:$4 sm:$0xff]   ;;  %v7423_v17 = vld [vmem:[%s10484_s0 + $0xb0] ss:$72 sps:$4 sm:$0xff]   ;;  %v7438_v21 = vld [vmem:[%s10483_s1 + $0x534] ss:$8 sps:$4 sm:$0xff]  }
  0x1d   :  { %4564 = vmatprep.subr.bf16.mxu0 %v7351_v29  ;;  %v7430_v19 = vld [vmem:[%s10484_s0 + $0x124] ss:$72 sps:$4 sm:$0xff]   ;;  %v7439_v22 = vld [vmem:[%s10483_s1 + $0x120] ss:$8 sps:$4 sm:$0xff]   ;;  %v7456_v23 = vld [vmem:[%s10483_s1 + $0x134] ss:$8 sps:$4 sm:$0xff]  }
  0x1e   :  { %v7432_v20 = vld [vmem:[%s10484_s0 + $0x144] ss:$72 sps:$4 sm:$0xff]   ;;  %v7436_v24 = vld [vmem:[%s10483_s1 + $0x530] ss:$8 sps:$4 sm:$0xff]   ;;  %v7434_v25 = vld [vmem:[%s10484_s0 + $0x120] ss:$72 sps:$4 sm:$0xff]  }
  0x1f   :  { %3713 = vmatpush1.bf16.msra.mxu1 %v7353_v30  ;;  %v7444_v26 = vld [vmem:[%s10483_s1 + $0x544] ss:$8 sps:$4 sm:$0xff]   ;;  %v7435_v27 = vld [vmem:[%s10484_s0 + $0x140] ss:$72 sps:$4 sm:$0xff]   ;;  %v7454_v28 = vld [vmem:[%s10483_s1 + $0x130] ss:$8 sps:$4 sm:$0xff]  }
  0x20   :  { %4565 = vmatpush1.bf16.msra.mxu0 %v7354_v31  ;;  %3714 = vmatprep.subr.bf16.mxu1 %v7355_v32  ;;  %v7442_v29 = vld [vmem:[%s10483_s1 + $0x540] ss:$8 sps:$4 sm:$0xff]   ;;  %v7445_v30 = vld [vmem:[%s10484_s0 + $0x1b4] ss:$72 sps:$4 sm:$0xff]  }
  0x21   :  { %4566 = vmatprep.subr.bf16.mxu0 %v7357_v33  ;;  %v7447_v31 = vld [vmem:[%s10484_s0 + $0x1d4] ss:$72 sps:$4 sm:$0xff]   ;;  %v7471_v33 = vld [vmem:[%s10483_s1 + $0x144] ss:$8 sps:$4 sm:$0xff]   ;;  %v7499_v49 = vld [vmem:[%s10483_s1 + $0x160] ss:$8 sps:$4 sm:$0xff]  }
  0x22   :  { %v7453_v32 = vld [vmem:[%s10483_s1 + $0x554] ss:$8 sps:$4 sm:$0xff]   ;;  %v7472_v51 = vld [vmem:[%s10483_s1 + $0x580] ss:$8 sps:$4 sm:$0xff]  }
  0x23   :  { %3715 = vmatpush1.bf16.msra.mxu1 %v7359_v34  ;;  %v7451_v34 = vld [vmem:[%s10483_s1 + $0x550] ss:$8 sps:$4 sm:$0xff]  }
  0x24   :  { %4567 = vmatpush1.bf16.msra.mxu0 %v7360_v35  ;;  %3716 = vmatprep.subr.bf16.mxu1 %v7361_v36  ;;  %v7469_v35 = vld [vmem:[%s10483_s1 + $0x140] ss:$8 sps:$4 sm:$0xff]   ;;  %v7486_v36 = vld [vmem:[%s10483_s1 + $0x154] ss:$8 sps:$4 sm:$0xff]  }
  0x25   :  { %4568 = vmatprep.subr.bf16.mxu0 %v7363_v37  ;;  %v7459_v37 = vld [vmem:[%s10483_s1 + $0x564] ss:$8 sps:$4 sm:$0xff]  }
  0x27   :  { %3717 = vmatpush1.bf16.msra.mxu1 %v7365_v38  ;;  %v7449_v38 = vld [vmem:[%s10484_s0 + $0x1b0] ss:$72 sps:$4 sm:$0xff]  }
  0x28   :  { %4569 = vmatpush1.bf16.msra.mxu0 %v7366_v39  ;;  %3718 = vmatprep.subr.bf16.mxu1 %v7367_v40  ;;  %v7450_v39 = vld [vmem:[%s10484_s0 + $0x1d0] ss:$72 sps:$4 sm:$0xff]   ;;  %v7457_v40 = vld [vmem:[%s10483_s1 + $0x560] ss:$8 sps:$4 sm:$0xff]  }
  0x29   :  { %4570 = vmatprep.subr.bf16.mxu0 %v7369_v41  ;;  %v7460_v41 = vld [vmem:[%s10484_s0 + $0x244] ss:$72 sps:$4 sm:$0xff]  }
  0x2b   :  { %3719 = vmatpush1.bf16.msra.mxu1 %v7371_v42  ;;  %v7462_v42 = vld [vmem:[%s10484_s0 + $0x264] ss:$72 sps:$4 sm:$0xff]  }
  0x2c   :  { %4571 = vmatpush1.bf16.msra.mxu0 %v7372_v43  ;;  %3720 = vmatprep.subr.bf16.mxu1 %v7373_v44  ;;  %v7468_v43 = vld [vmem:[%s10483_s1 + $0x574] ss:$8 sps:$4 sm:$0xff]   ;;  %v7484_v44 = vld [vmem:[%s10483_s1 + $0x150] ss:$8 sps:$4 sm:$0xff]  }
  0x2d   :  { %4572 = vmatprep.subr.bf16.mxu0 %v7375_v45  ;;  %v7501_v45 = vld [vmem:[%s10483_s1 + $0x164] ss:$8 sps:$4 sm:$0xff]  }
  0x2f   :  { %3721 = vmatpush1.bf16.msra.mxu1 %v7377_v46  ;;  %v7466_v46 = vld [vmem:[%s10483_s1 + $0x570] ss:$8 sps:$4 sm:$0xff]  }
  0x30   :  { %4573 = vmatpush1.bf16.msra.mxu0 %v7378_v47  ;;  %3722 = vmatprep.subr.bf16.mxu1 %v7379_v48  ;;  %v7464_v47 = vld [vmem:[%s10484_s0 + $0x240] ss:$72 sps:$4 sm:$0xff]   ;;  %v7474_v48 = vld [vmem:[%s10483_s1 + $0x584] ss:$8 sps:$4 sm:$0xff]  }
  0x31   :  { %4574 = vmatprep.subr.bf16.mxu0 %v7381_v50  ;;  %v7465_v50 = vld [vmem:[%s10484_s0 + $0x260] ss:$72 sps:$4 sm:$0xff]  }
  0x33   :  { %3723 = vmatpush1.bf16.msra.mxu1 %v7383_v52  ;;  %v7475_v52 = vld [vmem:[%s10484_s0 + $0x2d4] ss:$72 sps:$4 sm:$0xff]  }
  0x34   :  { %4575 = vmatpush1.bf16.msra.mxu0 %v7384_v53  ;;  %3724 = vmatprep.subr.bf16.mxu1 %v7385_v54  ;;  %v7477_v53 = vld [vmem:[%s10484_s0 + $0x2f4] ss:$72 sps:$4 sm:$0xff]  }
  0x35   :  { %4576 = vmatprep.subr.bf16.mxu0 %v7387_v55  ;;  %v7518_v54 = vld [vmem:[%s10483_s1 + $0x174] ss:$8 sps:$4 sm:$0xff]  }
  0x36   :  { %v7483_v55 = vld [vmem:[%s10483_s1 + $0x594] ss:$8 sps:$4 sm:$0xff]  }
  0x37   :  { %3725 = vmatpush1.bf16.msra.mxu1 %v7389_v56  ;;  %v7516_v56 = vld [vmem:[%s10483_s1 + $0x170] ss:$8 sps:$4 sm:$0xff]  }
  0x38   :  { %4577 = vmatpush1.bf16.msra.mxu0 %v7390_v57  ;;  %3726 = vmatprep.subr.bf16.mxu1 %v7391_v58  ;;  %v7481_v57 = vld [vmem:[%s10483_s1 + $0x590] ss:$8 sps:$4 sm:$0xff]  }
  0x39   :  { %4578 = vmatprep.subr.bf16.mxu0 %v7393_v59  ;;  %v7479_v58 = vld [vmem:[%s10484_s0 + $0x2d0] ss:$72 sps:$4 sm:$0xff]   ;;  %v7493_v59 = vld [vmem:[%s10483_s1 + $0x5a4] ss:$8 sps:$4 sm:$0xff]  }
  0x3b   :  { %3727 = vmatpush1.bf16.msra.mxu1 %v7395_v60  ;;  %v7535_v60 = vld [vmem:[%s10483_s1 + $0x180] ss:$8 sps:$4 sm:$0xff]  }
  0x3c   :  { %4579 = vmatpush1.bf16.msra.mxu0 %v7396_v61  ;;  %3728 = vmatprep.subr.bf16.mxu1 %v7397_v62  ;;  %v7537_v61 = vld [vmem:[%s10483_s1 + $0x184] ss:$8 sps:$4 sm:$0xff]   ;;  %v7480_v62 = vld [vmem:[%s10484_s0 + $0x2f0] ss:$72 sps:$4 sm:$0xff]  }
  0x3d   :  { %4580 = vmatprep.subr.bf16.mxu0 %v7399_v63  ;;  %v7487_v63 = vld [vmem:[%s10484_s0 + $0x364] ss:$72 sps:$4 sm:$0xff]  }
  0x3f   :  { %3729 = vmatpush1.bf16.msra.mxu1 %v7401_v0  ;;  %v7489_v0 = vld [vmem:[%s10484_s0 + $0x384] ss:$72 sps:$4 sm:$0xff]  }
  0x40   :  { %4581 = vmatpush1.bf16.msra.mxu0 %v7402_v1  ;;  %3911 = vmatprep.subr.bf16.mxu1 %v7411_v2  ;;  %v7491_v1 = vld [vmem:[%s10483_s1 + $0x5a0] ss:$8 sps:$4 sm:$0xff]   ;;  %v7498_v2 = vld [vmem:[%s10483_s1 + $0x5b4] ss:$8 sps:$4 sm:$0xff]  }
  0x41   :  { %4763 = vmatprep.subr.bf16.mxu0 %v7414_v3  ;;  %v7547_v3 = vld [vmem:[%s10483_s1 + $0x190] ss:$8 sps:$4 sm:$0xff]  }
  0x42   :  { %3731 = vmatmul.mubr.bf16.vlgmr.msra.gmra.mrb[0].mxu1 %v7403_v4  ;;  %v7549_v4 = vld [vmem:[%s10483_s1 + $0x194] ss:$8 sps:$4 sm:$0xff]  }
  0x43   :  { %4583 = vmatmul.mubr.bf16.vlgmr.msra.gmra.mrb[0].mxu0 %v7406_v5  ;;  %3912 = vmatpush1.bf16.msra.mxu1 %v7409_v6  ;;  %v7494_v5 = vld [vmem:[%s10484_s0 + $0x360] ss:$72 sps:$4 sm:$0xff]   ;;  %v7496_v6 = vld [vmem:[%s10483_s1 + $0x5b0] ss:$8 sps:$4 sm:$0xff]  }
  0x44   :  { %4764 = vmatpush1.bf16.msra.mxu0 %v7412_v7  ;;  %3740 = vmatprep.mubr.bf16.mxu1 %v7415_v8  ;;  %v7510_v7 = vld [vmem:[%s10483_s1 + $0x5c4] ss:$8 sps:$4 sm:$0xff]   ;;  %v7495_v8 = vld [vmem:[%s10484_s0 + $0x380] ss:$72 sps:$4 sm:$0xff]  }
  0x45   :  { %4592 = vmatprep.mubr.bf16.mxu0 %v7417_v9  ;;  %4765 = vmatprep.subr.bf16.mxu0 %v7421_v10  ;;  %v7502_v9 = vld [vmem:[%s10484_s0 + $0x3f4] ss:$72 sps:$4 sm:$0xff]  }
  0x46   :  { %3913 = vmatprep.subr.bf16.mxu1 %v7426_v11  ;;  %v7504_v10 = vld [vmem:[%s10484_s0 + $0x414] ss:$72 sps:$4 sm:$0xff]   ;;  %v7508_v11 = vld [vmem:[%s10483_s1 + $0x5c0] ss:$8 sps:$4 sm:$0xff]  }
  0x47   :  { %3914 = vmatpush1.bf16.msra.mxu1 %v7424_v13  ;;  %v7513_v13 = vld [vmem:[%s10483_s1 + $0x5d4] ss:$8 sps:$4 sm:$0xff]  }
  0x48   :  { %4766 = vmatpush1.bf16.msra.mxu0 %v7419_v12  ;;  %3915 = vmatprep.subr.bf16.mxu1 %v7441_v15  ;;  %v7561_v12 = vld [vmem:[%s10483_s1 + $0x1a4] ss:$8 sps:$4 sm:$0xff]   ;;  %v7511_v15 = vld [vmem:[%s10483_s1 + $0x5d0] ss:$8 sps:$4 sm:$0xff]  }
  0x49   :  { %4767 = vmatprep.subr.bf16.mxu0 %v7429_v14  ;;  %v7559_v14 = vld [vmem:[%s10483_s1 + $0x1a0] ss:$8 sps:$4 sm:$0xff]  }
  0x4a   :  { %3741 = vmatmul.mubr.bf16.gmra.mrb[4].mxu1 %v7422_v16  ;;  %v7506_v16 = vld [vmem:[%s10484_s0 + $0x3f0] ss:$72 sps:$4 sm:$0xff]  }
  0x4b   :  { %4593 = vmatmul.mubr.bf16.gmra.mrb[4].mxu0 %v7423_v17  ;;  %3750 = vmatprep.mubr.bf16.mxu1 %v7430_v19  ;;  %v7525_v17 = vld [vmem:[%s10483_s1 + $0x5e4] ss:$8 sps:$4 sm:$0xff]   ;;  %v7573_v19 = vld [vmem:[%s10483_s1 + $0x1b4] ss:$8 sps:$4 sm:$0xff]  }
  0x4c   :  { %4768 = vmatpush1.bf16.msra.mxu0 %v7427_v18  ;;  %4602 = vmatprep.mubr.bf16.mxu0 %v7432_v20  ;;  %v7571_v18 = vld [vmem:[%s10483_s1 + $0x1b0] ss:$8 sps:$4 sm:$0xff]  }
  0x4d   :  { %4769 = vmatprep.subr.bf16.mxu0 %v7438_v21  ;;  %3916 = vmatpush1.bf16.msra.mxu1 %v7439_v22  ;;  %v7507_v20 = vld [vmem:[%s10484_s0 + $0x410] ss:$72 sps:$4 sm:$0xff]   ;;  %v7514_v21 = vld [vmem:[%s10484_s0 + $0x484] ss:$72 sps:$4 sm:$0xff]  }
  0x4e   :  { %3917 = vmatprep.subr.bf16.mxu1 %v7456_v23  ;;  %v7519_v22 = vld [vmem:[%s10484_s0 + $0x4a4] ss:$72 sps:$4 sm:$0xff]   ;;  %v7523_v23 = vld [vmem:[%s10483_s1 + $0x5e0] ss:$8 sps:$4 sm:$0xff]  }
  0x50   :  { %4770 = vmatpush1.bf16.msra.mxu0 %v7436_v24  ;;  %v7528_v24 = vld [vmem:[%s10483_s1 + $0x5f4] ss:$8 sps:$4 sm:$0xff]  }
  0x51   :  { %4771 = vmatprep.subr.bf16.mxu0 %v7444_v26  ;;  %3918 = vmatpush1.bf16.msra.mxu1 %v7454_v28  ;;  %v7585_v26 = vld [vmem:[%s10483_s1 + $0x1c4] ss:$8 sps:$4 sm:$0xff]  }
  0x52   :  { %3751 = vmatmul.mubr.bf16.gmra.mrb[8].mxu1 %v7434_v25  ;;  %3919 = vmatprep.subr.bf16.mxu1 %v7471_v33  ;;  %v7583_v25 = vld [vmem:[%s10483_s1 + $0x1c0] ss:$8 sps:$4 sm:$0xff]   ;;  %v7540_v28 = vld [vmem:[%s10483_s1 + $0x604] ss:$8 sps:$4 sm:$0xff]   ;;  %v7597_v33 = vld [vmem:[%s10483_s1 + $0x1d4] ss:$8 sps:$4 sm:$0xff]  }
  0x53   :  { %4603 = vmatmul.mubr.bf16.gmra.mrb[8].mxu0 %v7435_v27  ;;  %3760 = vmatprep.mubr.bf16.mxu1 %v7445_v30  ;;  %v7526_v27 = vld [vmem:[%s10483_s1 + $0x5f0] ss:$8 sps:$4 sm:$0xff]   ;;  %v7522_v30 = vld [vmem:[%s10484_s0 + $0x4a0] ss:$72 sps:$4 sm:$0xff]  }
  0x54   :  { %4772 = vmatpush1.bf16.msra.mxu0 %v7442_v29  ;;  %4612 = vmatprep.mubr.bf16.mxu0 %v7447_v31  ;;  %v7521_v29 = vld [vmem:[%s10484_s0 + $0x480] ss:$72 sps:$4 sm:$0xff]   ;;  %v7529_v31 = vld [vmem:[%s10484_s0 + $0x514] ss:$72 sps:$4 sm:$0xff]  }
  0x55   :  { %4773 = vmatprep.subr.bf16.mxu0 %v7453_v32  ;;  %3920 = vmatpush1.bf16.msra.mxu1 %v7469_v35  ;;  %v7533_v32 = vld [vmem:[%s10484_s0 + $0x2c] ss:$72 sps:$4 sm:$0xff]   ;;  %v7531_v35 = vld [vmem:[%s10484_s0 + $0x28] ss:$72 sps:$4 sm:$0xff]  }
  0x56   :  { %3921 = vmatprep.subr.bf16.mxu1 %v7486_v36  ;;  %v7534_v36 = vld [vmem:[%s10484_s0 + $0x510] ss:$72 sps:$4 sm:$0xff]  }
  0x58   :  { %4774 = vmatpush1.bf16.msra.mxu0 %v7451_v34  ;;  %v7595_v34 = vld [vmem:[%s10483_s1 + $0x1d0] ss:$8 sps:$4 sm:$0xff]  }
  0x59   :  { %4775 = vmatprep.subr.bf16.mxu0 %v7459_v37  ;;  %3922 = vmatpush1.bf16.msra.mxu1 %v7484_v44  ;;  %v7607_v37 = vld [vmem:[%s10483_s1 + $0x1e0] ss:$8 sps:$4 sm:$0xff]   ;;  %v7621_v44 = vld [vmem:[%s10483_s1 + $0x1f0] ss:$8 sps:$4 sm:$0xff]  }
  0x5a   :  { %3761 = vmatmul.mubr.bf16.gmra.mrb[12].mxu1 %v7449_v38  ;;  %3923 = vmatprep.subr.bf16.mxu1 %v7501_v45  ;;  %v7609_v38 = vld [vmem:[%s10483_s1 + $0x1e4] ss:$8 sps:$4 sm:$0xff]   ;;  %v7623_v45 = vld [vmem:[%s10483_s1 + $0x1f4] ss:$8 sps:$4 sm:$0xff]  }
  0x5b   :  { %4613 = vmatmul.mubr.bf16.gmra.mrb[12].mxu0 %v7450_v39  ;;  %3770 = vmatprep.mubr.bf16.mxu1 %v7460_v41  ;;  %v7538_v39 = vld [vmem:[%s10483_s1 + $0x600] ss:$8 sps:$4 sm:$0xff]   ;;  %v7543_v41 = vld [vmem:[%s10484_s0 + $0xbc] ss:$72 sps:$4 sm:$0xff]  }
  0x5c   :  { %4776 = vmatpush1.bf16.msra.mxu0 %v7457_v40  ;;  %4622 = vmatprep.mubr.bf16.mxu0 %v7462_v42  ;;  %v7541_v40 = vld [vmem:[%s10484_s0 + $0x5a4] ss:$72 sps:$4 sm:$0xff]   ;;  %v7552_v42 = vld [vmem:[%s10483_s1 + $0x614] ss:$8 sps:$4 sm:$0xff]  }
  0x5d   :  { %4777 = vmatprep.subr.bf16.mxu0 %v7468_v43  ;;  %3924 = vmatpush1.bf16.msra.mxu1 %v7499_v49  ;;  %v7550_v43 = vld [vmem:[%s10483_s1 + $0x610] ss:$8 sps:$4 sm:$0xff]   ;;  %v7553_v49 = vld [vmem:[%s10484_s0 + $0x634] ss:$72 sps:$4 sm:$0xff]  }
  0x5e   :  { %3925 = vmatprep.subr.bf16.mxu1 %v7518_v54  ;;  %v7574_v54 = vld [vmem:[%s10483_s1 + $0x630] ss:$8 sps:$4 sm:$0xff]  }
  0x60   :  { %4778 = vmatpush1.bf16.msra.mxu0 %v7466_v46  ;;  %v7564_v46 = vld [vmem:[%s10483_s1 + $0x624] ss:$8 sps:$4 sm:$0xff]  }
  0x61   :  { %4779 = vmatprep.subr.bf16.mxu0 %v7474_v48  ;;  %3926 = vmatpush1.bf16.msra.mxu1 %v7516_v56  ;;  %v7546_v48 = vld [vmem:[%s10484_s0 + $0xb8] ss:$72 sps:$4 sm:$0xff]  }
  0x62   :  { %3771 = vmatmul.mubr.bf16.gmra.mrb[16].mxu1 %v7464_v47  ;;  %3927 = vmatprep.subr.bf16.mxu1 %v7537_v61  ;;  %v7545_v47 = vld [vmem:[%s10484_s0 + $0x5a0] ss:$72 sps:$4 sm:$0xff]   ;;  %v7557_v56 = vld [vmem:[%s10484_s0 + $0x630] ss:$72 sps:$4 sm:$0xff]   ;;  %v7604_v61 = vld [vmem:[%s10483_s1 + $0x654] ss:$8 sps:$4 sm:$0xff]  }
  0x63   :  { %4623 = vmatmul.mubr.bf16.gmra.mrb[16].mxu0 %v7465_v50  ;;  %3780 = vmatprep.mubr.bf16.mxu1 %v7475_v52  ;;  %v7555_v50 = vld [vmem:[%s10484_s0 + $0x14c] ss:$72 sps:$4 sm:$0xff]  }
  0x64   :  { %4632 = vmatprep.mubr.bf16.mxu0 %v7477_v53  ;;  %4780 = vmatpush1.bf16.msra.mxu0 %v7472_v51  ;;  %v7562_v51 = vld [vmem:[%s10483_s1 + $0x620] ss:$8 sps:$4 sm:$0xff]   ;;  %v7576_v52 = vld [vmem:[%s10483_s1 + $0x634] ss:$8 sps:$4 sm:$0xff]   ;;  %v7638_v53 = vld [vmem:[%s10483_s1 + $0x204] ss:$8 sps:$4 sm:$0xff]  }
  0x65   :  { %4781 = vmatprep.subr.bf16.mxu0 %v7483_v55  ;;  %3928 = vmatpush1.bf16.msra.mxu1 %v7535_v60  ;;  %v7588_v55 = vld [vmem:[%s10483_s1 + $0x644] ss:$8 sps:$4 sm:$0xff]   ;;  %v7586_v60 = vld [vmem:[%s10483_s1 + $0x640] ss:$8 sps:$4 sm:$0xff]  }
  0x66   :  { %3929 = vmatprep.subr.bf16.mxu1 %v7549_v4  ;;  %v7616_v4 = vld [vmem:[%s10483_s1 + $0x660] ss:$8 sps:$4 sm:$0xff]  }
  0x68   :  { %4782 = vmatpush1.bf16.msra.mxu0 %v7481_v57  ;;  %v7558_v57 = vld [vmem:[%s10484_s0 + $0x148] ss:$72 sps:$4 sm:$0xff]  }
  0x69   :  { %4783 = vmatprep.subr.bf16.mxu0 %v7493_v59  ;;  %3930 = vmatpush1.bf16.msra.mxu1 %v7547_v3  ;;  %v7567_v59 = vld [vmem:[%s10484_s0 + $0x1dc] ss:$72 sps:$4 sm:$0xff]   ;;  %v7579_v3 = vld [vmem:[%s10484_s0 + $0x26c] ss:$72 sps:$4 sm:$0xff]  }
  0x6a   :  { %3781 = vmatmul.mubr.bf16.gmra.mrb[20].mxu1 %v7479_v58  ;;  %3931 = vmatprep.subr.bf16.mxu1 %v7561_v12  ;;  %v7565_v58 = vld [vmem:[%s10484_s0 + $0x6c4] ss:$72 sps:$4 sm:$0xff]   ;;  %v7640_v12 = vld [vmem:[%s10483_s1 + $0x680] ss:$8 sps:$4 sm:$0xff]  }
  0x6b   :  { %4633 = vmatmul.mubr.bf16.gmra.mrb[20].mxu0 %v7480_v62  ;;  %3790 = vmatprep.mubr.bf16.mxu1 %v7487_v63  ;;  %v7602_v62 = vld [vmem:[%s10483_s1 + $0x650] ss:$8 sps:$4 sm:$0xff]   ;;  %v7569_v63 = vld [vmem:[%s10484_s0 + $0x6c0] ss:$72 sps:$4 sm:$0xff]  }
  0x6c   :  { %4642 = vmatprep.mubr.bf16.mxu0 %v7489_v0  ;;  %4784 = vmatpush1.bf16.msra.mxu0 %v7491_v1  ;;  %v7618_v0 = vld [vmem:[%s10483_s1 + $0x664] ss:$8 sps:$4 sm:$0xff]   ;;  %v7570_v1 = vld [vmem:[%s10484_s0 + $0x1d8] ss:$72 sps:$4 sm:$0xff]  }
  0x6d   :  { %4785 = vmatprep.subr.bf16.mxu0 %v7498_v2  ;;  %3932 = vmatpush1.bf16.msra.mxu1 %v7559_v14  ;;  %v7577_v2 = vld [vmem:[%s10484_s0 + $0x754] ss:$72 sps:$4 sm:$0xff]   ;;  %v7593_v14 = vld [vmem:[%s10484_s0 + $0x7e0] ss:$72 sps:$4 sm:$0xff]  }
  0x6e   :  { %3933 = vmatprep.subr.bf16.mxu1 %v7573_v19  ;;  %v7600_v19 = vld [vmem:[%s10484_s0 + $0x38c] ss:$72 sps:$4 sm:$0xff]  }
  0x70   :  { %4786 = vmatpush1.bf16.msra.mxu0 %v7496_v6  ;;  %v7628_v6 = vld [vmem:[%s10483_s1 + $0x670] ss:$8 sps:$4 sm:$0xff]  }
  0x71   :  { %4787 = vmatprep.subr.bf16.mxu0 %v7510_v7  ;;  %3934 = vmatpush1.bf16.msra.mxu1 %v7571_v18  ;;  %v7642_v7 = vld [vmem:[%s10483_s1 + $0x684] ss:$8 sps:$4 sm:$0xff]   ;;  %v7598_v18 = vld [vmem:[%s10484_s0 + $0x874] ss:$72 sps:$4 sm:$0xff]  }
  0x72   :  { %3791 = vmatmul.mubr.bf16.gmra.mrb[24].mxu1 %v7494_v5  ;;  %3935 = vmatprep.subr.bf16.mxu1 %v7585_v26  ;;  %v7630_v5 = vld [vmem:[%s10483_s1 + $0x674] ss:$8 sps:$4 sm:$0xff]   ;;  %v7610_v26 = vld [vmem:[%s10484_s0 + $0x904] ss:$72 sps:$4 sm:$0xff]  }
  0x73   :  { %4643 = vmatmul.mubr.bf16.gmra.mrb[24].mxu0 %v7495_v8  ;;  %3800 = vmatprep.mubr.bf16.mxu1 %v7502_v9  ;;  %v7581_v8 = vld [vmem:[%s10484_s0 + $0x750] ss:$72 sps:$4 sm:$0xff]  }
  0x74   :  { %4652 = vmatprep.mubr.bf16.mxu0 %v7504_v10  ;;  %4788 = vmatpush1.bf16.msra.mxu0 %v7508_v11  ;;  %v7582_v9 = vld [vmem:[%s10484_s0 + $0x268] ss:$72 sps:$4 sm:$0xff]   ;;  %v7589_v10 = vld [vmem:[%s10484_s0 + $0x7e4] ss:$72 sps:$4 sm:$0xff]  }
  0x75   :  { %4789 = vmatprep.subr.bf16.mxu0 %v7513_v13  ;;  %3936 = vmatpush1.bf16.msra.mxu1 %v7583_v25  ;;  %v7591_v11 = vld [vmem:[%s10484_s0 + $0x2fc] ss:$72 sps:$4 sm:$0xff]   ;;  %v7606_v25 = vld [vmem:[%s10484_s0 + $0x388] ss:$72 sps:$4 sm:$0xff]  }
  0x76   :  { %3937 = vmatprep.subr.bf16.mxu1 %v7597_v33  ;;  %v7654_v13 = vld [vmem:[%s10483_s1 + $0x694] ss:$8 sps:$4 sm:$0xff]   ;;  %v7615_v33 = vld [vmem:[%s10484_s0 + $0x418] ss:$72 sps:$4 sm:$0xff]  }
  0x78   :  { %4790 = vmatpush1.bf16.msra.mxu0 %v7511_v15  ;;  %v7652_v15 = vld [vmem:[%s10483_s1 + $0x690] ss:$8 sps:$4 sm:$0xff]  }
  0x79   :  { %4791 = vmatprep.subr.bf16.mxu0 %v7525_v17  ;;  %3938 = vmatpush1.bf16.msra.mxu1 %v7595_v34  ;;  %v7666_v17 = vld [vmem:[%s10483_s1 + $0x6a4] ss:$8 sps:$4 sm:$0xff]   ;;  %v7619_v34 = vld [vmem:[%s10484_s0 + $0x994] ss:$72 sps:$4 sm:$0xff]  }
  0x7a   :  { %3801 = vmatmul.mubr.bf16.gmra.mrb[28].mxu1 %v7506_v16  ;;  %3939 = vmatprep.subr.bf16.mxu1 %v7609_v38  ;;  %v7594_v16 = vld [vmem:[%s10484_s0 + $0x2f8] ss:$72 sps:$4 sm:$0xff]  }
  0x7b   :  { %4653 = vmatmul.mubr.bf16.gmra.mrb[28].mxu0 %v7507_v20  ;;  %3810 = vmatprep.mubr.bf16.mxu1 %v7514_v21  ;;  %v7664_v20 = vld [vmem:[%s10483_s1 + $0x6a0] ss:$8 sps:$4 sm:$0xff]   ;;  %v7678_v21 = vld [vmem:[%s10483_s1 + $0x6b4] ss:$8 sps:$4 sm:$0xff]   ;;  %v7730_v38 = vld [vmem:[%s10483_s1 + $0x6f0] ss:$8 sps:$4 sm:$0xff]  }
  0x7c   :  { %4662 = vmatprep.mubr.bf16.mxu0 %v7519_v22  ;;  %4792 = vmatpush1.bf16.msra.mxu0 %v7523_v23  ;;  %v7676_v22 = vld [vmem:[%s10483_s1 + $0x6b0] ss:$8 sps:$4 sm:$0xff]  }
  0x7d   :  { %4793 = vmatprep.subr.bf16.mxu0 %v7528_v24  ;;  %3940 = vmatpush1.bf16.msra.mxu1 %v7607_v37  ;;  %v7605_v23 = vld [vmem:[%s10484_s0 + $0x870] ss:$72 sps:$4 sm:$0xff]   ;;  %v7690_v24 = vld [vmem:[%s10483_s1 + $0x6c4] ss:$8 sps:$4 sm:$0xff]   ;;  %v7732_v37 = vld [vmem:[%s10483_s1 + $0x6f4] ss:$8 sps:$4 sm:$0xff]  }
  0x7e   :  { %3941 = vmatprep.subr.bf16.mxu1 %v7623_v45  ;;  %v7636_v45 = vld [vmem:[%s10483_s1 + $0x200] ss:$8 sps:$4 sm:$0xff]  }
  0x80   :  { %4794 = vmatpush1.bf16.msra.mxu0 %v7526_v27  ;;  %v7612_v27 = vld [vmem:[%s10484_s0 + $0x41c] ss:$72 sps:$4 sm:$0xff]  }
  0x81   :  { %4976 = vmatprep.subr.bf16.mxu0 %v7540_v28  ;;  %3942 = vmatpush1.bf16.msra.mxu1 %v7621_v44  ;;  %v7688_v28 = vld [vmem:[%s10483_s1 + $0x6c0] ss:$8 sps:$4 sm:$0xff]  }
  0x82   :  { %3811 = vmatmul.mubr.bf16.gmra.mrb[32].mxu1 %v7521_v29  ;;  %4124 = vmatprep.subr.bf16.mxu1 %v7638_v53  ;;  %v7706_v29 = vld [vmem:[%s10483_s1 + $0x6d4] ss:$8 sps:$4 sm:$0xff]   ;;  %v7631_v44 = vld [vmem:[%s10484_s0 + $0x8] ss:$72 sps:$4 sm:$0xff]  }
  0x83   :  { %4663 = vmatmul.mubr.bf16.gmra.mrb[32].mxu0 %v7522_v30  ;;  %3820 = vmatprep.mubr.bf16.mxu1 %v7529_v31  ;;  %v7704_v30 = vld [vmem:[%s10483_s1 + $0x6d0] ss:$8 sps:$4 sm:$0xff]   ;;  %v7720_v31 = vld [vmem:[%s10483_s1 + $0x6e4] ss:$8 sps:$4 sm:$0xff]  }
  0x84   :  { %4795 = vmatprep.mubr.bf16.mxu0 %v7533_v32  ;;  %v7614_v32 = vld [vmem:[%s10484_s0 + $0x900] ss:$72 sps:$4 sm:$0xff]  }
  0x85   :  { %v7648_v53 = vld [vmem:[%s10484_s0 + $0x5c8] ss:$72 sps:$4 sm:$0xff]  }
  0x8a   :  { %3821 = vmatmul.mubr.bf16.gmra.mrb[36].mxu1 %v7534_v36  ;;  %v7718_v36 = vld [vmem:[%s10483_s1 + $0x6e0] ss:$8 sps:$4 sm:$0xff]  }
  0x8b   :  { %4796 = vmatmul.mubr.bf16.vlgmr.msra.gmra.mrb[0].mxu0 %v7531_v35  ;;  %3830 = vmatprep.mubr.bf16.mxu1 %v7541_v40  ;;  %v7624_v35 = vld [vmem:[%s10484_s0 + $0x4ac] ss:$72 sps:$4 sm:$0xff]  }
  0x8c   :  { %4977 = vmatpush1.bf16.msra.mxu0 %v7538_v39  ;;  %4805 = vmatprep.mubr.bf16.mxu0 %v7543_v41  ;;  %v7626_v39 = vld [vmem:[%s10484_s0 + $0x990] ss:$72 sps:$4 sm:$0xff]   ;;  %v7744_v40 = vld [vmem:[%s10483_s1 + $0x704] ss:$8 sps:$4 sm:$0xff]  }
  0x8d   :  { %4978 = vmatprep.subr.bf16.mxu0 %v7552_v42  ;;  %v7627_v41 = vld [vmem:[%s10484_s0 + $0x4a8] ss:$72 sps:$4 sm:$0xff]   ;;  %v7633_v42 = vld [vmem:[%s10484_s0 + $0xc] ss:$72 sps:$4 sm:$0xff]  }
  0x90   :  { %4979 = vmatpush1.bf16.msra.mxu0 %v7550_v43  ;;  %v7634_v43 = vld [vmem:[%s10484_s0 + $0x53c] ss:$72 sps:$4 sm:$0xff]  }
  0x91   :  { %4980 = vmatprep.subr.bf16.mxu0 %v7564_v46  ;;  %v7639_v46 = vld [vmem:[%s10484_s0 + $0x538] ss:$72 sps:$4 sm:$0xff]  }
  0x92   :  { %3831 = vmatmul.mubr.bf16.gmra.mrb[40].mxu1 %v7545_v47  ;;  %v7643_v47 = vld [vmem:[%s10484_s0 + $0x9c] ss:$72 sps:$4 sm:$0xff]  }
  0x93   :  { %4806 = vmatmul.mubr.bf16.gmra.mrb[4].mxu0 %v7546_v48  ;;  %3840 = vmatprep.mubr.bf16.mxu1 %v7553_v49  ;;  %v7645_v48 = vld [vmem:[%s10484_s0 + $0x5cc] ss:$72 sps:$4 sm:$0xff]  }
  0x94   :  { %4815 = vmatprep.mubr.bf16.mxu0 %v7555_v50  ;;  %4981 = vmatpush1.bf16.msra.mxu0 %v7562_v51  ;;  %v7651_v49 = vld [vmem:[%s10483_s1 + $0x214] ss:$8 sps:$4 sm:$0xff]   ;;  %v7649_v50 = vld [vmem:[%s10483_s1 + $0x210] ss:$8 sps:$4 sm:$0xff]   ;;  %v7663_v51 = vld [vmem:[%s10483_s1 + $0x224] ss:$8 sps:$4 sm:$0xff]  }
  0x95   :  { %4982 = vmatprep.subr.bf16.mxu0 %v7576_v52  ;;  %v7647_v52 = vld [vmem:[%s10484_s0 + $0x98] ss:$72 sps:$4 sm:$0xff]  }
  0x98   :  { %4983 = vmatpush1.bf16.msra.mxu0 %v7574_v54  ;;  %v7655_v54 = vld [vmem:[%s10484_s0 + $0x12c] ss:$72 sps:$4 sm:$0xff]  }
  0x99   :  { %4984 = vmatprep.subr.bf16.mxu0 %v7588_v55  ;;  %v7657_v55 = vld [vmem:[%s10484_s0 + $0x65c] ss:$72 sps:$4 sm:$0xff]  }
  0x9a   :  { %3841 = vmatmul.mubr.bf16.gmra.mrb[44].mxu1 %v7557_v56  ;;  %v7661_v56 = vld [vmem:[%s10483_s1 + $0x220] ss:$8 sps:$4 sm:$0xff]  }
  0x9b   :  { %4816 = vmatmul.mubr.bf16.gmra.mrb[8].mxu0 %v7558_v57  ;;  %3850 = vmatprep.mubr.bf16.mxu1 %v7565_v58  ;;  %v7675_v57 = vld [vmem:[%s10483_s1 + $0x234] ss:$8 sps:$4 sm:$0xff]   ;;  %v7673_v58 = vld [vmem:[%s10483_s1 + $0x230] ss:$8 sps:$4 sm:$0xff]  }
  0x9c   :  { %4825 = vmatprep.mubr.bf16.mxu0 %v7567_v59  ;;  %4985 = vmatpush1.bf16.msra.mxu0 %v7586_v60  ;;  %v7687_v59 = vld [vmem:[%s10483_s1 + $0x244] ss:$8 sps:$4 sm:$0xff]   ;;  %v7659_v60 = vld [vmem:[%s10484_s0 + $0x128] ss:$72 sps:$4 sm:$0xff]  }
  0x9d   :  { %4986 = vmatprep.subr.bf16.mxu0 %v7604_v61  ;;  %v7660_v61 = vld [vmem:[%s10484_s0 + $0x658] ss:$72 sps:$4 sm:$0xff]  }
  0xa0   :  { %4987 = vmatpush1.bf16.msra.mxu0 %v7602_v62  ;;  %v7667_v62 = vld [vmem:[%s10484_s0 + $0x1bc] ss:$72 sps:$4 sm:$0xff]  }
  0xa1   :  { %4988 = vmatprep.subr.bf16.mxu0 %v7618_v0  ;;  %v7685_v0 = vld [vmem:[%s10483_s1 + $0x240] ss:$8 sps:$4 sm:$0xff]  }
  0xa2   :  { %3851 = vmatmul.mubr.bf16.gmra.mrb[48].mxu1 %v7569_v63  ;;  %v7669_v63 = vld [vmem:[%s10484_s0 + $0x6ec] ss:$72 sps:$4 sm:$0xff]  }
  0xa3   :  { %4826 = vmatmul.mubr.bf16.gmra.mrb[12].mxu0 %v7570_v1  ;;  %3860 = vmatprep.mubr.bf16.mxu1 %v7577_v2  ;;  %v7699_v1 = vld [vmem:[%s10483_s1 + $0x254] ss:$8 sps:$4 sm:$0xff]   ;;  %v7697_v2 = vld [vmem:[%s10483_s1 + $0x250] ss:$8 sps:$4 sm:$0xff]  }
  0xa4   :  { %4835 = vmatprep.mubr.bf16.mxu0 %v7579_v3  ;;  %4989 = vmatpush1.bf16.msra.mxu0 %v7616_v4  ;;  %v7711_v3 = vld [vmem:[%s10483_s1 + $0x264] ss:$8 sps:$4 sm:$0xff]   ;;  %v7671_v4 = vld [vmem:[%s10484_s0 + $0x1b8] ss:$72 sps:$4 sm:$0xff]  }
  0xa5   :  { %4990 = vmatprep.subr.bf16.mxu0 %v7630_v5  ;;  %v7672_v5 = vld [vmem:[%s10484_s0 + $0x6e8] ss:$72 sps:$4 sm:$0xff]  }
  0xa8   :  { %4991 = vmatpush1.bf16.msra.mxu0 %v7628_v6  ;;  %v7679_v6 = vld [vmem:[%s10484_s0 + $0x24c] ss:$72 sps:$4 sm:$0xff]  }
  0xa9   :  { %4992 = vmatprep.subr.bf16.mxu0 %v7642_v7  ;;  %v7681_v7 = vld [vmem:[%s10484_s0 + $0x77c] ss:$72 sps:$4 sm:$0xff]  }
  0xaa   :  { %3861 = vmatmul.mubr.bf16.gmra.mrb[52].mxu1 %v7581_v8  ;;  %v7709_v8 = vld [vmem:[%s10483_s1 + $0x260] ss:$8 sps:$4 sm:$0xff]  }
  0xab   :  { %4836 = vmatmul.mubr.bf16.gmra.mrb[16].mxu0 %v7582_v9  ;;  %3870 = vmatprep.mubr.bf16.mxu1 %v7589_v10  ;;  %v7725_v9 = vld [vmem:[%s10483_s1 + $0x274] ss:$8 sps:$4 sm:$0xff]   ;;  %v7723_v10 = vld [vmem:[%s10483_s1 + $0x270] ss:$8 sps:$4 sm:$0xff]  }
  0xac   :  { %4845 = vmatprep.mubr.bf16.mxu0 %v7591_v11  ;;  %4993 = vmatpush1.bf16.msra.mxu0 %v7640_v12  ;;  %v7683_v11 = vld [vmem:[%s10484_s0 + $0x248] ss:$72 sps:$4 sm:$0xff]   ;;  %v7741_v12 = vld [vmem:[%s10483_s1 + $0x284] ss:$8 sps:$4 sm:$0xff]  }
  0xad   :  { %4994 = vmatprep.subr.bf16.mxu0 %v7654_v13  ;;  %v7684_v13 = vld [vmem:[%s10484_s0 + $0x778] ss:$72 sps:$4 sm:$0xff]  }
  0xb0   :  { %4995 = vmatpush1.bf16.msra.mxu0 %v7652_v15  ;;  %v7693_v15 = vld [vmem:[%s10484_s0 + $0x80c] ss:$72 sps:$4 sm:$0xff]  }
  0xb1   :  { %4996 = vmatprep.subr.bf16.mxu0 %v7666_v17  ;;  %v7753_v17 = vld [vmem:[%s10483_s1 + $0x294] ss:$8 sps:$4 sm:$0xff]  }
  0xb2   :  { %3871 = vmatmul.mubr.bf16.gmra.mrb[56].mxu1 %v7593_v14  ;;  %v7691_v14 = vld [vmem:[%s10484_s0 + $0x2dc] ss:$72 sps:$4 sm:$0xff]  }
  0xb3   :  { %4846 = vmatmul.mubr.bf16.gmra.mrb[20].mxu0 %v7594_v16  ;;  %3880 = vmatprep.mubr.bf16.mxu1 %v7598_v18  ;;  %v7739_v16 = vld [vmem:[%s10483_s1 + $0x280] ss:$8 sps:$4 sm:$0xff]   ;;  %v7751_v18 = vld [vmem:[%s10483_s1 + $0x290] ss:$8 sps:$4 sm:$0xff]  }
  0xb4   :  { %4855 = vmatprep.mubr.bf16.mxu0 %v7600_v19  ;;  %4997 = vmatpush1.bf16.msra.mxu0 %v7664_v20  ;;  %v7765_v19 = vld [vmem:[%s10483_s1 + $0x2a4] ss:$8 sps:$4 sm:$0xff]   ;;  %v7695_v20 = vld [vmem:[%s10484_s0 + $0x2d8] ss:$72 sps:$4 sm:$0xff]  }
  0xb5   :  { %4998 = vmatprep.subr.bf16.mxu0 %v7678_v21  ;;  %v7696_v21 = vld [vmem:[%s10484_s0 + $0x808] ss:$72 sps:$4 sm:$0xff]  }
  0xb8   :  { %4999 = vmatpush1.bf16.msra.mxu0 %v7676_v22  ;;  %v7700_v22 = vld [vmem:[%s10484_s0 + $0x36c] ss:$72 sps:$4 sm:$0xff]  }
  0xb9   :  { %5000 = vmatprep.subr.bf16.mxu0 %v7690_v24  ;;  %v7763_v24 = vld [vmem:[%s10483_s1 + $0x2a0] ss:$8 sps:$4 sm:$0xff]  }
  0xba   :  { %3881 = vmatmul.mubr.bf16.gmra.mrb[60].mxu1 %v7605_v23  ;;  %v7702_v23 = vld [vmem:[%s10484_s0 + $0x89c] ss:$72 sps:$4 sm:$0xff]  }
  0xbb   :  { %4856 = vmatmul.mubr.bf16.gmra.mrb[24].mxu0 %v7606_v25  ;;  %3890 = vmatprep.mubr.bf16.mxu1 %v7610_v26  ;;  %v7777_v25 = vld [vmem:[%s10483_s1 + $0x2b4] ss:$8 sps:$4 sm:$0xff]   ;;  %v7775_v26 = vld [vmem:[%s10483_s1 + $0x2b0] ss:$8 sps:$4 sm:$0xff]  }
  0xbc   :  { %4865 = vmatprep.mubr.bf16.mxu0 %v7612_v27  ;;  %5001 = vmatpush1.bf16.msra.mxu0 %v7688_v28  ;;  %v7707_v27 = vld [vmem:[%s10484_s0 + $0x368] ss:$72 sps:$4 sm:$0xff]   ;;  %v7789_v28 = vld [vmem:[%s10483_s1 + $0x2c4] ss:$8 sps:$4 sm:$0xff]  }
  0xbd   :  { %5002 = vmatprep.subr.bf16.mxu0 %v7706_v29  ;;  %v7708_v29 = vld [vmem:[%s10484_s0 + $0x898] ss:$72 sps:$4 sm:$0xff]  }
  0xc0   :  { %5003 = vmatpush1.bf16.msra.mxu0 %v7704_v30  ;;  %v7712_v30 = vld [vmem:[%s10484_s0 + $0x3fc] ss:$72 sps:$4 sm:$0xff]  }
  0xc1   :  { %5004 = vmatprep.subr.bf16.mxu0 %v7720_v31  ;;  %v7714_v31 = vld [vmem:[%s10484_s0 + $0x92c] ss:$72 sps:$4 sm:$0xff]  }
  0xc2   :  { %3891 = vmatmul.mubr.bf16.gmra.mrb[64].mxu1 %v7614_v32  ;;  %v7787_v32 = vld [vmem:[%s10483_s1 + $0x2c0] ss:$8 sps:$4 sm:$0xff]  }
  0xc3   :  { %4866 = vmatmul.mubr.bf16.gmra.mrb[28].mxu0 %v7615_v33  ;;  %3900 = vmatprep.mubr.bf16.mxu1 %v7619_v34  ;;  %v7801_v33 = vld [vmem:[%s10483_s1 + $0x2d4] ss:$8 sps:$4 sm:$0xff]   ;;  %v7716_v34 = vld [vmem:[%s10484_s0 + $0x3f8] ss:$72 sps:$4 sm:$0xff]  }
  0xc4   :  { %4875 = vmatprep.mubr.bf16.mxu0 %v7624_v35  ;;  %5005 = vmatpush1.bf16.msra.mxu0 %v7718_v36  ;;  %v7717_v35 = vld [vmem:[%s10484_s0 + $0x928] ss:$72 sps:$4 sm:$0xff]  }
  0xc5   :  { %5006 = vmatprep.subr.bf16.mxu0 %v7732_v37  ;;  %v7799_v36 = vld [vmem:[%s10483_s1 + $0x2d0] ss:$8 sps:$4 sm:$0xff]   ;;  %v7721_v37 = vld [vmem:[%s10484_s0 + $0x48c] ss:$72 sps:$4 sm:$0xff]  }
  0xc8   :  { %5007 = vmatpush1.bf16.msra.mxu0 %v7730_v38  ;;  %v7813_v38 = vld [vmem:[%s10483_s1 + $0x2e4] ss:$8 sps:$4 sm:$0xff]  }
  0xc9   :  { %5189 = vmatprep.subr.bf16.mxu0 %v7744_v40  ;;  %v7811_v40 = vld [vmem:[%s10483_s1 + $0x2e0] ss:$8 sps:$4 sm:$0xff]  }
  0xca   :  { %3901 = vmatmul.mubr.bf16.gmra.mrb[68].mxu1 %v7626_v39  ;;  %v7726_v39 = vld [vmem:[%s10484_s0 + $0x9bc] ss:$72 sps:$4 sm:$0xff]  }
  0xcb   :  { %4876 = vmatmul.mubr.bf16.gmra.mrb[32].mxu0 %v7627_v41  ;;  %3943 = vmatprep.mubr.bf16.mxu1 %v7633_v42  ;;  %v7827_v41 = vld [vmem:[%s10483_s1 + $0x2f4] ss:$8 sps:$4 sm:$0xff]   ;;  %v7825_v42 = vld [vmem:[%s10483_s1 + $0x2f0] ss:$8 sps:$4 sm:$0xff]  }
  0xcc   :  { %4885 = vmatprep.mubr.bf16.mxu0 %v7634_v43  ;;  %v7728_v43 = vld [vmem:[%s10484_s0 + $0x488] ss:$72 sps:$4 sm:$0xff]  }
  0xd2   :  { %3944 = vmatmul.mubr.bf16.vlgmr.msra.gmra.mrb[0].mxu1 %v7631_v44  ;;  %v7729_v44 = vld [vmem:[%s10484_s0 + $0x9b8] ss:$72 sps:$4 sm:$0xff]  }
  0xd3   :  { %4886 = vmatmul.mubr.bf16.gmra.mrb[36].mxu0 %v7639_v46  ;;  %4125 = vmatpush1.bf16.msra.mxu1 %v7636_v45  ;;  %v7842_v45 = vld [vmem:[%s10483_s1 + $0x304] ss:$8 sps:$4 sm:$0xff]  }
  0xd4   :  { %3953 = vmatprep.mubr.bf16.mxu1 %v7643_v47  ;;  %4895 = vmatprep.mubr.bf16.mxu0 %v7645_v48  ;;  %v7733_v46 = vld [vmem:[%s10484_s0 + $0x51c] ss:$72 sps:$4 sm:$0xff]   ;;  %v7735_v48 = vld [vmem:[%s10484_s0 + $0x30] ss:$72 sps:$4 sm:$0xff]  }
  0xd5   :  { %4126 = vmatprep.subr.bf16.mxu1 %v7651_v49  ;;  %v7737_v47 = vld [vmem:[%s10484_s0 + $0x34] ss:$72 sps:$4 sm:$0xff]   ;;  %v7738_v49 = vld [vmem:[%s10484_s0 + $0x518] ss:$72 sps:$4 sm:$0xff]  }
  0xd7   :  { %4127 = vmatpush1.bf16.msra.mxu1 %v7649_v50  ;;  %v7742_v50 = vld [vmem:[%s10483_s1 + $0x700] ss:$8 sps:$4 sm:$0xff]  }
  0xd8   :  { %4128 = vmatprep.subr.bf16.mxu1 %v7663_v51  ;;  %v7745_v51 = vld [vmem:[%s10484_s0 + $0x5ac] ss:$72 sps:$4 sm:$0xff]  }
  0xda   :  { %3954 = vmatmul.mubr.bf16.gmra.mrb[4].mxu1 %v7647_v52  ;;  %v7747_v52 = vld [vmem:[%s10484_s0 + $0xc4] ss:$72 sps:$4 sm:$0xff]  }
  0xdb   :  { %4896 = vmatmul.mubr.bf16.gmra.mrb[40].mxu0 %v7648_v53  ;;  %3963 = vmatprep.mubr.bf16.mxu1 %v7655_v54  ;;  %v7756_v53 = vld [vmem:[%s10483_s1 + $0x714] ss:$8 sps:$4 sm:$0xff]   ;;  %v7754_v54 = vld [vmem:[%s10483_s1 + $0x710] ss:$8 sps:$4 sm:$0xff]  }
  0xdc   :  { %4905 = vmatprep.mubr.bf16.mxu0 %v7657_v55  ;;  %4129 = vmatpush1.bf16.msra.mxu1 %v7661_v56  ;;  %v7749_v55 = vld [vmem:[%s10484_s0 + $0x5a8] ss:$72 sps:$4 sm:$0xff]  }
  0xdd   :  { %4130 = vmatprep.subr.bf16.mxu1 %v7675_v57  ;;  %v7750_v56 = vld [vmem:[%s10484_s0 + $0xc0] ss:$72 sps:$4 sm:$0xff]   ;;  %v7768_v57 = vld [vmem:[%s10483_s1 + $0x724] ss:$8 sps:$4 sm:$0xff]  }
  0xe0   :  { %4131 = vmatpush1.bf16.msra.mxu1 %v7673_v58  ;;  %v7757_v58 = vld [vmem:[%s10484_s0 + $0x63c] ss:$72 sps:$4 sm:$0xff]  }
  0xe1   :  { %4132 = vmatprep.subr.bf16.mxu1 %v7687_v59  ;;  %v7759_v59 = vld [vmem:[%s10484_s0 + $0x154] ss:$72 sps:$4 sm:$0xff]  }
  0xe2   :  { %3964 = vmatmul.mubr.bf16.gmra.mrb[8].mxu1 %v7659_v60  ;;  %v7766_v60 = vld [vmem:[%s10483_s1 + $0x720] ss:$8 sps:$4 sm:$0xff]  }
  0xe3   :  { %4906 = vmatmul.mubr.bf16.gmra.mrb[44].mxu0 %v7660_v61  ;;  %3973 = vmatprep.mubr.bf16.mxu1 %v7667_v62  ;;  %v7780_v61 = vld [vmem:[%s10483_s1 + $0x734] ss:$8 sps:$4 sm:$0xff]   ;;  %v7778_v62 = vld [vmem:[%s10483_s1 + $0x730] ss:$8 sps:$4 sm:$0xff]  }
  0xe4   :  { %4915 = vmatprep.mubr.bf16.mxu0 %v7669_v63  ;;  %4133 = vmatpush1.bf16.msra.mxu1 %v7685_v0  ;;  %v7792_v63 = vld [vmem:[%s10483_s1 + $0x744] ss:$8 sps:$4 sm:$0xff]   ;;  %v7761_v0 = vld [vmem:[%s10484_s0 + $0x638] ss:$72 sps:$4 sm:$0xff]  }
  0xe5   :  { %4134 = vmatprep.subr.bf16.mxu1 %v7699_v1  ;;  %v7762_v1 = vld [vmem:[%s10484_s0 + $0x150] ss:$72 sps:$4 sm:$0xff]  }
  0xe8   :  { %4135 = vmatpush1.bf16.msra.mxu1 %v7697_v2  ;;  %v7769_v2 = vld [vmem:[%s10484_s0 + $0x6cc] ss:$72 sps:$4 sm:$0xff]  }
  0xe9   :  { %4136 = vmatprep.subr.bf16.mxu1 %v7711_v3  ;;  %v7771_v3 = vld [vmem:[%s10484_s0 + $0x1e4] ss:$72 sps:$4 sm:$0xff]  }
  0xea   :  { %3974 = vmatmul.mubr.bf16.gmra.mrb[12].mxu1 %v7671_v4  ;;  %v7790_v4 = vld [vmem:[%s10483_s1 + $0x740] ss:$8 sps:$4 sm:$0xff]  }
  0xeb   :  { %4916 = vmatmul.mubr.bf16.gmra.mrb[48].mxu0 %v7672_v5  ;;  %3983 = vmatprep.mubr.bf16.mxu1 %v7679_v6  ;;  %v7808_v5 = vld [vmem:[%s10483_s1 + $0x754] ss:$8 sps:$4 sm:$0xff]   ;;  %v7806_v6 = vld [vmem:[%s10483_s1 + $0x750] ss:$8 sps:$4 sm:$0xff]  }
  0xec   :  { %4925 = vmatprep.mubr.bf16.mxu0 %v7681_v7  ;;  %4137 = vmatpush1.bf16.msra.mxu1 %v7709_v8  ;;  %v7773_v7 = vld [vmem:[%s10484_s0 + $0x6c8] ss:$72 sps:$4 sm:$0xff]  }
  0xed   :  { %4138 = vmatprep.subr.bf16.mxu1 %v7725_v9  ;;  %v7774_v8 = vld [vmem:[%s10484_s0 + $0x1e0] ss:$72 sps:$4 sm:$0xff]   ;;  %v7822_v9 = vld [vmem:[%s10483_s1 + $0x764] ss:$8 sps:$4 sm:$0xff]  }
  0xf0   :  { %4139 = vmatpush1.bf16.msra.mxu1 %v7723_v10  ;;  %v7781_v10 = vld [vmem:[%s10484_s0 + $0x75c] ss:$72 sps:$4 sm:$0xff]  }
  0xf1   :  { %4140 = vmatprep.subr.bf16.mxu1 %v7741_v12  ;;  %v7820_v12 = vld [vmem:[%s10483_s1 + $0x760] ss:$8 sps:$4 sm:$0xff]  }
  0xf2   :  { %3984 = vmatmul.mubr.bf16.gmra.mrb[16].mxu1 %v7683_v11  ;;  %v7783_v11 = vld [vmem:[%s10484_s0 + $0x274] ss:$72 sps:$4 sm:$0xff]  }
  0xf3   :  { %4926 = vmatmul.mubr.bf16.gmra.mrb[52].mxu0 %v7684_v13  ;;  %3993 = vmatprep.mubr.bf16.mxu1 %v7691_v14  ;;  %v7834_v13 = vld [vmem:[%s10483_s1 + $0x774] ss:$8 sps:$4 sm:$0xff]   ;;  %v7832_v14 = vld [vmem:[%s10483_s1 + $0x770] ss:$8 sps:$4 sm:$0xff]  }
  0xf4   :  { %4935 = vmatprep.mubr.bf16.mxu0 %v7693_v15  ;;  %4141 = vmatpush1.bf16.msra.mxu1 %v7739_v16  ;;  %v7785_v15 = vld [vmem:[%s10484_s0 + $0x758] ss:$72 sps:$4 sm:$0xff]  }
  0xf5   :  { %4142 = vmatprep.subr.bf16.mxu1 %v7753_v17  ;;  %v7786_v16 = vld [vmem:[%s10484_s0 + $0x270] ss:$72 sps:$4 sm:$0xff]   ;;  %v7846_v17 = vld [vmem:[%s10483_s1 + $0x784] ss:$8 sps:$4 sm:$0xff]  }
  0xf8   :  { %4143 = vmatpush1.bf16.msra.mxu1 %v7751_v18  ;;  %v7793_v18 = vld [vmem:[%s10484_s0 + $0x7ec] ss:$72 sps:$4 sm:$0xff]  }
  0xf9   :  { %4144 = vmatprep.subr.bf16.mxu1 %v7765_v19  ;;  %v7795_v19 = vld [vmem:[%s10484_s0 + $0x304] ss:$72 sps:$4 sm:$0xff]  }
  0xfa   :  { %3994 = vmatmul.mubr.bf16.gmra.mrb[20].mxu1 %v7695_v20  ;;  %v7844_v20 = vld [vmem:[%s10483_s1 + $0x780] ss:$8 sps:$4 sm:$0xff]  }
  0xfb   :  { %4936 = vmatmul.mubr.bf16.gmra.mrb[56].mxu0 %v7696_v21  ;;  %4003 = vmatprep.mubr.bf16.mxu1 %v7700_v22  ;;  %v7858_v21 = vld [vmem:[%s10483_s1 + $0x794] ss:$8 sps:$4 sm:$0xff]   ;;  %v7856_v22 = vld [vmem:[%s10483_s1 + $0x790] ss:$8 sps:$4 sm:$0xff]  }
  0xfc   :  { %4945 = vmatprep.mubr.bf16.mxu0 %v7702_v23  ;;  %4145 = vmatpush1.bf16.msra.mxu1 %v7763_v24  ;;  %v7797_v23 = vld [vmem:[%s10484_s0 + $0x7e8] ss:$72 sps:$4 sm:$0xff]  }
  0xfd   :  { %4146 = vmatprep.subr.bf16.mxu1 %v7777_v25  ;;  %v7798_v24 = vld [vmem:[%s10484_s0 + $0x300] ss:$72 sps:$4 sm:$0xff]   ;;  %v7870_v25 = vld [vmem:[%s10483_s1 + $0x7a4] ss:$8 sps:$4 sm:$0xff]  }
 0x100   :  { %4147 = vmatpush1.bf16.msra.mxu1 %v7775_v26  ;;  %v7802_v26 = vld [vmem:[%s10484_s0 + $0x87c] ss:$72 sps:$4 sm:$0xff]  }
 0x101   :  { %4148 = vmatprep.subr.bf16.mxu1 %v7789_v28  ;;  %v7868_v28 = vld [vmem:[%s10483_s1 + $0x7a0] ss:$8 sps:$4 sm:$0xff]  }
 0x102   :  { %4004 = vmatmul.mubr.bf16.gmra.mrb[24].mxu1 %v7707_v27  ;;  %v7804_v27 = vld [vmem:[%s10484_s0 + $0x394] ss:$72 sps:$4 sm:$0xff]  }
 0x103   :  { %4946 = vmatmul.mubr.bf16.gmra.mrb[60].mxu0 %v7708_v29  ;;  %4013 = vmatprep.mubr.bf16.mxu1 %v7712_v30  ;;  %v7882_v29 = vld [vmem:[%s10483_s1 + $0x7b4] ss:$8 sps:$4 sm:$0xff]   ;;  %v7880_v30 = vld [vmem:[%s10483_s1 + $0x7b0] ss:$8 sps:$4 sm:$0xff]  }
 0x104   :  { %4955 = vmatprep.mubr.bf16.mxu0 %v7714_v31  ;;  %4149 = vmatpush1.bf16.msra.mxu1 %v7787_v32  ;;  %v7809_v31 = vld [vmem:[%s10484_s0 + $0x878] ss:$72 sps:$4 sm:$0xff]  }
 0x105   :  { %4150 = vmatprep.subr.bf16.mxu1 %v7801_v33  ;;  %v7810_v32 = vld [vmem:[%s10484_s0 + $0x390] ss:$72 sps:$4 sm:$0xff]   ;;  %v7894_v33 = vld [vmem:[%s10483_s1 + $0x7c4] ss:$8 sps:$4 sm:$0xff]  }
 0x108   :  { %4151 = vmatpush1.bf16.msra.mxu1 %v7799_v36  ;;  %v7892_v36 = vld [vmem:[%s10483_s1 + $0x7c0] ss:$8 sps:$4 sm:$0xff]  }
 0x109   :  { %4152 = vmatprep.subr.bf16.mxu1 %v7813_v38  ;;  %v7908_v38 = vld [vmem:[%s10483_s1 + $0x7d0] ss:$8 sps:$4 sm:$0xff]  }
 0x10a   :  { %4014 = vmatmul.mubr.bf16.gmra.mrb[28].mxu1 %v7716_v34  ;;  %v7814_v34 = vld [vmem:[%s10484_s0 + $0x90c] ss:$72 sps:$4 sm:$0xff]  }
 0x10b   :  { %4956 = vmatmul.mubr.bf16.gmra.mrb[64].mxu0 %v7717_v35  ;;  %4023 = vmatprep.mubr.bf16.mxu1 %v7721_v37  ;;  %v7816_v35 = vld [vmem:[%s10484_s0 + $0x424] ss:$72 sps:$4 sm:$0xff]   ;;  %v7910_v37 = vld [vmem:[%s10483_s1 + $0x7d4] ss:$8 sps:$4 sm:$0xff]  }
 0x10c   :  { %4965 = vmatprep.mubr.bf16.mxu0 %v7726_v39  ;;  %4153 = vmatpush1.bf16.msra.mxu1 %v7811_v40  ;;  %v7818_v39 = vld [vmem:[%s10484_s0 + $0x908] ss:$72 sps:$4 sm:$0xff]  }
 0x10d   :  { %4154 = vmatprep.subr.bf16.mxu1 %v7827_v41  ;;  %v7819_v40 = vld [vmem:[%s10484_s0 + $0x420] ss:$72 sps:$4 sm:$0xff]   ;;  %v7924_v41 = vld [vmem:[%s10483_s1 + $0x7e4] ss:$8 sps:$4 sm:$0xff]  }
 0x110   :  { %4155 = vmatpush1.bf16.msra.mxu1 %v7825_v42  ;;  %v7823_v42 = vld [vmem:[%s10484_s0 + $0x99c] ss:$72 sps:$4 sm:$0xff]  }
 0x111   :  { %4337 = vmatprep.subr.bf16.mxu1 %v7842_v45  ;;  %v7936_v45 = vld [vmem:[%s10483_s1 + $0x7f4] ss:$8 sps:$4 sm:$0xff]  }
 0x112   :  { %4024 = vmatmul.mubr.bf16.gmra.mrb[32].mxu1 %v7728_v43  ;;  %v7828_v43 = vld [vmem:[%s10484_s0 + $0x4b4] ss:$72 sps:$4 sm:$0xff]  }
 0x113   :  { %4966 = vmatmul.mubr.bf16.gmra.mrb[68].mxu0 %v7729_v44  ;;  %4033 = vmatprep.mubr.bf16.mxu1 %v7733_v46  ;;  %v7922_v44 = vld [vmem:[%s10483_s1 + $0x7e0] ss:$8 sps:$4 sm:$0xff]   ;;  %v7934_v46 = vld [vmem:[%s10483_s1 + $0x7f0] ss:$8 sps:$4 sm:$0xff]  }
 0x114   :  { %5008 = vmatprep.mubr.bf16.mxu0 %v7737_v47  ;;  %v7830_v47 = vld [vmem:[%s10484_s0 + $0x998] ss:$72 sps:$4 sm:$0xff]  }
 0x11a   :  { %4034 = vmatmul.mubr.bf16.gmra.mrb[36].mxu1 %v7738_v49  ;;  %v7948_v49 = vld [vmem:[%s10483_s1 + $0x804] ss:$8 sps:$4 sm:$0xff]  }
 0x11b   :  { %5009 = vmatmul.mubr.bf16.vlgmr.msra.gmra.mrb[0].mxu0 %v7735_v48  ;;  %4043 = vmatprep.mubr.bf16.mxu1 %v7745_v51  ;;  %v7831_v48 = vld [vmem:[%s10484_s0 + $0x4b0] ss:$72 sps:$4 sm:$0xff]   ;;  %v7838_v51 = vld [vmem:[%s10484_s0 + $0x544] ss:$72 sps:$4 sm:$0xff]  }
 0x11c   :  { %5190 = vmatpush1.bf16.msra.mxu0 %v7742_v50  ;;  %5018 = vmatprep.mubr.bf16.mxu0 %v7747_v52  ;;  %v7837_v50 = vld [vmem:[%s10484_s0 + $0x14] ss:$72 sps:$4 sm:$0xff]   ;;  %v7835_v52 = vld [vmem:[%s10484_s0 + $0x10] ss:$72 sps:$4 sm:$0xff]  }
 0x11d   :  { %5191 = vmatprep.subr.bf16.mxu0 %v7756_v53  ;;  %v7843_v53 = vld [vmem:[%s10484_s0 + $0x540] ss:$72 sps:$4 sm:$0xff]  }
 0x120   :  { %5192 = vmatpush1.bf16.msra.mxu0 %v7754_v54  ;;  %v7840_v54 = vld [vmem:[%s10483_s1 + $0x300] ss:$8 sps:$4 sm:$0xff]  }
 0x121   :  { %5193 = vmatprep.subr.bf16.mxu0 %v7768_v57  ;;  %v7855_v57 = vld [vmem:[%s10483_s1 + $0x314] ss:$8 sps:$4 sm:$0xff]  }
 0x122   :  { %4044 = vmatmul.mubr.bf16.gmra.mrb[40].mxu1 %v7749_v55  ;;  %v7847_v55 = vld [vmem:[%s10484_s0 + $0xa4] ss:$72 sps:$4 sm:$0xff]  }
 0x123   :  { %5019 = vmatmul.mubr.bf16.gmra.mrb[4].mxu0 %v7750_v56  ;;  %4053 = vmatprep.mubr.bf16.mxu1 %v7757_v58  ;;  %v7849_v56 = vld [vmem:[%s10484_s0 + $0x5d4] ss:$72 sps:$4 sm:$0xff]   ;;  %v7853_v58 = vld [vmem:[%s10483_s1 + $0x310] ss:$8 sps:$4 sm:$0xff]  }
 0x124   :  { %5028 = vmatprep.mubr.bf16.mxu0 %v7759_v59  ;;  %5194 = vmatpush1.bf16.msra.mxu0 %v7766_v60  ;;  %v7851_v59 = vld [vmem:[%s10484_s0 + $0xa0] ss:$72 sps:$4 sm:$0xff]   ;;  %v7852_v60 = vld [vmem:[%s10484_s0 + $0x5d0] ss:$72 sps:$4 sm:$0xff]  }
 0x125   :  { %5195 = vmatprep.subr.bf16.mxu0 %v7780_v61  ;;  %v7867_v61 = vld [vmem:[%s10483_s1 + $0x324] ss:$8 sps:$4 sm:$0xff]  }
 0x128   :  { %5196 = vmatpush1.bf16.msra.mxu0 %v7778_v62  ;;  %v7859_v62 = vld [vmem:[%s10484_s0 + $0x134] ss:$72 sps:$4 sm:$0xff]  }
 0x129   :  { %5197 = vmatprep.subr.bf16.mxu0 %v7792_v63  ;;  %v7861_v63 = vld [vmem:[%s10484_s0 + $0x664] ss:$72 sps:$4 sm:$0xff]  }
 0x12a   :  { %4054 = vmatmul.mubr.bf16.gmra.mrb[44].mxu1 %v7761_v0  ;;  %v7865_v0 = vld [vmem:[%s10483_s1 + $0x320] ss:$8 sps:$4 sm:$0xff]  }
 0x12b   :  { %5029 = vmatmul.mubr.bf16.gmra.mrb[8].mxu0 %v7762_v1  ;;  %4063 = vmatprep.mubr.bf16.mxu1 %v7769_v2  ;;  %v7879_v1 = vld [vmem:[%s10483_s1 + $0x334] ss:$8 sps:$4 sm:$0xff]   ;;  %v7877_v2 = vld [vmem:[%s10483_s1 + $0x330] ss:$8 sps:$4 sm:$0xff]  }
 0x12c   :  { %5038 = vmatprep.mubr.bf16.mxu0 %v7771_v3  ;;  %5198 = vmatpush1.bf16.msra.mxu0 %v7790_v4  ;;  %v7891_v3 = vld [vmem:[%s10483_s1 + $0x344] ss:$8 sps:$4 sm:$0xff]   ;;  %v7863_v4 = vld [vmem:[%s10484_s0 + $0x130] ss:$72 sps:$4 sm:$0xff]  }
 0x12d   :  { %5199 = vmatprep.subr.bf16.mxu0 %v7808_v5  ;;  %v7864_v5 = vld [vmem:[%s10484_s0 + $0x660] ss:$72 sps:$4 sm:$0xff]  }
 0x130   :  { %5200 = vmatpush1.bf16.msra.mxu0 %v7806_v6  ;;  %v7871_v6 = vld [vmem:[%s10484_s0 + $0x1c4] ss:$72 sps:$4 sm:$0xff]  }
 0x131   :  { %5201 = vmatprep.subr.bf16.mxu0 %v7822_v9  ;;  %v7903_v9 = vld [vmem:[%s10483_s1 + $0x354] ss:$8 sps:$4 sm:$0xff]  }
 0x132   :  { %4064 = vmatmul.mubr.bf16.gmra.mrb[48].mxu1 %v7773_v7  ;;  %v7873_v7 = vld [vmem:[%s10484_s0 + $0x6f4] ss:$72 sps:$4 sm:$0xff]  }
 0x133   :  { %5039 = vmatmul.mubr.bf16.gmra.mrb[12].mxu0 %v7774_v8  ;;  %4073 = vmatprep.mubr.bf16.mxu1 %v7781_v10  ;;  %v7889_v8 = vld [vmem:[%s10483_s1 + $0x340] ss:$8 sps:$4 sm:$0xff]   ;;  %v7901_v10 = vld [vmem:[%s10483_s1 + $0x350] ss:$8 sps:$4 sm:$0xff]  }
 0x134   :  { %5048 = vmatprep.mubr.bf16.mxu0 %v7783_v11  ;;  %5202 = vmatpush1.bf16.msra.mxu0 %v7820_v12  ;;  %v7915_v11 = vld [vmem:[%s10483_s1 + $0x364] ss:$8 sps:$4 sm:$0xff]   ;;  %v7875_v12 = vld [vmem:[%s10484_s0 + $0x1c0] ss:$72 sps:$4 sm:$0xff]  }
 0x135   :  { %5203 = vmatprep.subr.bf16.mxu0 %v7834_v13  ;;  %v7876_v13 = vld [vmem:[%s10484_s0 + $0x6f0] ss:$72 sps:$4 sm:$0xff]  }
 0x138   :  { %5204 = vmatpush1.bf16.msra.mxu0 %v7832_v14  ;;  %v7883_v14 = vld [vmem:[%s10484_s0 + $0x254] ss:$72 sps:$4 sm:$0xff]  }
 0x139   :  { %5205 = vmatprep.subr.bf16.mxu0 %v7846_v17  ;;  %v7929_v17 = vld [vmem:[%s10483_s1 + $0x374] ss:$8 sps:$4 sm:$0xff]  }
 0x13a   :  { %4074 = vmatmul.mubr.bf16.gmra.mrb[52].mxu1 %v7785_v15  ;;  %v7885_v15 = vld [vmem:[%s10484_s0 + $0x784] ss:$72 sps:$4 sm:$0xff]  }
 0x13b   :  { %5049 = vmatmul.mubr.bf16.gmra.mrb[16].mxu0 %v7786_v16  ;;  %4083 = vmatprep.mubr.bf16.mxu1 %v7793_v18  ;;  %v7913_v16 = vld [vmem:[%s10483_s1 + $0x360] ss:$8 sps:$4 sm:$0xff]   ;;  %v7927_v18 = vld [vmem:[%s10483_s1 + $0x370] ss:$8 sps:$4 sm:$0xff]  }
 0x13c   :  { %5058 = vmatprep.mubr.bf16.mxu0 %v7795_v19  ;;  %5206 = vmatpush1.bf16.msra.mxu0 %v7844_v20  ;;  %v7945_v19 = vld [vmem:[%s10483_s1 + $0x384] ss:$8 sps:$4 sm:$0xff]   ;;  %v7887_v20 = vld [vmem:[%s10484_s0 + $0x250] ss:$72 sps:$4 sm:$0xff]  }
 0x13d   :  { %5207 = vmatprep.subr.bf16.mxu0 %v7858_v21  ;;  %v7888_v21 = vld [vmem:[%s10484_s0 + $0x780] ss:$72 sps:$4 sm:$0xff]  }
 0x140   :  { %5208 = vmatpush1.bf16.msra.mxu0 %v7856_v22  ;;  %v7895_v22 = vld [vmem:[%s10484_s0 + $0x2e4] ss:$72 sps:$4 sm:$0xff]  }
 0x141   :  { %5209 = vmatprep.subr.bf16.mxu0 %v7870_v25  ;;  %v7957_v25 = vld [vmem:[%s10483_s1 + $0x394] ss:$8 sps:$4 sm:$0xff]  }
 0x142   :  { %4084 = vmatmul.mubr.bf16.gmra.mrb[56].mxu1 %v7797_v23  ;;  %v7897_v23 = vld [vmem:[%s10484_s0 + $0x814] ss:$72 sps:$4 sm:$0xff]  }
 0x143   :  { %5059 = vmatmul.mubr.bf16.gmra.mrb[20].mxu0 %v7798_v24  ;;  %4093 = vmatprep.mubr.bf16.mxu1 %v7802_v26  ;;  %v7943_v24 = vld [vmem:[%s10483_s1 + $0x380] ss:$8 sps:$4 sm:$0xff]   ;;  %v7955_v26 = vld [vmem:[%s10483_s1 + $0x390] ss:$8 sps:$4 sm:$0xff]  }
 0x144   :  { %5068 = vmatprep.mubr.bf16.mxu0 %v7804_v27  ;;  %5210 = vmatpush1.bf16.msra.mxu0 %v7868_v28  ;;  %v7969_v27 = vld [vmem:[%s10483_s1 + $0x3a4] ss:$8 sps:$4 sm:$0xff]   ;;  %v7899_v28 = vld [vmem:[%s10484_s0 + $0x2e0] ss:$72 sps:$4 sm:$0xff]  }
 0x145   :  { %5211 = vmatprep.subr.bf16.mxu0 %v7882_v29  ;;  %v7900_v29 = vld [vmem:[%s10484_s0 + $0x810] ss:$72 sps:$4 sm:$0xff]  }
 0x148   :  { %5212 = vmatpush1.bf16.msra.mxu0 %v7880_v30  ;;  %v7904_v30 = vld [vmem:[%s10484_s0 + $0x374] ss:$72 sps:$4 sm:$0xff]  }
 0x149   :  { %5213 = vmatprep.subr.bf16.mxu0 %v7894_v33  ;;  %v7981_v33 = vld [vmem:[%s10483_s1 + $0x3b4] ss:$8 sps:$4 sm:$0xff]  }
 0x14a   :  { %4094 = vmatmul.mubr.bf16.gmra.mrb[60].mxu1 %v7809_v31  ;;  %v7906_v31 = vld [vmem:[%s10484_s0 + $0x8a4] ss:$72 sps:$4 sm:$0xff]  }
 0x14b   :  { %5069 = vmatmul.mubr.bf16.gmra.mrb[24].mxu0 %v7810_v32  ;;  %4103 = vmatprep.mubr.bf16.mxu1 %v7814_v34  ;;  %v7967_v32 = vld [vmem:[%s10483_s1 + $0x3a0] ss:$8 sps:$4 sm:$0xff]   ;;  %v7979_v34 = vld [vmem:[%s10483_s1 + $0x3b0] ss:$8 sps:$4 sm:$0xff]  }
 0x14c   :  { %5078 = vmatprep.mubr.bf16.mxu0 %v7816_v35  ;;  %5214 = vmatpush1.bf16.msra.mxu0 %v7892_v36  ;;  %v7993_v35 = vld [vmem:[%s10483_s1 + $0x3c4] ss:$8 sps:$4 sm:$0xff]   ;;  %v7911_v36 = vld [vmem:[%s10484_s0 + $0x370] ss:$72 sps:$4 sm:$0xff]  }
 0x14d   :  { %5215 = vmatprep.subr.bf16.mxu0 %v7910_v37  ;;  %v7912_v37 = vld [vmem:[%s10484_s0 + $0x8a0] ss:$72 sps:$4 sm:$0xff]  }
 0x150   :  { %5216 = vmatpush1.bf16.msra.mxu0 %v7908_v38  ;;  %v7916_v38 = vld [vmem:[%s10484_s0 + $0x404] ss:$72 sps:$4 sm:$0xff]  }
 0x151   :  { %5217 = vmatprep.subr.bf16.mxu0 %v7924_v41  ;;  %v8005_v41 = vld [vmem:[%s10483_s1 + $0x3d4] ss:$8 sps:$4 sm:$0xff]  }
 0x152   :  { %4104 = vmatmul.mubr.bf16.gmra.mrb[64].mxu1 %v7818_v39  ;;  %v7918_v39 = vld [vmem:[%s10484_s0 + $0x934] ss:$72 sps:$4 sm:$0xff]  }
 0x153   :  { %5079 = vmatmul.mubr.bf16.gmra.mrb[28].mxu0 %v7819_v40  ;;  %4113 = vmatprep.mubr.bf16.mxu1 %v7823_v42  ;;  %v7991_v40 = vld [vmem:[%s10483_s1 + $0x3c0] ss:$8 sps:$4 sm:$0xff]   ;;  %v8003_v42 = vld [vmem:[%s10483_s1 + $0x3d0] ss:$8 sps:$4 sm:$0xff]  }
 0x154   :  { %5088 = vmatprep.mubr.bf16.mxu0 %v7828_v43  ;;  %5218 = vmatpush1.bf16.msra.mxu0 %v7922_v44  ;;  %v8017_v43 = vld [vmem:[%s10483_s1 + $0x3e4] ss:$8 sps:$4 sm:$0xff]   ;;  %v7920_v44 = vld [vmem:[%s10484_s0 + $0x400] ss:$72 sps:$4 sm:$0xff]  }
 0x155   :  { %5219 = vmatprep.subr.bf16.mxu0 %v7936_v45  ;;  %v7921_v45 = vld [vmem:[%s10484_s0 + $0x930] ss:$72 sps:$4 sm:$0xff]  }
 0x158   :  { %5220 = vmatpush1.bf16.msra.mxu0 %v7934_v46  ;;  %v7925_v46 = vld [vmem:[%s10484_s0 + $0x494] ss:$72 sps:$4 sm:$0xff]  }
 0x159   :  { %5402 = vmatprep.subr.bf16.mxu0 %v7948_v49  ;;  %v8031_v49 = vld [vmem:[%s10483_s1 + $0x3f4] ss:$8 sps:$4 sm:$0xff]  }
 0x15a   :  { %4114 = vmatmul.mubr.bf16.gmra.mrb[68].mxu1 %v7830_v47  ;;  %v7930_v47 = vld [vmem:[%s10484_s0 + $0x9c4] ss:$72 sps:$4 sm:$0xff]  }
 0x15b   :  { %5089 = vmatmul.mubr.bf16.gmra.mrb[32].mxu0 %v7831_v48  ;;  %4156 = vmatprep.mubr.bf16.mxu1 %v7837_v50  ;;  %v8015_v48 = vld [vmem:[%s10483_s1 + $0x3e0] ss:$8 sps:$4 sm:$0xff]   ;;  %v8029_v50 = vld [vmem:[%s10483_s1 + $0x3f0] ss:$8 sps:$4 sm:$0xff]  }
 0x15c   :  { %5098 = vmatprep.mubr.bf16.mxu0 %v7838_v51  ;;  %v7932_v51 = vld [vmem:[%s10484_s0 + $0x490] ss:$72 sps:$4 sm:$0xff]  }
 0x162   :  { %4157 = vmatmul.mubr.bf16.vlgmr.msra.gmra.mrb[0].mxu1 %v7835_v52  ;;  %v7933_v52 = vld [vmem:[%s10484_s0 + $0x9c0] ss:$72 sps:$4 sm:$0xff]  }
 0x163   :  { %5099 = vmatmul.mubr.bf16.gmra.mrb[36].mxu0 %v7843_v53  ;;  %4338 = vmatpush1.bf16.msra.mxu1 %v7840_v54  ;;  %v7937_v53 = vld [vmem:[%s10484_s0 + $0x524] ss:$72 sps:$4 sm:$0xff]  }
 0x164   :  { %4166 = vmatprep.mubr.bf16.mxu1 %v7847_v55  ;;  %5108 = vmatprep.mubr.bf16.mxu0 %v7849_v56  ;;  %v7941_v54 = vld [vmem:[%s10484_s0 + $0x3c] ss:$72 sps:$4 sm:$0xff]   ;;  %v7939_v56 = vld [vmem:[%s10484_s0 + $0x38] ss:$72 sps:$4 sm:$0xff]  }
 0x165   :  { %4339 = vmatprep.subr.bf16.mxu1 %v7855_v57  ;;  %v8225_v55 = vld [vmem:[%s10483_s1 + $0x404] ss:$8 sps:$4 sm:$0xff]   ;;  %v7942_v57 = vld [vmem:[%s10484_s0 + $0x520] ss:$72 sps:$4 sm:$0xff]  }
 0x167   :  { %4340 = vmatpush1.bf16.msra.mxu1 %v7853_v58  ;;  %v7946_v58 = vld [vmem:[%s10483_s1 + $0x800] ss:$8 sps:$4 sm:$0xff]  }
 0x168   :  { %4341 = vmatprep.subr.bf16.mxu1 %v7867_v61  ;;  %v7960_v61 = vld [vmem:[%s10483_s1 + $0x814] ss:$8 sps:$4 sm:$0xff]  }
 0x16a   :  { %4167 = vmatmul.mubr.bf16.gmra.mrb[4].mxu1 %v7851_v59  ;;  %v7949_v59 = vld [vmem:[%s10484_s0 + $0x5b4] ss:$72 sps:$4 sm:$0xff]  }
 0x16b   :  { %5109 = vmatmul.mubr.bf16.gmra.mrb[40].mxu0 %v7852_v60  ;;  %4176 = vmatprep.mubr.bf16.mxu1 %v7859_v62  ;;  %v7951_v60 = vld [vmem:[%s10484_s0 + $0xcc] ss:$72 sps:$4 sm:$0xff]   ;;  %v7958_v62 = vld [vmem:[%s10483_s1 + $0x810] ss:$8 sps:$4 sm:$0xff]  }
 0x16c   :  { %5118 = vmatprep.mubr.bf16.mxu0 %v7861_v63  ;;  %4342 = vmatpush1.bf16.msra.mxu1 %v7865_v0  ;;  %v7972_v63 = vld [vmem:[%s10483_s1 + $0x824] ss:$8 sps:$4 sm:$0xff]   ;;  %v7953_v0 = vld [vmem:[%s10484_s0 + $0x5b0] ss:$72 sps:$4 sm:$0xff]  }
 0x16d   :  { %4343 = vmatprep.subr.bf16.mxu1 %v7879_v1  ;;  %v7954_v1 = vld [vmem:[%s10484_s0 + $0xc8] ss:$72 sps:$4 sm:$0xff]  }
 0x170   :  { %4344 = vmatpush1.bf16.msra.mxu1 %v7877_v2  ;;  %v7961_v2 = vld [vmem:[%s10484_s0 + $0x644] ss:$72 sps:$4 sm:$0xff]  }
 0x171   :  { %4345 = vmatprep.subr.bf16.mxu1 %v7891_v3  ;;  %v7963_v3 = vld [vmem:[%s10484_s0 + $0x15c] ss:$72 sps:$4 sm:$0xff]  }
 0x172   :  { %4177 = vmatmul.mubr.bf16.gmra.mrb[8].mxu1 %v7863_v4  ;;  %v7970_v4 = vld [vmem:[%s10483_s1 + $0x820] ss:$8 sps:$4 sm:$0xff]  }
 0x173   :  { %5119 = vmatmul.mubr.bf16.gmra.mrb[44].mxu0 %v7864_v5  ;;  %4186 = vmatprep.mubr.bf16.mxu1 %v7871_v6  ;;  %v7984_v5 = vld [vmem:[%s10483_s1 + $0x834] ss:$8 sps:$4 sm:$0xff]   ;;  %v7982_v6 = vld [vmem:[%s10483_s1 + $0x830] ss:$8 sps:$4 sm:$0xff]  }
 0x174   :  { %5128 = vmatprep.mubr.bf16.mxu0 %v7873_v7  ;;  %4346 = vmatpush1.bf16.msra.mxu1 %v7889_v8  ;;  %v7996_v7 = vld [vmem:[%s10483_s1 + $0x844] ss:$8 sps:$4 sm:$0xff]   ;;  %v7965_v8 = vld [vmem:[%s10484_s0 + $0x640] ss:$72 sps:$4 sm:$0xff]  }
 0x175   :  { %4347 = vmatprep.subr.bf16.mxu1 %v7903_v9  ;;  %v7966_v9 = vld [vmem:[%s10484_s0 + $0x158] ss:$72 sps:$4 sm:$0xff]  }
 0x178   :  { %4348 = vmatpush1.bf16.msra.mxu1 %v7901_v10  ;;  %v7973_v10 = vld [vmem:[%s10484_s0 + $0x6d4] ss:$72 sps:$4 sm:$0xff]  }
 0x179   :  { %4349 = vmatprep.subr.bf16.mxu1 %v7915_v11  ;;  %v7975_v11 = vld [vmem:[%s10484_s0 + $0x1ec] ss:$72 sps:$4 sm:$0xff]  }
 0x17a   :  { %4187 = vmatmul.mubr.bf16.gmra.mrb[12].mxu1 %v7875_v12  ;;  %v7994_v12 = vld [vmem:[%s10483_s1 + $0x840] ss:$8 sps:$4 sm:$0xff]  }
 0x17b   :  { %5129 = vmatmul.mubr.bf16.gmra.mrb[48].mxu0 %v7876_v13  ;;  %4196 = vmatprep.mubr.bf16.mxu1 %v7883_v14  ;;  %v8012_v13 = vld [vmem:[%s10483_s1 + $0x854] ss:$8 sps:$4 sm:$0xff]   ;;  %v8010_v14 = vld [vmem:[%s10483_s1 + $0x850] ss:$8 sps:$4 sm:$0xff]  }
 0x17c   :  { %5138 = vmatprep.mubr.bf16.mxu0 %v7885_v15  ;;  %4350 = vmatpush1.bf16.msra.mxu1 %v7913_v16  ;;  %v8026_v15 = vld [vmem:[%s10483_s1 + $0x864] ss:$8 sps:$4 sm:$0xff]   ;;  %v7977_v16 = vld [vmem:[%s10484_s0 + $0x6d0] ss:$72 sps:$4 sm:$0xff]  }
 0x17d   :  { %4351 = vmatprep.subr.bf16.mxu1 %v7929_v17  ;;  %v7978_v17 = vld [vmem:[%s10484_s0 + $0x1e8] ss:$72 sps:$4 sm:$0xff]  }
 0x180   :  { %4352 = vmatpush1.bf16.msra.mxu1 %v7927_v18  ;;  %v7985_v18 = vld [vmem:[%s10484_s0 + $0x764] ss:$72 sps:$4 sm:$0xff]  }
 0x181   :  { %4353 = vmatprep.subr.bf16.mxu1 %v7945_v19  ;;  %v7987_v19 = vld [vmem:[%s10484_s0 + $0x27c] ss:$72 sps:$4 sm:$0xff]  }
 0x182   :  { %4197 = vmatmul.mubr.bf16.gmra.mrb[16].mxu1 %v7887_v20  ;;  %v8024_v20 = vld [vmem:[%s10483_s1 + $0x860] ss:$8 sps:$4 sm:$0xff]  }
 0x183   :  { %5139 = vmatmul.mubr.bf16.gmra.mrb[52].mxu0 %v7888_v21  ;;  %4206 = vmatprep.mubr.bf16.mxu1 %v7895_v22  ;;  %v8038_v21 = vld [vmem:[%s10483_s1 + $0x874] ss:$8 sps:$4 sm:$0xff]   ;;  %v8036_v22 = vld [vmem:[%s10483_s1 + $0x870] ss:$8 sps:$4 sm:$0xff]  }
 0x184   :  { %5148 = vmatprep.mubr.bf16.mxu0 %v7897_v23  ;;  %4354 = vmatpush1.bf16.msra.mxu1 %v7943_v24  ;;  %v8047_v23 = vld [vmem:[%s10483_s1 + $0x884] ss:$8 sps:$4 sm:$0xff]   ;;  %v7989_v24 = vld [vmem:[%s10484_s0 + $0x760] ss:$72 sps:$4 sm:$0xff]  }
 0x185   :  { %4355 = vmatprep.subr.bf16.mxu1 %v7957_v25  ;;  %v7990_v25 = vld [vmem:[%s10484_s0 + $0x278] ss:$72 sps:$4 sm:$0xff]  }
 0x188   :  { %4356 = vmatpush1.bf16.msra.mxu1 %v7955_v26  ;;  %v7997_v26 = vld [vmem:[%s10484_s0 + $0x7f4] ss:$72 sps:$4 sm:$0xff]  }
 0x189   :  { %4357 = vmatprep.subr.bf16.mxu1 %v7969_v27  ;;  %v7999_v27 = vld [vmem:[%s10484_s0 + $0x30c] ss:$72 sps:$4 sm:$0xff]  }
 0x18a   :  { %4207 = vmatmul.mubr.bf16.gmra.mrb[20].mxu1 %v7899_v28  ;;  %v8045_v28 = vld [vmem:[%s10483_s1 + $0x880] ss:$8 sps:$4 sm:$0xff]  }
 0x18b   :  { %5149 = vmatmul.mubr.bf16.gmra.mrb[56].mxu0 %v7900_v29  ;;  %4216 = vmatprep.mubr.bf16.mxu1 %v7904_v30  ;;  %v8056_v29 = vld [vmem:[%s10483_s1 + $0x894] ss:$8 sps:$4 sm:$0xff]   ;;  %v8054_v30 = vld [vmem:[%s10483_s1 + $0x890] ss:$8 sps:$4 sm:$0xff]  }
 0x18c   :  { %5158 = vmatprep.mubr.bf16.mxu0 %v7906_v31  ;;  %4358 = vmatpush1.bf16.msra.mxu1 %v7967_v32  ;;  %v8065_v31 = vld [vmem:[%s10483_s1 + $0x8a4] ss:$8 sps:$4 sm:$0xff]   ;;  %v8001_v32 = vld [vmem:[%s10484_s0 + $0x7f0] ss:$72 sps:$4 sm:$0xff]  }
 0x18d   :  { %4359 = vmatprep.subr.bf16.mxu1 %v7981_v33  ;;  %v8002_v33 = vld [vmem:[%s10484_s0 + $0x308] ss:$72 sps:$4 sm:$0xff]  }
 0x190   :  { %4360 = vmatpush1.bf16.msra.mxu1 %v7979_v34  ;;  %v8006_v34 = vld [vmem:[%s10484_s0 + $0x884] ss:$72 sps:$4 sm:$0xff]  }
 0x191   :  { %4361 = vmatprep.subr.bf16.mxu1 %v7993_v35  ;;  %v8008_v35 = vld [vmem:[%s10484_s0 + $0x39c] ss:$72 sps:$4 sm:$0xff]  }
 0x192   :  { %4217 = vmatmul.mubr.bf16.gmra.mrb[24].mxu1 %v7911_v36  ;;  %v8063_v36 = vld [vmem:[%s10483_s1 + $0x8a0] ss:$8 sps:$4 sm:$0xff]  }
 0x193   :  { %5159 = vmatmul.mubr.bf16.gmra.mrb[60].mxu0 %v7912_v37  ;;  %4226 = vmatprep.mubr.bf16.mxu1 %v7916_v38  ;;  %v8074_v37 = vld [vmem:[%s10483_s1 + $0x8b4] ss:$8 sps:$4 sm:$0xff]   ;;  %v8072_v38 = vld [vmem:[%s10483_s1 + $0x8b0] ss:$8 sps:$4 sm:$0xff]  }
 0x194   :  { %5168 = vmatprep.mubr.bf16.mxu0 %v7918_v39  ;;  %4362 = vmatpush1.bf16.msra.mxu1 %v7991_v40  ;;  %v8083_v39 = vld [vmem:[%s10483_s1 + $0x8c4] ss:$8 sps:$4 sm:$0xff]   ;;  %v8013_v40 = vld [vmem:[%s10484_s0 + $0x880] ss:$72 sps:$4 sm:$0xff]  }
 0x195   :  { %4363 = vmatprep.subr.bf16.mxu1 %v8005_v41  ;;  %v8014_v41 = vld [vmem:[%s10484_s0 + $0x398] ss:$72 sps:$4 sm:$0xff]  }
 0x198   :  { %4364 = vmatpush1.bf16.msra.mxu1 %v8003_v42  ;;  %v8018_v42 = vld [vmem:[%s10484_s0 + $0x914] ss:$72 sps:$4 sm:$0xff]  }
 0x199   :  { %4365 = vmatprep.subr.bf16.mxu1 %v8017_v43  ;;  %v8020_v43 = vld [vmem:[%s10484_s0 + $0x42c] ss:$72 sps:$4 sm:$0xff]  }
 0x19a   :  { %4227 = vmatmul.mubr.bf16.gmra.mrb[28].mxu1 %v7920_v44  ;;  %v8081_v44 = vld [vmem:[%s10483_s1 + $0x8c0] ss:$8 sps:$4 sm:$0xff]  }
 0x19b   :  { %5169 = vmatmul.mubr.bf16.gmra.mrb[64].mxu0 %v7921_v45  ;;  %4236 = vmatprep.mubr.bf16.mxu1 %v7925_v46  ;;  %v8096_v45 = vld [vmem:[%s10483_s1 + $0x8d4] ss:$8 sps:$4 sm:$0xff]   ;;  %v8094_v46 = vld [vmem:[%s10483_s1 + $0x8d0] ss:$8 sps:$4 sm:$0xff]  }
 0x19c   :  { %5178 = vmatprep.mubr.bf16.mxu0 %v7930_v47  ;;  %4366 = vmatpush1.bf16.msra.mxu1 %v8015_v48  ;;  %v8107_v47 = vld [vmem:[%s10483_s1 + $0x8e4] ss:$8 sps:$4 sm:$0xff]   ;;  %v8022_v48 = vld [vmem:[%s10484_s0 + $0x910] ss:$72 sps:$4 sm:$0xff]  }
 0x19d   :  { %4367 = vmatprep.subr.bf16.mxu1 %v8031_v49  ;;  %v8023_v49 = vld [vmem:[%s10484_s0 + $0x428] ss:$72 sps:$4 sm:$0xff]  }
 0x1a0   :  { %4368 = vmatpush1.bf16.msra.mxu1 %v8029_v50  ;;  %v8027_v50 = vld [vmem:[%s10484_s0 + $0x9a4] ss:$72 sps:$4 sm:$0xff]  }
 0x1a1   :  { %6627 = vmatprep.subr.bf16.mxu1 %v8225_v55  ;;  %v8034_v55 = vld [vmem:[%s10484_s0 + $0x9a0] ss:$72 sps:$4 sm:$0xff]  }
 0x1a2   :  { %4237 = vmatmul.mubr.bf16.gmra.mrb[32].mxu1 %v7932_v51  ;;  %v8032_v51 = vld [vmem:[%s10484_s0 + $0x4bc] ss:$72 sps:$4 sm:$0xff]  }
 0x1a3   :  { %5179 = vmatmul.mubr.bf16.gmra.mrb[68].mxu0 %v7933_v52  ;;  %4246 = vmatprep.mubr.bf16.mxu1 %v7937_v53  ;;  %v8105_v52 = vld [vmem:[%s10483_s1 + $0x8e0] ss:$8 sps:$4 sm:$0xff]   ;;  %v8116_v53 = vld [vmem:[%s10483_s1 + $0x8f4] ss:$8 sps:$4 sm:$0xff]  }
 0x1a4   :  { %5221 = vmatprep.mubr.bf16.mxu0 %v7941_v54  ;;  %v8114_v54 = vld [vmem:[%s10483_s1 + $0x8f0] ss:$8 sps:$4 sm:$0xff]  }
 0x1aa   :  { %4247 = vmatmul.mubr.bf16.gmra.mrb[36].mxu1 %v7942_v57  ;;  %v8041_v57 = vld [vmem:[%s10484_s0 + $0x1c] ss:$72 sps:$4 sm:$0xff]  }
 0x1ab   :  { %5222 = vmatmul.mubr.bf16.vlgmr.msra.gmra.mrb[0].mxu0 %v7939_v56  ;;  %4256 = vmatprep.mubr.bf16.mxu1 %v7949_v59  ;;  %v8035_v56 = vld [vmem:[%s10484_s0 + $0x4b8] ss:$72 sps:$4 sm:$0xff]  }
 0x1ac   :  { %5403 = vmatpush1.bf16.msra.mxu0 %v7946_v58  ;;  %5231 = vmatprep.mubr.bf16.mxu0 %v7951_v60  ;;  %v8042_v58 = vld [vmem:[%s10484_s0 + $0x54c] ss:$72 sps:$4 sm:$0xff]   ;;  %v8039_v59 = vld [vmem:[%s10484_s0 + $0x18] ss:$72 sps:$4 sm:$0xff]   ;;  %v8044_v60 = vld [vmem:[%s10484_s0 + $0x548] ss:$72 sps:$4 sm:$0xff]  }
 0x1ad   :  { %5404 = vmatprep.subr.bf16.mxu0 %v7960_v61  ;;  %v8048_v61 = vld [vmem:[%s10484_s0 + $0xac] ss:$72 sps:$4 sm:$0xff]  }
 0x1b0   :  { %5405 = vmatpush1.bf16.msra.mxu0 %v7958_v62  ;;  %v8050_v62 = vld [vmem:[%s10484_s0 + $0x5dc] ss:$72 sps:$4 sm:$0xff]  }
 0x1b1   :  { %5406 = vmatprep.subr.bf16.mxu0 %v7972_v63  ;;  %v8226_v63 = vld [vmem:[%s10483_s1 + $0x400] ss:$8 sps:$4 sm:$0xff]  }
 0x1b2   :  { %4257 = vmatmul.mubr.bf16.gmra.mrb[40].mxu1 %v7953_v0  ;;  %v8227_v0 = vld [vmem:[%s10483_s1 + $0x414] ss:$8 sps:$4 sm:$0xff]  }
 0x1b3   :  { %5232 = vmatmul.mubr.bf16.gmra.mrb[4].mxu0 %v7954_v1  ;;  %4266 = vmatprep.mubr.bf16.mxu1 %v7961_v2  ;;  %v8052_v1 = vld [vmem:[%s10484_s0 + $0xa8] ss:$72 sps:$4 sm:$0xff]   ;;  %v8053_v2 = vld [vmem:[%s10484_s0 + $0x5d8] ss:$72 sps:$4 sm:$0xff]  }
 0x1b4   :  { %5241 = vmatprep.mubr.bf16.mxu0 %v7963_v3  ;;  %5407 = vmatpush1.bf16.msra.mxu0 %v7970_v4  ;;  %v8228_v3 = vld [vmem:[%s10483_s1 + $0x410] ss:$8 sps:$4 sm:$0xff]   ;;  %v8057_v4 = vld [vmem:[%s10484_s0 + $0x13c] ss:$72 sps:$4 sm:$0xff]  }
 0x1b5   :  { %5408 = vmatprep.subr.bf16.mxu0 %v7984_v5  ;;  %v8059_v5 = vld [vmem:[%s10484_s0 + $0x66c] ss:$72 sps:$4 sm:$0xff]  }
 0x1b8   :  { %5409 = vmatpush1.bf16.msra.mxu0 %v7982_v6  ;;  %v8229_v6 = vld [vmem:[%s10483_s1 + $0x424] ss:$8 sps:$4 sm:$0xff]  }
 0x1b9   :  { %5410 = vmatprep.subr.bf16.mxu0 %v7996_v7  ;;  %v8230_v7 = vld [vmem:[%s10483_s1 + $0x420] ss:$8 sps:$4 sm:$0xff]  }
 0x1ba   :  { %4267 = vmatmul.mubr.bf16.gmra.mrb[44].mxu1 %v7965_v8  ;;  %v8231_v8 = vld [vmem:[%s10483_s1 + $0x434] ss:$8 sps:$4 sm:$0xff]  }
 0x1bb   :  { %5242 = vmatmul.mubr.bf16.gmra.mrb[8].mxu0 %v7966_v9  ;;  %4276 = vmatprep.mubr.bf16.mxu1 %v7973_v10  ;;  %v8061_v9 = vld [vmem:[%s10484_s0 + $0x138] ss:$72 sps:$4 sm:$0xff]   ;;  %v8062_v10 = vld [vmem:[%s10484_s0 + $0x668] ss:$72 sps:$4 sm:$0xff]  }
 0x1bc   :  { %5251 = vmatprep.mubr.bf16.mxu0 %v7975_v11  ;;  %5411 = vmatpush1.bf16.msra.mxu0 %v7994_v12  ;;  %v8066_v11 = vld [vmem:[%s10484_s0 + $0x1cc] ss:$72 sps:$4 sm:$0xff]   ;;  %v8068_v12 = vld [vmem:[%s10484_s0 + $0x6fc] ss:$72 sps:$4 sm:$0xff]  }
 0x1bd   :  { %5412 = vmatprep.subr.bf16.mxu0 %v8012_v13  ;;  %v8232_v13 = vld [vmem:[%s10483_s1 + $0x430] ss:$8 sps:$4 sm:$0xff]  }
 0x1c0   :  { %5413 = vmatpush1.bf16.msra.mxu0 %v8010_v14  ;;  %v8233_v14 = vld [vmem:[%s10483_s1 + $0x444] ss:$8 sps:$4 sm:$0xff]  }
 0x1c1   :  { %5414 = vmatprep.subr.bf16.mxu0 %v8026_v15  ;;  %v8234_v15 = vld [vmem:[%s10483_s1 + $0x440] ss:$8 sps:$4 sm:$0xff]  }
 0x1c2   :  { %4277 = vmatmul.mubr.bf16.gmra.mrb[48].mxu1 %v7977_v16  ;;  %v8235_v16 = vld [vmem:[%s10483_s1 + $0x454] ss:$8 sps:$4 sm:$0xff]  }
 0x1c3   :  { %5252 = vmatmul.mubr.bf16.gmra.mrb[12].mxu0 %v7978_v17  ;;  %4286 = vmatprep.mubr.bf16.mxu1 %v7985_v18  ;;  %v8070_v17 = vld [vmem:[%s10484_s0 + $0x1c8] ss:$72 sps:$4 sm:$0xff]   ;;  %v8071_v18 = vld [vmem:[%s10484_s0 + $0x6f8] ss:$72 sps:$4 sm:$0xff]  }
 0x1c4   :  { %5261 = vmatprep.mubr.bf16.mxu0 %v7987_v19  ;;  %5415 = vmatpush1.bf16.msra.mxu0 %v8024_v20  ;;  %v8075_v19 = vld [vmem:[%s10484_s0 + $0x25c] ss:$72 sps:$4 sm:$0xff]   ;;  %v8077_v20 = vld [vmem:[%s10484_s0 + $0x78c] ss:$72 sps:$4 sm:$0xff]  }
 0x1c5   :  { %5416 = vmatprep.subr.bf16.mxu0 %v8038_v21  ;;  %v8236_v21 = vld [vmem:[%s10483_s1 + $0x450] ss:$8 sps:$4 sm:$0xff]  }
 0x1c8   :  { %5417 = vmatpush1.bf16.msra.mxu0 %v8036_v22  ;;  %v8237_v22 = vld [vmem:[%s10483_s1 + $0x464] ss:$8 sps:$4 sm:$0xff]  }
 0x1c9   :  { %5418 = vmatprep.subr.bf16.mxu0 %v8047_v23  ;;  %v8238_v23 = vld [vmem:[%s10483_s1 + $0x460] ss:$8 sps:$4 sm:$0xff]  }
 0x1ca   :  { %4287 = vmatmul.mubr.bf16.gmra.mrb[52].mxu1 %v7989_v24  ;;  %v8239_v24 = vld [vmem:[%s10483_s1 + $0x474] ss:$8 sps:$4 sm:$0xff]  }
 0x1cb   :  { %5262 = vmatmul.mubr.bf16.gmra.mrb[16].mxu0 %v7990_v25  ;;  %4296 = vmatprep.mubr.bf16.mxu1 %v7997_v26  ;;  %v8079_v25 = vld [vmem:[%s10484_s0 + $0x258] ss:$72 sps:$4 sm:$0xff]   ;;  %v8080_v26 = vld [vmem:[%s10484_s0 + $0x788] ss:$72 sps:$4 sm:$0xff]  }
 0x1cc   :  { %5271 = vmatprep.mubr.bf16.mxu0 %v7999_v27  ;;  %5419 = vmatpush1.bf16.msra.mxu0 %v8045_v28  ;;  %v8084_v27 = vld [vmem:[%s10484_s0 + $0x2ec] ss:$72 sps:$4 sm:$0xff]   ;;  %v8086_v28 = vld [vmem:[%s10484_s0 + $0x81c] ss:$72 sps:$4 sm:$0xff]  }
 0x1cd   :  { %5420 = vmatprep.subr.bf16.mxu0 %v8056_v29  ;;  %v8240_v29 = vld [vmem:[%s10483_s1 + $0x470] ss:$8 sps:$4 sm:$0xff]  }
 0x1d0   :  { %5421 = vmatpush1.bf16.msra.mxu0 %v8054_v30  ;;  %v8241_v30 = vld [vmem:[%s10483_s1 + $0x484] ss:$8 sps:$4 sm:$0xff]  }
 0x1d1   :  { %5422 = vmatprep.subr.bf16.mxu0 %v8065_v31  ;;  %v8242_v31 = vld [vmem:[%s10483_s1 + $0x480] ss:$8 sps:$4 sm:$0xff]  }
 0x1d2   :  { %4297 = vmatmul.mubr.bf16.gmra.mrb[56].mxu1 %v8001_v32  ;;  %v8243_v32 = vld [vmem:[%s10483_s1 + $0x494] ss:$8 sps:$4 sm:$0xff]  }
 0x1d3   :  { %5272 = vmatmul.mubr.bf16.gmra.mrb[20].mxu0 %v8002_v33  ;;  %4306 = vmatprep.mubr.bf16.mxu1 %v8006_v34  ;;  %v8088_v33 = vld [vmem:[%s10484_s0 + $0x2e8] ss:$72 sps:$4 sm:$0xff]   ;;  %v8089_v34 = vld [vmem:[%s10484_s0 + $0x818] ss:$72 sps:$4 sm:$0xff]  }
 0x1d4   :  { %5281 = vmatprep.mubr.bf16.mxu0 %v8008_v35  ;;  %5423 = vmatpush1.bf16.msra.mxu0 %v8063_v36  ;;  %v8090_v35 = vld [vmem:[%s10484_s0 + $0x37c] ss:$72 sps:$4 sm:$0xff]   ;;  %v8092_v36 = vld [vmem:[%s10484_s0 + $0x8ac] ss:$72 sps:$4 sm:$0xff]  }
 0x1d5   :  { %5424 = vmatprep.subr.bf16.mxu0 %v8074_v37  ;;  %v8244_v37 = vld [vmem:[%s10483_s1 + $0x490] ss:$8 sps:$4 sm:$0xff]  }
 0x1d8   :  { %5425 = vmatpush1.bf16.msra.mxu0 %v8072_v38  ;;  %v8245_v38 = vld [vmem:[%s10483_s1 + $0x4a4] ss:$8 sps:$4 sm:$0xff]  }
 0x1d9   :  { %5426 = vmatprep.subr.bf16.mxu0 %v8083_v39  ;;  %v8246_v39 = vld [vmem:[%s10483_s1 + $0x4a0] ss:$8 sps:$4 sm:$0xff]  }
 0x1da   :  { %4307 = vmatmul.mubr.bf16.gmra.mrb[60].mxu1 %v8013_v40  ;;  %v8247_v40 = vld [vmem:[%s10483_s1 + $0x4b4] ss:$8 sps:$4 sm:$0xff]  }
 0x1db   :  { %5282 = vmatmul.mubr.bf16.gmra.mrb[24].mxu0 %v8014_v41  ;;  %4316 = vmatprep.mubr.bf16.mxu1 %v8018_v42  ;;  %v8097_v41 = vld [vmem:[%s10484_s0 + $0x378] ss:$72 sps:$4 sm:$0xff]   ;;  %v8098_v42 = vld [vmem:[%s10484_s0 + $0x8a8] ss:$72 sps:$4 sm:$0xff]  }
 0x1dc   :  { %5291 = vmatprep.mubr.bf16.mxu0 %v8020_v43  ;;  %5427 = vmatpush1.bf16.msra.mxu0 %v8081_v44  ;;  %v8099_v43 = vld [vmem:[%s10484_s0 + $0x40c] ss:$72 sps:$4 sm:$0xff]   ;;  %v8101_v44 = vld [vmem:[%s10484_s0 + $0x93c] ss:$72 sps:$4 sm:$0xff]  }
 0x1dd   :  { %5428 = vmatprep.subr.bf16.mxu0 %v8096_v45  ;;  %v8248_v45 = vld [vmem:[%s10483_s1 + $0x4b0] ss:$8 sps:$4 sm:$0xff]  }
 0x1e0   :  { %5429 = vmatpush1.bf16.msra.mxu0 %v8094_v46  ;;  %v8249_v46 = vld [vmem:[%s10483_s1 + $0x4c4] ss:$8 sps:$4 sm:$0xff]  }
 0x1e1   :  { %5430 = vmatprep.subr.bf16.mxu0 %v8107_v47  ;;  %v8250_v47 = vld [vmem:[%s10483_s1 + $0x4c0] ss:$8 sps:$4 sm:$0xff]  }
 0x1e2   :  { %4317 = vmatmul.mubr.bf16.gmra.mrb[64].mxu1 %v8022_v48  ;;  %v8251_v48 = vld [vmem:[%s10483_s1 + $0x4d4] ss:$8 sps:$4 sm:$0xff]  }
 0x1e3   :  { %5292 = vmatmul.mubr.bf16.gmra.mrb[28].mxu0 %v8023_v49  ;;  %4326 = vmatprep.mubr.bf16.mxu1 %v8027_v50  ;;  %v8103_v49 = vld [vmem:[%s10484_s0 + $0x408] ss:$72 sps:$4 sm:$0xff]   ;;  %v8104_v50 = vld [vmem:[%s10484_s0 + $0x938] ss:$72 sps:$4 sm:$0xff]  }
 0x1e4   :  { %5301 = vmatprep.mubr.bf16.mxu0 %v8032_v51  ;;  %5431 = vmatpush1.bf16.msra.mxu0 %v8105_v52  ;;  %v8108_v51 = vld [vmem:[%s10484_s0 + $0x49c] ss:$72 sps:$4 sm:$0xff]   ;;  %v8110_v52 = vld [vmem:[%s10484_s0 + $0x9cc] ss:$72 sps:$4 sm:$0xff]  }
 0x1e5   :  { %5432 = vmatprep.subr.bf16.mxu0 %v8116_v53  ;;  %v8252_v53 = vld [vmem:[%s10483_s1 + $0x4d0] ss:$8 sps:$4 sm:$0xff]  }
 0x1e8   :  { %5433 = vmatpush1.bf16.msra.mxu0 %v8114_v54  ;;  %v8253_v54 = vld [vmem:[%s10483_s1 + $0x4e4] ss:$8 sps:$4 sm:$0xff]  }
 0x1ea   :  { %4327 = vmatmul.mubr.bf16.gmra.mrb[68].mxu1 %v8034_v55  ;;  %v8254_v55 = vld [vmem:[%s10483_s1 + $0x4e0] ss:$8 sps:$4 sm:$0xff]  }
 0x1eb   :  { %5302 = vmatmul.mubr.bf16.gmra.mrb[32].mxu0 %v8035_v56  ;;  %4369 = vmatprep.mubr.bf16.mxu1 %v8041_v57  ;;  %v8255_v56 = vld [vmem:[%s10483_s1 + $0x4f4] ss:$8 sps:$4 sm:$0xff]   ;;  %v8112_v57 = vld [vmem:[%s10484_s0 + $0x498] ss:$72 sps:$4 sm:$0xff]  }
 0x1ec   :  { %5311 = vmatprep.mubr.bf16.mxu0 %v8042_v58  ;;  %v8113_v58 = vld [vmem:[%s10484_s0 + $0x9c8] ss:$72 sps:$4 sm:$0xff]  }
 0x1f2   :  { %4370 = vmatmul.mubr.bf16.vlgmr.msra.gmra.mrb[0].mxu1 %v8039_v59  ;;  %v8117_v59 = vld [vmem:[%s10484_s0 + $0x52c] ss:$72 sps:$4 sm:$0xff]  }
 0x1f3   :  { %5312 = vmatmul.mubr.bf16.gmra.mrb[36].mxu0 %v8044_v60  ;;  %6643 = vmatpush1.bf16.msra.mxu1 %v8226_v63  ;;  %v8121_v60 = vld [vmem:[%s10484_s0 + $0x44] ss:$72 sps:$4 sm:$0xff]   ;;  %v8122_v63 = vld [vmem:[%s10484_s0 + $0x528] ss:$72 sps:$4 sm:$0xff]  }
 0x1f4   :  { %4379 = vmatprep.mubr.bf16.mxu1 %v8048_v61  ;;  %5321 = vmatprep.mubr.bf16.mxu0 %v8050_v62  ;;  %v8256_v61 = vld [vmem:[%s10483_s1 + $0x4f0] ss:$8 sps:$4 sm:$0xff]   ;;  %v8119_v62 = vld [vmem:[%s10484_s0 + $0x40] ss:$72 sps:$4 sm:$0xff]  }
 0x1f5   :  { %6628 = vmatprep.subr.bf16.mxu1 %v8227_v0  ;;  %v8123_v0 = vld [vmem:[%s10484_s0 + $0x5bc] ss:$72 sps:$4 sm:$0xff]  }
 0x1f7   :  { %6644 = vmatpush1.bf16.msra.mxu1 %v8228_v3  ;;  %v8128_v3 = vld [vmem:[%s10484_s0 + $0xd0] ss:$72 sps:$4 sm:$0xff]  }
 0x1f8   :  { %6629 = vmatprep.subr.bf16.mxu1 %v8229_v6  ;;  %v8133_v6 = vld [vmem:[%s10484_s0 + $0x648] ss:$72 sps:$4 sm:$0xff]  }
 0x1fa   :  { %4380 = vmatmul.mubr.bf16.gmra.mrb[4].mxu1 %v8052_v1  ;;  %v8125_v1 = vld [vmem:[%s10484_s0 + $0xd4] ss:$72 sps:$4 sm:$0xff]  }
 0x1fb   :  { %5322 = vmatmul.mubr.bf16.gmra.mrb[40].mxu0 %v8053_v2  ;;  %4389 = vmatprep.mubr.bf16.mxu1 %v8057_v4  ;;  %v8127_v2 = vld [vmem:[%s10484_s0 + $0x5b8] ss:$72 sps:$4 sm:$0xff]   ;;  %v8129_v4 = vld [vmem:[%s10484_s0 + $0x64c] ss:$72 sps:$4 sm:$0xff]  }
 0x1fc   :  { %5331 = vmatprep.mubr.bf16.mxu0 %v8059_v5  ;;  %6645 = vmatpush1.bf16.msra.mxu1 %v8230_v7  ;;  %v8131_v5 = vld [vmem:[%s10484_s0 + $0x164] ss:$72 sps:$4 sm:$0xff]   ;;  %v8134_v7 = vld [vmem:[%s10484_s0 + $0x160] ss:$72 sps:$4 sm:$0xff]  }
 0x1fd   :  { %6630 = vmatprep.subr.bf16.mxu1 %v8231_v8  ;;  %v8135_v8 = vld [vmem:[%s10484_s0 + $0x6dc] ss:$72 sps:$4 sm:$0xff]  }
 0x200   :  { %6646 = vmatpush1.bf16.msra.mxu1 %v8232_v13  ;;  %v8143_v13 = vld [vmem:[%s10484_s0 + $0x284] ss:$72 sps:$4 sm:$0xff]  }
 0x201   :  { %6631 = vmatprep.subr.bf16.mxu1 %v8233_v14  ;;  %v8145_v14 = vld [vmem:[%s10484_s0 + $0x768] ss:$72 sps:$4 sm:$0xff]  }
 0x202   :  { %4390 = vmatmul.mubr.bf16.gmra.mrb[8].mxu1 %v8061_v9  ;;  %v8137_v9 = vld [vmem:[%s10484_s0 + $0x1f4] ss:$72 sps:$4 sm:$0xff]  }
 0x203   :  { %5332 = vmatmul.mubr.bf16.gmra.mrb[44].mxu0 %v8062_v10  ;;  %4399 = vmatprep.mubr.bf16.mxu1 %v8066_v11  ;;  %v8139_v10 = vld [vmem:[%s10484_s0 + $0x6d8] ss:$72 sps:$4 sm:$0xff]  }
 0x204   :  { %5341 = vmatprep.mubr.bf16.mxu0 %v8068_v12  ;;  %6647 = vmatpush1.bf16.msra.mxu1 %v8234_v15  ;;  %v8140_v11 = vld [vmem:[%s10484_s0 + $0x1f0] ss:$72 sps:$4 sm:$0xff]   ;;  %v8141_v12 = vld [vmem:[%s10484_s0 + $0x76c] ss:$72 sps:$4 sm:$0xff]   ;;  %v8146_v15 = vld [vmem:[%s10484_s0 + $0x280] ss:$72 sps:$4 sm:$0xff]  }
 0x205   :  { %6632 = vmatprep.subr.bf16.mxu1 %v8235_v16  ;;  %v8147_v16 = vld [vmem:[%s10484_s0 + $0x7fc] ss:$72 sps:$4 sm:$0xff]  }
 0x208   :  { %6648 = vmatpush1.bf16.msra.mxu1 %v8236_v21  ;;  %v8155_v21 = vld [vmem:[%s10484_s0 + $0x3a4] ss:$72 sps:$4 sm:$0xff]  }
 0x209   :  { %6633 = vmatprep.subr.bf16.mxu1 %v8237_v22  ;;  %v8157_v22 = vld [vmem:[%s10484_s0 + $0x888] ss:$72 sps:$4 sm:$0xff]  }
 0x20a   :  { %4400 = vmatmul.mubr.bf16.gmra.mrb[12].mxu1 %v8070_v17  ;;  %v8149_v17 = vld [vmem:[%s10484_s0 + $0x314] ss:$72 sps:$4 sm:$0xff]  }
 0x20b   :  { %5342 = vmatmul.mubr.bf16.gmra.mrb[48].mxu0 %v8071_v18  ;;  %4409 = vmatprep.mubr.bf16.mxu1 %v8075_v19  ;;  %v8151_v18 = vld [vmem:[%s10484_s0 + $0x7f8] ss:$72 sps:$4 sm:$0xff]  }
 0x20c   :  { %5351 = vmatprep.mubr.bf16.mxu0 %v8077_v20  ;;  %6649 = vmatpush1.bf16.msra.mxu1 %v8238_v23  ;;  %v8152_v19 = vld [vmem:[%s10484_s0 + $0x310] ss:$72 sps:$4 sm:$0xff]   ;;  %v8153_v20 = vld [vmem:[%s10484_s0 + $0x88c] ss:$72 sps:$4 sm:$0xff]   ;;  %v8158_v23 = vld [vmem:[%s10484_s0 + $0x3a0] ss:$72 sps:$4 sm:$0xff]  }
 0x20d   :  { %6634 = vmatprep.subr.bf16.mxu1 %v8239_v24  ;;  %v8159_v24 = vld [vmem:[%s10484_s0 + $0x91c] ss:$72 sps:$4 sm:$0xff]  }
 0x210   :  { %6650 = vmatpush1.bf16.msra.mxu1 %v8240_v29  ;;  %v8167_v29 = vld [vmem:[%s10484_s0 + $0x4c4] ss:$72 sps:$4 sm:$0xff]  }
 0x211   :  { %6635 = vmatprep.subr.bf16.mxu1 %v8241_v30  ;;  %v8169_v30 = vld [vmem:[%s10484_s0 + $0x9a8] ss:$72 sps:$4 sm:$0xff]  }
 0x212   :  { %4410 = vmatmul.mubr.bf16.gmra.mrb[16].mxu1 %v8079_v25  ;;  %v8161_v25 = vld [vmem:[%s10484_s0 + $0x434] ss:$72 sps:$4 sm:$0xff]  }
 0x213   :  { %5352 = vmatmul.mubr.bf16.gmra.mrb[52].mxu0 %v8080_v26  ;;  %4419 = vmatprep.mubr.bf16.mxu1 %v8084_v27  ;;  %v8163_v26 = vld [vmem:[%s10484_s0 + $0x918] ss:$72 sps:$4 sm:$0xff]  }
 0x214   :  { %5361 = vmatprep.mubr.bf16.mxu0 %v8086_v28  ;;  %6651 = vmatpush1.bf16.msra.mxu1 %v8242_v31  ;;  %v8164_v27 = vld [vmem:[%s10484_s0 + $0x430] ss:$72 sps:$4 sm:$0xff]   ;;  %v8165_v28 = vld [vmem:[%s10484_s0 + $0x9ac] ss:$72 sps:$4 sm:$0xff]   ;;  %v8170_v31 = vld [vmem:[%s10484_s0 + $0x4c0] ss:$72 sps:$4 sm:$0xff]  }
 0x215   :  { %6636 = vmatprep.subr.bf16.mxu1 %v8243_v32  ;;  %v8173_v32 = vld [vmem:[%s10484_s0 + $0x534] ss:$72 sps:$4 sm:$0xff]  }
 0x218   :  { %6652 = vmatpush1.bf16.msra.mxu1 %v8244_v37  ;;  %v8179_v37 = vld [vmem:[%s10484_s0 + $0x5e4] ss:$72 sps:$4 sm:$0xff]  }
 0x219   :  { %6637 = vmatprep.subr.bf16.mxu1 %v8245_v38  ;;  %v8181_v38 = vld [vmem:[%s10484_s0 + $0x5c0] ss:$72 sps:$4 sm:$0xff]  }
 0x21a   :  { %4420 = vmatmul.mubr.bf16.gmra.mrb[20].mxu1 %v8088_v33  ;;  %v8174_v33 = vld [vmem:[%s10484_s0 + $0x554] ss:$72 sps:$4 sm:$0xff]  }
 0x21b   :  { %5362 = vmatmul.mubr.bf16.gmra.mrb[56].mxu0 %v8089_v34  ;;  %4429 = vmatprep.mubr.bf16.mxu1 %v8090_v35  ;;  %v8171_v34 = vld [vmem:[%s10484_s0 + $0x530] ss:$72 sps:$4 sm:$0xff]  }
 0x21c   :  { %5371 = vmatprep.mubr.bf16.mxu0 %v8092_v36  ;;  %6653 = vmatpush1.bf16.msra.mxu1 %v8246_v39  ;;  %v8176_v35 = vld [vmem:[%s10484_s0 + $0x550] ss:$72 sps:$4 sm:$0xff]   ;;  %v8177_v36 = vld [vmem:[%s10484_s0 + $0x5c4] ss:$72 sps:$4 sm:$0xff]   ;;  %v8182_v39 = vld [vmem:[%s10484_s0 + $0x5e0] ss:$72 sps:$4 sm:$0xff]  }
 0x21d   :  { %6638 = vmatprep.subr.bf16.mxu1 %v8247_v40  ;;  %v8183_v40 = vld [vmem:[%s10484_s0 + $0x654] ss:$72 sps:$4 sm:$0xff]  }
 0x220   :  { %6654 = vmatpush1.bf16.msra.mxu1 %v8248_v45  ;;  %v8191_v45 = vld [vmem:[%s10484_s0 + $0x704] ss:$72 sps:$4 sm:$0xff]  }
 0x221   :  { %6639 = vmatprep.subr.bf16.mxu1 %v8249_v46  ;;  %v8193_v46 = vld [vmem:[%s10484_s0 + $0x6e0] ss:$72 sps:$4 sm:$0xff]  }
 0x222   :  { %4430 = vmatmul.mubr.bf16.gmra.mrb[24].mxu1 %v8097_v41  ;;  %v8185_v41 = vld [vmem:[%s10484_s0 + $0x674] ss:$72 sps:$4 sm:$0xff]  }
 0x223   :  { %5372 = vmatmul.mubr.bf16.gmra.mrb[60].mxu0 %v8098_v42  ;;  %4439 = vmatprep.mubr.bf16.mxu1 %v8099_v43  ;;  %v8187_v42 = vld [vmem:[%s10484_s0 + $0x650] ss:$72 sps:$4 sm:$0xff]  }
 0x224   :  { %5381 = vmatprep.mubr.bf16.mxu0 %v8101_v44  ;;  %6655 = vmatpush1.bf16.msra.mxu1 %v8250_v47  ;;  %v8188_v43 = vld [vmem:[%s10484_s0 + $0x670] ss:$72 sps:$4 sm:$0xff]   ;;  %v8189_v44 = vld [vmem:[%s10484_s0 + $0x6e4] ss:$72 sps:$4 sm:$0xff]   ;;  %v8194_v47 = vld [vmem:[%s10484_s0 + $0x700] ss:$72 sps:$4 sm:$0xff]  }
 0x225   :  { %6640 = vmatprep.subr.bf16.mxu1 %v8251_v48  ;;  %v8195_v48 = vld [vmem:[%s10484_s0 + $0x774] ss:$72 sps:$4 sm:$0xff]  }
 0x228   :  { %6656 = vmatpush1.bf16.msra.mxu1 %v8252_v53  ;;  %v8203_v53 = vld [vmem:[%s10484_s0 + $0x824] ss:$72 sps:$4 sm:$0xff]  }
 0x229   :  { %6641 = vmatprep.subr.bf16.mxu1 %v8253_v54  ;;  %v8205_v54 = vld [vmem:[%s10484_s0 + $0x800] ss:$72 sps:$4 sm:$0xff]  }
 0x22a   :  { %4440 = vmatmul.mubr.bf16.gmra.mrb[28].mxu1 %v8103_v49  ;;  %v8197_v49 = vld [vmem:[%s10484_s0 + $0x794] ss:$72 sps:$4 sm:$0xff]  }
 0x22b   :  { %5382 = vmatmul.mubr.bf16.gmra.mrb[64].mxu0 %v8104_v50  ;;  %4449 = vmatprep.mubr.bf16.mxu1 %v8108_v51  ;;  %v8199_v50 = vld [vmem:[%s10484_s0 + $0x770] ss:$72 sps:$4 sm:$0xff]  }
 0x22c   :  { %5391 = vmatprep.mubr.bf16.mxu0 %v8110_v52  ;;  %6657 = vmatpush1.bf16.msra.mxu1 %v8254_v55  ;;  %v8200_v51 = vld [vmem:[%s10484_s0 + $0x790] ss:$72 sps:$4 sm:$0xff]   ;;  %v8201_v52 = vld [vmem:[%s10484_s0 + $0x804] ss:$72 sps:$4 sm:$0xff]   ;;  %v8206_v55 = vld [vmem:[%s10484_s0 + $0x820] ss:$72 sps:$4 sm:$0xff]  }
 0x22d   :  { %6642 = vmatprep.subr.bf16.mxu1 %v8255_v56  ;;  %v8207_v56 = vld [vmem:[%s10484_s0 + $0x894] ss:$72 sps:$4 sm:$0xff]  }
 0x230   :  { %6658 = vmatpush1.bf16.msra.mxu1 %v8256_v61  ;;  %v8215_v61 = vld [vmem:[%s10484_s0 + $0x944] ss:$72 sps:$4 sm:$0xff]  }
 0x232   :  { %4450 = vmatmul.mubr.bf16.gmra.mrb[32].mxu1 %v8112_v57  ;;  %v8209_v57 = vld [vmem:[%s10484_s0 + $0x8b4] ss:$72 sps:$4 sm:$0xff]  }
 0x233   :  { %5392 = vmatmul.mubr.bf16.gmra.mrb[68].mxu0 %v8113_v58  ;;  %4459 = vmatprep.mubr.bf16.mxu1 %v8117_v59  ;;  %v8211_v58 = vld [vmem:[%s10484_s0 + $0x890] ss:$72 sps:$4 sm:$0xff]  }
 0x234   :  { %5434 = vmatprep.mubr.bf16.mxu0 %v8121_v60  ;;  %v8212_v59 = vld [vmem:[%s10484_s0 + $0x8b0] ss:$72 sps:$4 sm:$0xff]   ;;  %v8213_v60 = vld [vmem:[%s10484_s0 + $0x924] ss:$72 sps:$4 sm:$0xff]  }
 0x23a   :  { %4460 = vmatmul.mubr.bf16.gmra.mrb[36].mxu1 %v8122_v63  ;;  %v8218_v63 = vld [vmem:[%s10484_s0 + $0x940] ss:$72 sps:$4 sm:$0xff]  }
 0x23b   :  { %5435 = vmatmul.mubr.bf16.vlgmr.msra.gmra.mrb[0].mxu0 %v8119_v62  ;;  %4469 = vmatprep.mubr.bf16.mxu1 %v8123_v0  ;;  %v8217_v62 = vld [vmem:[%s10484_s0 + $0x920] ss:$72 sps:$4 sm:$0xff]   ;;  %v8219_v0 = vld [vmem:[%s10484_s0 + $0x9b4] ss:$72 sps:$4 sm:$0xff]  }
 0x23c   :  { %5444 = vmatprep.mubr.bf16.mxu0 %v8125_v1  ;;  %v8221_v1 = vld [vmem:[%s10484_s0 + $0x9d4] ss:$72 sps:$4 sm:$0xff]  }
 0x242   :  { %4470 = vmatmul.mubr.bf16.gmra.mrb[40].mxu1 %v8127_v2  ;;  %v8223_v2 = vld [vmem:[%s10484_s0 + $0x9b0] ss:$72 sps:$4 sm:$0xff]  }
 0x243   :  { %5445 = vmatmul.mubr.bf16.gmra.mrb[4].mxu0 %v8128_v3  ;;  %4479 = vmatprep.mubr.bf16.mxu1 %v8129_v4  ;;  %v8224_v3 = vld [vmem:[%s10484_s0 + $0x9d0] ss:$72 sps:$4 sm:$0xff]  }
 0x244   :  { %5454 = vmatprep.mubr.bf16.mxu0 %v8131_v5 }
 0x24a   :  { %4480 = vmatmul.mubr.bf16.gmra.mrb[44].mxu1 %v8133_v6 }
 0x24b   :  { %5455 = vmatmul.mubr.bf16.gmra.mrb[8].mxu0 %v8134_v7  ;;  %4489 = vmatprep.mubr.bf16.mxu1 %v8135_v8 }
 0x24c   :  { %5464 = vmatprep.mubr.bf16.mxu0 %v8137_v9 }
 0x252   :  { %4490 = vmatmul.mubr.bf16.gmra.mrb[48].mxu1 %v8139_v10 }
 0x253   :  { %5465 = vmatmul.mubr.bf16.gmra.mrb[12].mxu0 %v8140_v11  ;;  %4499 = vmatprep.mubr.bf16.mxu1 %v8141_v12 }
 0x254   :  { %5474 = vmatprep.mubr.bf16.mxu0 %v8143_v13 }
 0x25a   :  { %4500 = vmatmul.mubr.bf16.gmra.mrb[52].mxu1 %v8145_v14 }
 0x25b   :  { %5475 = vmatmul.mubr.bf16.gmra.mrb[16].mxu0 %v8146_v15  ;;  %4509 = vmatprep.mubr.bf16.mxu1 %v8147_v16 }
 0x25c   :  { %5484 = vmatprep.mubr.bf16.mxu0 %v8149_v17 }
 0x262   :  { %4510 = vmatmul.mubr.bf16.gmra.mrb[56].mxu1 %v8151_v18 }
 0x263   :  { %5485 = vmatmul.mubr.bf16.gmra.mrb[20].mxu0 %v8152_v19  ;;  %4519 = vmatprep.mubr.bf16.mxu1 %v8153_v20 }
 0x264   :  { %5494 = vmatprep.mubr.bf16.mxu0 %v8155_v21 }
 0x26a   :  { %4520 = vmatmul.mubr.bf16.gmra.mrb[60].mxu1 %v8157_v22 }
 0x26b   :  { %5495 = vmatmul.mubr.bf16.gmra.mrb[24].mxu0 %v8158_v23  ;;  %4529 = vmatprep.mubr.bf16.mxu1 %v8159_v24 }
 0x26c   :  { %5504 = vmatprep.mubr.bf16.mxu0 %v8161_v25 }
 0x272   :  { %4530 = vmatmul.mubr.bf16.gmra.mrb[64].mxu1 %v8163_v26 }
 0x273   :  { %5505 = vmatmul.mubr.bf16.gmra.mrb[28].mxu0 %v8164_v27  ;;  %4539 = vmatprep.mubr.bf16.mxu1 %v8165_v28 }
 0x274   :  { %5514 = vmatprep.mubr.bf16.mxu0 %v8167_v29 }
 0x27a   :  { %4540 = vmatmul.mubr.bf16.gmra.mrb[68].mxu1 %v8169_v30 }
 0x27b   :  { %5515 = vmatmul.mubr.bf16.gmra.mrb[32].mxu0 %v8170_v31  ;;  %4672 = vmatprep.mubr.bf16.mxu1 %v8173_v32  ;;  %v628_v32 = vlaneseq }
 0x27c   :  { %5524 = vmatprep.mubr.bf16.mxu0 %v8174_v33 }
 0x282   :  { %4673 = vmatmul.mubr.bf16.vlgmr.msra.gmra.mrb[36].mxu1 %v8171_v34 }
 0x283   :  { %5525 = vmatmul.mubr.bf16.gmra.mrb[36].mxu0 %v8176_v35  ;;  %4682 = vmatprep.mubr.bf16.mxu1 %v8177_v36  ;;  %v629_v36 = vshrl.u32 %v628_v32, 7 }
 0x284   :  { %5534 = vmatprep.mubr.bf16.mxu0 %v8179_v37 }
 0x28a   :  { %4683 = vmatmul.mubr.bf16.gmra.mrb[40].mxu1 %v8181_v38  ;;  %v630_v38 = vsub.s32 0, %v629_v36 }
 0x28b   :  { %5535 = vmatmul.mubr.bf16.gmra.mrb[40].mxu0 %v8182_v39  ;;  %4692 = vmatprep.mubr.bf16.mxu1 %v8183_v40  ;;  %v626_v39 = vld [vmem:[%s10485_s2] sm:$0x3]  ;;  %v634_v40 = vsub.s32 1, %v629_v36 }
 0x28c   :  { %5544 = vmatprep.mubr.bf16.mxu0 %v8185_v41 }
 0x292   :  { %4693 = vmatmul.mubr.bf16.gmra.mrb[44].mxu1 %v8187_v42 }
 0x293   :  { %5545 = vmatmul.mubr.bf16.gmra.mrb[44].mxu0 %v8188_v43  ;;  %4702 = vmatprep.mubr.bf16.mxu1 %v8189_v44  ;;  %v10268_v44 = vrot.slane %v626_v39, %v630_v38 }
 0x294   :  { %5554 = vmatprep.mubr.bf16.mxu0 %v8191_v45 }
 0x29a   :  { %4703 = vmatmul.mubr.bf16.gmra.mrb[48].mxu1 %v8193_v46  ;;  %v10272_v46 = vrot.slane %v626_v39, %v634_v40 }
 0x29b   :  { %5555 = vmatmul.mubr.bf16.gmra.mrb[48].mxu0 %v8194_v47  ;;  %4712 = vmatprep.mubr.bf16.mxu1 %v8195_v48 }
 0x29c   :  { %5564 = vmatprep.mubr.bf16.mxu0 %v8197_v49 }
 0x2a2   :  { %4713 = vmatmul.mubr.bf16.gmra.mrb[52].mxu1 %v8199_v50 }
 0x2a3   :  { %5565 = vmatmul.mubr.bf16.gmra.mrb[52].mxu0 %v8200_v51  ;;  %4722 = vmatprep.mubr.bf16.mxu1 %v8201_v52 }
 0x2a4   :  { %5574 = vmatprep.mubr.bf16.mxu0 %v8203_v53 }
 0x2aa   :  { %4723 = vmatmul.mubr.bf16.gmra.mrb[56].mxu1 %v8205_v54 }
 0x2ab   :  { %5575 = vmatmul.mubr.bf16.gmra.mrb[56].mxu0 %v8206_v55  ;;  %4732 = vmatprep.mubr.bf16.mxu1 %v8207_v56 }
 0x2ac   :  { %5584 = vmatprep.mubr.bf16.mxu0 %v8209_v57 }
 0x2b2   :  { %4733 = vmatmul.mubr.bf16.gmra.mrb[60].mxu1 %v8211_v58 }
 0x2b3   :  { %5585 = vmatmul.mubr.bf16.gmra.mrb[60].mxu0 %v8212_v59  ;;  %4742 = vmatprep.mubr.bf16.mxu1 %v8213_v60 }
 0x2b4   :  { %5594 = vmatprep.mubr.bf16.mxu0 %v8215_v61 }
 0x2ba   :  { %4743 = vmatmul.mubr.bf16.gmra.mrb[64].mxu1 %v8217_v62 }
 0x2bb   :  { %5595 = vmatmul.mubr.bf16.gmra.mrb[64].mxu0 %v8218_v63  ;;  %4752 = vmatprep.mubr.bf16.mxu1 %v8219_v0 }
 0x2bc   :  { %5604 = vmatprep.mubr.bf16.mxu0 %v8221_v1 }
 0x2c2   :  { %4753 = vmatmul.mubr.bf16.gmra.mrb[68].mxu1 %v8223_v2 }
 0x2c3   :  { %5605 = vmatmul.mubr.bf16.gmra.mrb[68].mxu0 %v8224_v3 }
 0x2c5   :  { %v4371_v4 = vpop.f32.mrb[0].mxu1 }
 0x2c6   :  { %v4373_v5 = vpop.f32.mrb[1].mxu1  ;;  %v6659_v47 = vadd.f32 %v4371_v4, %v10268_v44 }
 0x2c7   :  { %v4375_v6 = vpop.f32.mrb[2].mxu1  ;;  %v6661_v48 = vadd.f32 %v4373_v5, %v10272_v46 }
 0x2c8   :  { %v4377_v7 = vpop.f32.mrb[3].mxu1  ;;  %v6663_v50 = vadd.f32 %v4375_v6, %v10268_v44 }
 0x2c9   :  { %v6665_v53 = vadd.f32 %v4377_v7, %v10272_v46 }
 0x2cd   :  { %v4381_v8 = vpop.f32.mrb[4].mxu1 }
 0x2ce   :  { %v4383_v9 = vpop.f32.mrb[5].mxu1  ;;  %v6667_v0 = vadd.f32 %v4381_v8, %v10268_v44 }
 0x2cf   :  { %v4385_v10 = vpop.f32.mrb[6].mxu1  ;;  %v6669_v1 = vadd.f32 %v4383_v9, %v10272_v46 }
 0x2d0   :  { %v10209_v11 = vpop.f32.mrb[7].mxu1  ;;  %v6671_v4 = vadd.f32 %v4385_v10, %v10268_v44 }
 0x2d1   :  { %v6673_v7 = vadd.f32 %v10209_v11, %v10272_v46 }
 0x2d5   :  { %v10211_v12 = vpop.f32.mrb[8].mxu1 }
 0x2d6   :  { %v10213_v13 = vpop.f32.mrb[9].mxu1  ;;  %v6675_v10 = vadd.f32 %v10211_v12, %v10268_v44 }
 0x2d7   :  { %v10215_v14 = vpop.f32.mrb[10].mxu1  ;;  %v6677_v11 = vadd.f32 %v10213_v13, %v10272_v46 }
 0x2d8   :  { %v10217_v15 = vpop.f32.mrb[11].mxu1 }
 0x2dd   :  { %v10219_v16 = vpop.f32.mrb[12].mxu1 }
 0x2de   :  { %v10221_v17 = vpop.f32.mrb[13].mxu1 }
 0x2df   :  { %v10223_v18 = vpop.f32.mrb[14].mxu1 }
 0x2e0   :  { %v10225_v19 = vpop.f32.mrb[15].mxu1 }
 0x2e5   :  { %v10227_v20 = vpop.f32.mrb[16].mxu1 }
 0x2e6   :  { %v10229_v21 = vpop.f32.mrb[17].mxu1 }
 0x2e7   :  { %v10231_v22 = vpop.f32.mrb[18].mxu1 }
 0x2e8   :  { %v10233_v23 = vpop.f32.mrb[19].mxu1 }
 0x2ed   :  { %v10235_v24 = vpop.f32.mrb[20].mxu1 }
 0x2ee   :  { %v10237_v25 = vpop.f32.mrb[21].mxu1 }
 0x2ef   :  { %v10239_v26 = vpop.f32.mrb[22].mxu1 }
 0x2f0   :  { %v10241_v27 = vpop.f32.mrb[23].mxu1 }
 0x2f5   :  { %v10243_v28 = vpop.f32.mrb[24].mxu1 }
 0x2f6   :  { %v10245_v29 = vpop.f32.mrb[25].mxu1 }
 0x2f7   :  { %v10247_v30 = vpop.f32.mrb[26].mxu1 }
 0x2f8   :  { %v10249_v31 = vpop.f32.mrb[27].mxu1 }
 0x2fd   :  { %v10251_v33 = vpop.f32.mrb[28].mxu1 }
 0x2fe   :  { %v10253_v34 = vpop.f32.mrb[29].mxu1 }
 0x2ff   :  { %v10255_v35 = vpop.f32.mrb[30].mxu1 }
 0x300   :  { %v10257_v37 = vpop.f32.mrb[31].mxu1 }
 0x305   :  { %v10262_v41 = vpop.f32.mrb[32].mxu1 }
 0x306   :  { %v10264_v42 = vpop.f32.mrb[33].mxu1 }
 0x307   :  { %v10266_v43 = vpop.f32.mrb[34].mxu1 }
 0x308   :  { %v10270_v45 = vpop.f32.mrb[35].mxu1 }
 0x30e   :  { %v5436_v49 = vpop.f32.mrb[0].mxu0 }
 0x30f   :  { %v6660_v51 = vadd.f32 %v6659_v47, %v5436_v49  ;;  %v5438_v52 = vpop.f32.mrb[1].mxu0 }
 0x310   :  { %v6662_v54 = vadd.f32 %v6661_v48, %v5438_v52  ;;  %v5440_v55 = vpop.f32.mrb[2].mxu0  ;;  %v6679_v52 = vadd.f32 %v10215_v14, %v10268_v44  ;;  %v6683_v14 = vadd.f32 %v10219_v16, %v10268_v44 }
 0x311   :  { %v5615_v56 = vmax.f32 %v6660_v51, 0.0  ;;  %v6664_v57 = vadd.f32 %v6663_v50, %v5440_v55  ;;  %v5442_v58 = vpop.f32.mrb[3].mxu0  ;;  %v6681_v55 = vadd.f32 %v10217_v15, %v10272_v46  ;;  %v6685_v15 = vadd.f32 %v10221_v17, %v10272_v46 }
 0x312   :  { %v5616_v59 = vmax.f32 %v6662_v54, 0.0  ;;  %v6666_v60 = vadd.f32 %v6665_v53, %v5442_v58 }
 0x313   :  { %v5617_v61 = vmax.f32 %v6664_v57, 0.0 }
 0x314   :  { %v6591_v62 = vpack.c.bf16 %v5616_v59, %v5615_v56  ;;  %v5618_v63 = vmax.f32 %v6666_v60, 0.0 }
 0x316   :  { %5903 = vst [vmem:[%s10486_s3] sm:$0xff] %v6591_v62  ;;  %v6592_v2 = vpack.c.bf16 %v5618_v63, %v5617_v61  ;;  %v5446_v3 = vpop.f32.mrb[4].mxu0 }
 0x317   :  { %v6668_v5 = vadd.f32 %v6667_v0, %v5446_v3  ;;  %v5448_v6 = vpop.f32.mrb[5].mxu0 }
 0x318   :  { %5904 = vst [vmem:[%s10486_s3 + $0x8] sm:$0xff] %v6592_v2  ;;  %v6670_v8 = vadd.f32 %v6669_v1, %v5448_v6  ;;  %v5450_v32 = vpop.f32.mrb[6].mxu0  ;;  %v6687_v2 = vadd.f32 %v10223_v18, %v10268_v44  ;;  %v6691_v18 = vadd.f32 %v10227_v20, %v10268_v44 }
 0x319   :  { %v5619_v9 = vmax.f32 %v6668_v5, 0.0  ;;  %v6672_v36 = vadd.f32 %v6671_v4, %v5450_v32  ;;  %v5452_v38 = vpop.f32.mrb[7].mxu0  ;;  %v6689_v5 = vadd.f32 %v10225_v19, %v10272_v46  ;;  %v6693_v19 = vadd.f32 %v10229_v21, %v10272_v46 }
 0x31a   :  { %v5620_v39 = vmax.f32 %v6670_v8, 0.0  ;;  %v6674_v40 = vadd.f32 %v6673_v7, %v5452_v38 }
 0x31b   :  { %v5621_v47 = vmax.f32 %v6672_v36, 0.0 }
 0x31c   :  { %v6593_v48 = vpack.c.bf16 %v5620_v39, %v5619_v9  ;;  %v5622_v49 = vmax.f32 %v6674_v40, 0.0 }
 0x31e   :  { %5905 = vst [vmem:[%s10486_s3 + $0x10] sm:$0xff] %v6593_v48  ;;  %v6594_v50 = vpack.c.bf16 %v5622_v49, %v5621_v47  ;;  %v5456_v51 = vpop.f32.mrb[8].mxu0  ;;  %v6695_v48 = vadd.f32 %v10231_v22, %v10268_v44  ;;  %v6699_v22 = vadd.f32 %v10235_v24, %v10268_v44 }
 0x31f   :  { %v6676_v53 = vadd.f32 %v6675_v10, %v5456_v51  ;;  %v5458_v54 = vpop.f32.mrb[9].mxu0 }
 0x320   :  { %5906 = vst [vmem:[%s10486_s3 + $0x18] sm:$0xff] %v6594_v50  ;;  %v6678_v12 = vadd.f32 %v6677_v11, %v5458_v54  ;;  %v5460_v13 = vpop.f32.mrb[10].mxu0  ;;  %v6697_v11 = vadd.f32 %v10233_v23, %v10272_v46  ;;  %v6701_v23 = vadd.f32 %v10237_v25, %v10272_v46 }
 0x321   :  { %v5623_v56 = vmax.f32 %v6676_v53, 0.0  ;;  %v6680_v57 = vadd.f32 %v6679_v52, %v5460_v13  ;;  %v5462_v58 = vpop.f32.mrb[11].mxu0 }
 0x322   :  { %v5624_v59 = vmax.f32 %v6678_v12, 0.0  ;;  %v6682_v60 = vadd.f32 %v6681_v55, %v5462_v58  ;;  %v6703_v58 = vadd.f32 %v10239_v26, %v10268_v44  ;;  %v6707_v26 = vadd.f32 %v10243_v28, %v10268_v44 }
 0x323   :  { %v5625_v61 = vmax.f32 %v6680_v57, 0.0 }
 0x324   :  { %v6595_v62 = vpack.c.bf16 %v5624_v59, %v5623_v56  ;;  %v5626_v63 = vmax.f32 %v6682_v60, 0.0 }
 0x326   :  { %5907 = vst [vmem:[%s10486_s3 + $0x20] sm:$0xff] %v6595_v62  ;;  %v6596_v0 = vpack.c.bf16 %v5626_v63, %v5625_v61  ;;  %v5466_v1 = vpop.f32.mrb[12].mxu0  ;;  %v6705_v61 = vadd.f32 %v10241_v27, %v10272_v46  ;;  %v6709_v27 = vadd.f32 %v10245_v29, %v10272_v46 }
 0x327   :  { %v6684_v3 = vadd.f32 %v6683_v14, %v5466_v1  ;;  %v5468_v4 = vpop.f32.mrb[13].mxu0 }
 0x328   :  { %5908 = vst [vmem:[%s10486_s3 + $0x28] sm:$0xff] %v6596_v0  ;;  %v6686_v16 = vadd.f32 %v6685_v15, %v5468_v4  ;;  %v5470_v17 = vpop.f32.mrb[14].mxu0 }
 0x329   :  { %v5627_v6 = vmax.f32 %v6684_v3, 0.0  ;;  %v6688_v7 = vadd.f32 %v6687_v2, %v5470_v17  ;;  %v5472_v8 = vpop.f32.mrb[15].mxu0 }
 0x32a   :  { %v5628_v32 = vmax.f32 %v6686_v16, 0.0  ;;  %v6690_v9 = vadd.f32 %v6689_v5, %v5472_v8  ;;  %v6711_v16 = vadd.f32 %v10247_v30, %v10268_v44  ;;  %v6715_v30 = vadd.f32 %v10251_v33, %v10268_v44 }
 0x32b   :  { %v5629_v36 = vmax.f32 %v6688_v7, 0.0  ;;  %v6713_v7 = vadd.f32 %v10249_v31, %v10272_v46  ;;  %v6717_v31 = vadd.f32 %v10253_v34, %v10272_v46 }
 0x32c   :  { %v6597_v38 = vpack.c.bf16 %v5628_v32, %v5627_v6  ;;  %v5630_v39 = vmax.f32 %v6690_v9, 0.0 }
 0x32e   :  { %5909 = vst [vmem:[%s10486_s3 + $0x30] sm:$0xff] %v6597_v38  ;;  %v6598_v40 = vpack.c.bf16 %v5630_v39, %v5629_v36  ;;  %v5476_v47 = vpop.f32.mrb[16].mxu0 }
 0x32f   :  { %v6692_v49 = vadd.f32 %v6691_v18, %v5476_v47  ;;  %v5478_v10 = vpop.f32.mrb[17].mxu0 }
 0x330   :  { %5910 = vst [vmem:[%s10486_s3 + $0x38] sm:$0xff] %v6598_v40  ;;  %v6694_v20 = vadd.f32 %v6693_v19, %v5478_v10  ;;  %v5480_v21 = vpop.f32.mrb[18].mxu0 }
 0x331   :  { %v5631_v50 = vmax.f32 %v6692_v49, 0.0  ;;  %v6696_v51 = vadd.f32 %v6695_v48, %v5480_v21  ;;  %v5482_v52 = vpop.f32.mrb[19].mxu0  ;;  %v6719_v48 = vadd.f32 %v10255_v35, %v10268_v44  ;;  %v6723_v35 = vadd.f32 %v10262_v41, %v10268_v44 }
 0x332   :  { %v5632_v53 = vmax.f32 %v6694_v20, 0.0  ;;  %v6698_v54 = vadd.f32 %v6697_v11, %v5482_v52  ;;  %v6721_v11 = vadd.f32 %v10257_v37, %v10272_v46  ;;  %v6725_v37 = vadd.f32 %v10264_v42, %v10272_v46 }
 0x333   :  { %v5633_v55 = vmax.f32 %v6696_v51, 0.0 }
 0x334   :  { %v6599_v12 = vpack.c.bf16 %v5632_v53, %v5631_v50  ;;  %v5634_v13 = vmax.f32 %v6698_v54, 0.0 }
 0x336   :  { %5911 = vst [vmem:[%s10486_s3 + $0x40] sm:$0xff] %v6599_v12  ;;  %v6600_v56 = vpack.c.bf16 %v5634_v13, %v5633_v55  ;;  %v5486_v57 = vpop.f32.mrb[20].mxu0 }
 0x337   :  { %v6700_v59 = vadd.f32 %v6699_v22, %v5486_v57  ;;  %v5488_v60 = vpop.f32.mrb[21].mxu0  ;;  %v6727_v22 = vadd.f32 %v10266_v43, %v10268_v44  ;;  %v6729_v57 = vadd.f32 %v10270_v45, %v10272_v46 }
 0x338   :  { %5912 = vst [vmem:[%s10486_s3 + $0x48] sm:$0xff] %v6600_v56  ;;  %v6702_v24 = vadd.f32 %v6701_v23, %v5488_v60  ;;  %v5490_v25 = vpop.f32.mrb[22].mxu0 }
 0x339   :  { %v5635_v62 = vmax.f32 %v6700_v59, 0.0  ;;  %v6704_v63 = vadd.f32 %v6703_v58, %v5490_v25  ;;  %v5492_v14 = vpop.f32.mrb[23].mxu0 }
 0x33a   :  { %v5636_v15 = vmax.f32 %v6702_v24, 0.0  ;;  %v6706_v0 = vadd.f32 %v6705_v61, %v5492_v14 }
 0x33b   :  { %v5637_v1 = vmax.f32 %v6704_v63, 0.0 }
 0x33c   :  { %v6601_v2 = vpack.c.bf16 %v5636_v15, %v5635_v62  ;;  %v5638_v3 = vmax.f32 %v6706_v0, 0.0 }
 0x33e   :  { %5913 = vst [vmem:[%s10486_s3 + $0x50] sm:$0xff] %v6601_v2  ;;  %v6602_v4 = vpack.c.bf16 %v5638_v3, %v5637_v1  ;;  %v5496_v5 = vpop.f32.mrb[24].mxu0 }
 0x33f   :  { %v6708_v17 = vadd.f32 %v6707_v26, %v5496_v5  ;;  %v5498_v6 = vpop.f32.mrb[25].mxu0 }
 0x340   :  { %5914 = vst [vmem:[%s10486_s3 + $0x58] sm:$0xff] %v6602_v4  ;;  %v6710_v28 = vadd.f32 %v6709_v27, %v5498_v6  ;;  %v5500_v29 = vpop.f32.mrb[26].mxu0 }
 0x341   :  { %v5639_v8 = vmax.f32 %v6708_v17, 0.0  ;;  %v6712_v32 = vadd.f32 %v6711_v16, %v5500_v29  ;;  %v5502_v9 = vpop.f32.mrb[27].mxu0 }
 0x342   :  { %v5640_v36 = vmax.f32 %v6710_v28, 0.0  ;;  %v6714_v38 = vadd.f32 %v6713_v7, %v5502_v9 }
 0x343   :  { %v5641_v39 = vmax.f32 %v6712_v32, 0.0 }
 0x344   :  { %v6603_v18 = vpack.c.bf16 %v5640_v36, %v5639_v8  ;;  %v5642_v19 = vmax.f32 %v6714_v38, 0.0 }
 0x346   :  { %5915 = vst [vmem:[%s10486_s3 + $0x60] sm:$0xff] %v6603_v18  ;;  %v6604_v40 = vpack.c.bf16 %v5642_v19, %v5641_v39  ;;  %v5506_v47 = vpop.f32.mrb[28].mxu0 }
 0x347   :  { %v6716_v49 = vadd.f32 %v6715_v30, %v5506_v47  ;;  %v5508_v10 = vpop.f32.mrb[29].mxu0 }
 0x348   :  { %5916 = vst [vmem:[%s10486_s3 + $0x68] sm:$0xff] %v6604_v40  ;;  %v6718_v33 = vadd.f32 %v6717_v31, %v5508_v10  ;;  %v5510_v34 = vpop.f32.mrb[30].mxu0 }
 0x349   :  { %v5643_v20 = vmax.f32 %v6716_v49, 0.0  ;;  %v6720_v21 = vadd.f32 %v6719_v48, %v5510_v34  ;;  %v5512_v50 = vpop.f32.mrb[31].mxu0 }
 0x34a   :  { %v5644_v51 = vmax.f32 %v6718_v33, 0.0  ;;  %v6722_v52 = vadd.f32 %v6721_v11, %v5512_v50 }
 0x34b   :  { %v5645_v53 = vmax.f32 %v6720_v21, 0.0 }
 0x34c   :  { %v6605_v54 = vpack.c.bf16 %v5644_v51, %v5643_v20  ;;  %v5646_v55 = vmax.f32 %v6722_v52, 0.0 }
 0x34e   :  { %5917 = vst [vmem:[%s10486_s3 + $0x70] sm:$0xff] %v6605_v54  ;;  %v6606_v12 = vpack.c.bf16 %v5646_v55, %v5645_v53  ;;  %v5516_v13 = vpop.f32.mrb[32].mxu0 }
 0x34f   :  { %v6724_v23 = vadd.f32 %v6723_v35, %v5516_v13  ;;  %v5518_v56 = vpop.f32.mrb[33].mxu0 }
 0x350   :  { %5918 = vst [vmem:[%s10486_s3 + $0x78] sm:$0xff] %v6606_v12  ;;  %v6726_v41 = vadd.f32 %v6725_v37, %v5518_v56  ;;  %v5520_v42 = vpop.f32.mrb[34].mxu0 }
 0x351   :  { %v5647_v58 = vmax.f32 %v6724_v23, 0.0  ;;  %v6728_v59 = vadd.f32 %v6727_v22, %v5520_v42  ;;  %v5522_v60 = vpop.f32.mrb[35].mxu0 }
 0x352   :  { %v5648_v61 = vmax.f32 %v6726_v41, 0.0  ;;  %v6730_v24 = vadd.f32 %v6729_v57, %v5522_v60 }
 0x353   :  { %v5649_v25 = vmax.f32 %v6728_v59, 0.0 }
 0x354   :  { %v6607_v62 = vpack.c.bf16 %v5648_v61, %v5647_v58  ;;  %v5650_v63 = vmax.f32 %v6730_v24, 0.0 }
 0x355   :  { %v4674_v45 = vpop.f32.mrb[36].mxu1 }
 0x356   :  { %5919 = vst [vmem:[%s10486_s3 + $0x80] sm:$0xff] %v6607_v62  ;;  %v6608_v43 = vpack.c.bf16 %v5650_v63, %v5649_v25  ;;  %v5526_v14 = vpop.f32.mrb[36].mxu0  ;;  %v6731_v15 = vadd.f32 %v4674_v45, %v10268_v44  ;;  %v4676_v0 = vpop.f32.mrb[37].mxu1 }
 0x357   :  { %v5528_v1 = vpop.f32.mrb[37].mxu0  ;;  %v6733_v2 = vadd.f32 %v4676_v0, %v10272_v46  ;;  %v4678_v3 = vpop.f32.mrb[38].mxu1 }
 0x358   :  { %5920 = vst [vmem:[%s10486_s3 + $0x88] sm:$0xff] %v6608_v43  ;;  %v5530_v26 = vpop.f32.mrb[38].mxu0  ;;  %v6732_v27 = vadd.f32 %v6731_v15, %v5526_v14  ;;  %v6735_v4 = vadd.f32 %v4678_v3, %v10268_v44  ;;  %v4680_v5 = vpop.f32.mrb[39].mxu1 }
 0x359   :  { %v5532_v16 = vpop.f32.mrb[39].mxu0  ;;  %v6734_v17 = vadd.f32 %v6733_v2, %v5528_v1  ;;  %v6737_v6 = vadd.f32 %v4680_v5, %v10272_v46 }
 0x35a   :  { %v5651_v7 = vmax.f32 %v6732_v27, 0.0  ;;  %v6736_v28 = vadd.f32 %v6735_v4, %v5530_v26 }
 0x35b   :  { %v5652_v29 = vmax.f32 %v6734_v17, 0.0  ;;  %v6738_v8 = vadd.f32 %v6737_v6, %v5532_v16 }
 0x35c   :  { %v5653_v32 = vmax.f32 %v6736_v28, 0.0 }
 0x35d   :  { %v6609_v9 = vpack.c.bf16 %v5652_v29, %v5651_v7  ;;  %v5654_v36 = vmax.f32 %v6738_v8, 0.0  ;;  %v4684_v38 = vpop.f32.mrb[40].mxu1 }
 0x35e   :  { %v5536_v39 = vpop.f32.mrb[40].mxu0  ;;  %v6739_v18 = vadd.f32 %v4684_v38, %v10268_v44  ;;  %v4686_v19 = vpop.f32.mrb[41].mxu1 }
 0x35f   :  { %v5538_v30 = vpop.f32.mrb[41].mxu0  ;;  %5921 = vst [vmem:[%s10486_s3 + $0x90] sm:$0xff] %v6609_v9  ;;  %v6610_v31 = vpack.c.bf16 %v5654_v36, %v5653_v32  ;;  %v6741_v40 = vadd.f32 %v4686_v19, %v10272_v46  ;;  %v4688_v47 = vpop.f32.mrb[42].mxu1 }
 0x360   :  { %v5540_v48 = vpop.f32.mrb[42].mxu0  ;;  %v6740_v49 = vadd.f32 %v6739_v18, %v5536_v39  ;;  %v6743_v10 = vadd.f32 %v4688_v47, %v10268_v44  ;;  %v4690_v11 = vpop.f32.mrb[43].mxu1 }
 0x361   :  { %v5542_v33 = vpop.f32.mrb[43].mxu0  ;;  %5922 = vst [vmem:[%s10486_s3 + $0x98] sm:$0xff] %v6610_v31  ;;  %v6742_v34 = vadd.f32 %v6741_v40, %v5538_v30  ;;  %v6745_v20 = vadd.f32 %v4690_v11, %v10272_v46 }
 0x362   :  { %v5655_v21 = vmax.f32 %v6740_v49, 0.0  ;;  %v6744_v50 = vadd.f32 %v6743_v10, %v5540_v48 }
 0x363   :  { %v5656_v51 = vmax.f32 %v6742_v34, 0.0  ;;  %v6746_v52 = vadd.f32 %v6745_v20, %v5542_v33 }
 0x364   :  { %v5657_v53 = vmax.f32 %v6744_v50, 0.0 }
 0x365   :  { %v6611_v54 = vpack.c.bf16 %v5656_v51, %v5655_v21  ;;  %v5658_v55 = vmax.f32 %v6746_v52, 0.0  ;;  %v4694_v35 = vpop.f32.mrb[44].mxu1 }
 0x366   :  { %v5546_v37 = vpop.f32.mrb[44].mxu0  ;;  %v6747_v12 = vadd.f32 %v4694_v35, %v10268_v44  ;;  %v4696_v13 = vpop.f32.mrb[45].mxu1 }
 0x367   :  { %v5548_v22 = vpop.f32.mrb[45].mxu0  ;;  %5923 = vst [vmem:[%s10486_s3 + $0xa0] sm:$0xff] %v6611_v54  ;;  %v6612_v23 = vpack.c.bf16 %v5658_v55, %v5657_v53  ;;  %v6749_v56 = vadd.f32 %v4696_v13, %v10272_v46  ;;  %v4698_v57 = vpop.f32.mrb[46].mxu1 }
 0x368   :  { %v5550_v41 = vpop.f32.mrb[46].mxu0  ;;  %v6748_v42 = vadd.f32 %v6747_v12, %v5546_v37  ;;  %v6751_v58 = vadd.f32 %v4698_v57, %v10268_v44  ;;  %v4700_v59 = vpop.f32.mrb[47].mxu1 }
 0x369   :  { %v5552_v60 = vpop.f32.mrb[47].mxu0  ;;  %5924 = vst [vmem:[%s10486_s3 + $0xa8] sm:$0xff] %v6612_v23  ;;  %v6750_v61 = vadd.f32 %v6749_v56, %v5548_v22  ;;  %v6753_v24 = vadd.f32 %v4700_v59, %v10272_v46 }
 0x36a   :  { %v5659_v25 = vmax.f32 %v6748_v42, 0.0  ;;  %v6752_v62 = vadd.f32 %v6751_v58, %v5550_v41 }
 0x36b   :  { %v5660_v63 = vmax.f32 %v6750_v61, 0.0  ;;  %v6754_v43 = vadd.f32 %v6753_v24, %v5552_v60 }
 0x36c   :  { %v5661_v45 = vmax.f32 %v6752_v62, 0.0 }
 0x36d   :  { %v6613_v14 = vpack.c.bf16 %v5660_v63, %v5659_v25  ;;  %v5662_v15 = vmax.f32 %v6754_v43, 0.0  ;;  %v4704_v0 = vpop.f32.mrb[48].mxu1 }
 0x36e   :  { %v5556_v1 = vpop.f32.mrb[48].mxu0  ;;  %v6755_v2 = vadd.f32 %v4704_v0, %v10268_v44  ;;  %v4706_v3 = vpop.f32.mrb[49].mxu1 }
 0x36f   :  { %v5558_v26 = vpop.f32.mrb[49].mxu0  ;;  %5925 = vst [vmem:[%s10486_s3 + $0xb0] sm:$0xff] %v6613_v14  ;;  %v6614_v27 = vpack.c.bf16 %v5662_v15, %v5661_v45  ;;  %v6757_v4 = vadd.f32 %v4706_v3, %v10272_v46  ;;  %v4708_v5 = vpop.f32.mrb[50].mxu1 }
 0x370   :  { %v5560_v16 = vpop.f32.mrb[50].mxu0  ;;  %v6756_v17 = vadd.f32 %v6755_v2, %v5556_v1  ;;  %v6759_v6 = vadd.f32 %v4708_v5, %v10268_v44  ;;  %v4710_v7 = vpop.f32.mrb[51].mxu1 }
 0x371   :  { %v5562_v28 = vpop.f32.mrb[51].mxu0  ;;  %5926 = vst [vmem:[%s10486_s3 + $0xb8] sm:$0xff] %v6614_v27  ;;  %v6758_v29 = vadd.f32 %v6757_v4, %v5558_v26  ;;  %v6761_v8 = vadd.f32 %v4710_v7, %v10272_v46 }
 0x372   :  { %v5663_v32 = vmax.f32 %v6756_v17, 0.0  ;;  %v6760_v9 = vadd.f32 %v6759_v6, %v5560_v16 }
 0x373   :  { %v5664_v36 = vmax.f32 %v6758_v29, 0.0  ;;  %v6762_v38 = vadd.f32 %v6761_v8, %v5562_v28 }
 0x374   :  { %v5665_v39 = vmax.f32 %v6760_v9, 0.0 }
 0x375   :  { %v6615_v18 = vpack.c.bf16 %v5664_v36, %v5663_v32  ;;  %v5666_v19 = vmax.f32 %v6762_v38, 0.0  ;;  %v4714_v30 = vpop.f32.mrb[52].mxu1 }
 0x376   :  { %v5566_v31 = vpop.f32.mrb[52].mxu0  ;;  %v6763_v40 = vadd.f32 %v4714_v30, %v10268_v44  ;;  %v4716_v47 = vpop.f32.mrb[53].mxu1 }
 0x377   :  { %v5568_v48 = vpop.f32.mrb[53].mxu0  ;;  %5927 = vst [vmem:[%s10486_s3 + $0xc0] sm:$0xff] %v6615_v18  ;;  %v6616_v49 = vpack.c.bf16 %v5666_v19, %v5665_v39  ;;  %v6765_v10 = vadd.f32 %v4716_v47, %v10272_v46  ;;  %v4718_v11 = vpop.f32.mrb[54].mxu1 }
 0x378   :  { %v5570_v33 = vpop.f32.mrb[54].mxu0  ;;  %v6764_v34 = vadd.f32 %v6763_v40, %v5566_v31  ;;  %v6767_v20 = vadd.f32 %v4718_v11, %v10268_v44  ;;  %v4720_v21 = vpop.f32.mrb[55].mxu1 }
 0x379   :  { %v5572_v50 = vpop.f32.mrb[55].mxu0  ;;  %5928 = vst [vmem:[%s10486_s3 + $0xc8] sm:$0xff] %v6616_v49  ;;  %v6766_v51 = vadd.f32 %v6765_v10, %v5568_v48  ;;  %v6769_v52 = vadd.f32 %v4720_v21, %v10272_v46 }
 0x37a   :  { %v5667_v53 = vmax.f32 %v6764_v34, 0.0  ;;  %v6768_v54 = vadd.f32 %v6767_v20, %v5570_v33 }
 0x37b   :  { %v5668_v55 = vmax.f32 %v6766_v51, 0.0  ;;  %v6770_v35 = vadd.f32 %v6769_v52, %v5572_v50 }
 0x37c   :  { %v5669_v37 = vmax.f32 %v6768_v54, 0.0 }
 0x37d   :  { %v6617_v12 = vpack.c.bf16 %v5668_v55, %v5667_v53  ;;  %v5670_v13 = vmax.f32 %v6770_v35, 0.0  ;;  %v4724_v22 = vpop.f32.mrb[56].mxu1 }
 0x37e   :  { %v5576_v23 = vpop.f32.mrb[56].mxu0  ;;  %v6771_v56 = vadd.f32 %v4724_v22, %v10268_v44  ;;  %v4726_v57 = vpop.f32.mrb[57].mxu1 }
 0x37f   :  { %v5578_v41 = vpop.f32.mrb[57].mxu0  ;;  %5929 = vst [vmem:[%s10486_s3 + $0xd0] sm:$0xff] %v6617_v12  ;;  %v6618_v42 = vpack.c.bf16 %v5670_v13, %v5669_v37  ;;  %v6773_v58 = vadd.f32 %v4726_v57, %v10272_v46  ;;  %v4728_v59 = vpop.f32.mrb[58].mxu1 }
 0x380   :  { %v5580_v60 = vpop.f32.mrb[58].mxu0  ;;  %v6772_v61 = vadd.f32 %v6771_v56, %v5576_v23  ;;  %v6775_v24 = vadd.f32 %v4728_v59, %v10268_v44  ;;  %v4730_v25 = vpop.f32.mrb[59].mxu1 }
 0x381   :  { %v5582_v62 = vpop.f32.mrb[59].mxu0  ;;  %5930 = vst [vmem:[%s10486_s3 + $0xd8] sm:$0xff] %v6618_v42  ;;  %v6774_v63 = vadd.f32 %v6773_v58, %v5578_v41  ;;  %v6777_v43 = vadd.f32 %v4730_v25, %v10272_v46 }
 0x382   :  { %v5671_v45 = vmax.f32 %v6772_v61, 0.0  ;;  %v6776_v14 = vadd.f32 %v6775_v24, %v5580_v60 }
 0x383   :  { %v5672_v15 = vmax.f32 %v6774_v63, 0.0  ;;  %v6778_v0 = vadd.f32 %v6777_v43, %v5582_v62 }
 0x384   :  { %v5673_v1 = vmax.f32 %v6776_v14, 0.0 }
 0x385   :  { %v6619_v2 = vpack.c.bf16 %v5672_v15, %v5671_v45  ;;  %v5674_v3 = vmax.f32 %v6778_v0, 0.0  ;;  %v4734_v26 = vpop.f32.mrb[60].mxu1 }
 0x386   :  { %v5586_v27 = vpop.f32.mrb[60].mxu0  ;;  %v6779_v4 = vadd.f32 %v4734_v26, %v10268_v44  ;;  %v4736_v5 = vpop.f32.mrb[61].mxu1 }
 0x387   :  { %v5588_v16 = vpop.f32.mrb[61].mxu0  ;;  %5931 = vst [vmem:[%s10486_s3 + $0xe0] sm:$0xff] %v6619_v2  ;;  %v6620_v17 = vpack.c.bf16 %v5674_v3, %v5673_v1  ;;  %v6781_v6 = vadd.f32 %v4736_v5, %v10272_v46  ;;  %v4738_v7 = vpop.f32.mrb[62].mxu1 }
 0x388   :  { %v5590_v28 = vpop.f32.mrb[62].mxu0  ;;  %v6780_v29 = vadd.f32 %v6779_v4, %v5586_v27  ;;  %v6783_v8 = vadd.f32 %v4738_v7, %v10268_v44  ;;  %v4740_v32 = vpop.f32.mrb[63].mxu1 }
 0x389   :  { %v5592_v9 = vpop.f32.mrb[63].mxu0  ;;  %5932 = vst [vmem:[%s10486_s3 + $0xe8] sm:$0xff] %v6620_v17  ;;  %v6782_v36 = vadd.f32 %v6781_v6, %v5588_v16  ;;  %v6785_v38 = vadd.f32 %v4740_v32, %v10272_v46 }
 0x38a   :  { %v5675_v39 = vmax.f32 %v6780_v29, 0.0  ;;  %v6784_v18 = vadd.f32 %v6783_v8, %v5590_v28 }
 0x38b   :  { %v5676_v19 = vmax.f32 %v6782_v36, 0.0  ;;  %v6786_v30 = vadd.f32 %v6785_v38, %v5592_v9 }
 0x38c   :  { %v5677_v31 = vmax.f32 %v6784_v18, 0.0 }
 0x38d   :  { %v6621_v40 = vpack.c.bf16 %v5676_v19, %v5675_v39  ;;  %v5678_v47 = vmax.f32 %v6786_v30, 0.0  ;;  %v4744_v48 = vpop.f32.mrb[64].mxu1 }
 0x38e   :  { %v5596_v49 = vpop.f32.mrb[64].mxu0  ;;  %v6787_v10 = vadd.f32 %v4744_v48, %v10268_v44  ;;  %v4746_v11 = vpop.f32.mrb[65].mxu1 }
 0x38f   :  { %v5598_v33 = vpop.f32.mrb[65].mxu0  ;;  %5933 = vst [vmem:[%s10486_s3 + $0xf0] sm:$0xff] %v6621_v40  ;;  %v6622_v34 = vpack.c.bf16 %v5678_v47, %v5677_v31  ;;  %v6789_v20 = vadd.f32 %v4746_v11, %v10272_v46  ;;  %v4748_v21 = vpop.f32.mrb[66].mxu1 }
 0x390   :  { %v5600_v50 = vpop.f32.mrb[66].mxu0  ;;  %v6788_v51 = vadd.f32 %v6787_v10, %v5596_v49  ;;  %v6791_v52 = vadd.f32 %v4748_v21, %v10268_v44  ;;  %v4750_v53 = vpop.f32.mrb[67].mxu1 }
 0x391   :  { %v5602_v54 = vpop.f32.mrb[67].mxu0  ;;  %5934 = vst [vmem:[%s10486_s3 + $0xf8] sm:$0xff] %v6622_v34  ;;  %v6790_v55 = vadd.f32 %v6789_v20, %v5598_v33  ;;  %v6793_v35 = vadd.f32 %v4750_v53, %v10272_v46 }
 0x392   :  { %v5679_v37 = vmax.f32 %v6788_v51, 0.0  ;;  %v6792_v12 = vadd.f32 %v6791_v52, %v5600_v50 }
 0x393   :  { %v5680_v13 = vmax.f32 %v6790_v55, 0.0  ;;  %v6794_v22 = vadd.f32 %v6793_v35, %v5602_v54 }
 0x394   :  { %v5681_v23 = vmax.f32 %v6792_v12, 0.0 }
 0x395   :  { %v6623_v56 = vpack.c.bf16 %v5680_v13, %v5679_v37  ;;  %v5682_v57 = vmax.f32 %v6794_v22, 0.0  ;;  %v4754_v41 = vpop.f32.mrb[68].mxu1 }
 0x396   :  { %v5606_v42 = vpop.f32.mrb[68].mxu0  ;;  %v6795_v58 = vadd.f32 %v4754_v41, %v10268_v44  ;;  %v4756_v59 = vpop.f32.mrb[69].mxu1 }
 0x397   :  { %v5608_v60 = vpop.f32.mrb[69].mxu0  ;;  %5935 = vst [vmem:[%s10486_s3 + $0x100] sm:$0xff] %v6623_v56  ;;  %v6624_v61 = vpack.c.bf16 %v5682_v57, %v5681_v23  ;;  %v6797_v24 = vadd.f32 %v4756_v59, %v10272_v46  ;;  %v4758_v25 = vpop.f32.mrb[70].mxu1 }
 0x398   :  { %v5610_v62 = vpop.f32.mrb[70].mxu0  ;;  %v6796_v63 = vadd.f32 %v6795_v58, %v5606_v42  ;;  %v6799_v43 = vadd.f32 %v4758_v25, %v10268_v44  ;;  %v4760_v45 = vpop.f32.mrb[71].mxu1 }
 0x399   :  { %v5612_v14 = vpop.f32.mrb[71].mxu0  ;;  %5936 = vst [vmem:[%s10486_s3 + $0x108] sm:$0xff] %v6624_v61  ;;  %v6798_v15 = vadd.f32 %v6797_v24, %v5608_v60  ;;  %v6801_v0 = vadd.f32 %v4760_v45, %v10272_v46 }
 0x39a   :  { %v5683_v1 = vmax.f32 %v6796_v63, 0.0  ;;  %v6800_v2 = vadd.f32 %v6799_v43, %v5610_v62 }
 0x39b   :  { %v5684_v3 = vmax.f32 %v6798_v15, 0.0  ;;  %v6802_v26 = vadd.f32 %v6801_v0, %v5612_v14 }
 0x39c   :  { %v5685_v27 = vmax.f32 %v6800_v2, 0.0 }
 0x39d   :  { %v6625_v4 = vpack.c.bf16 %v5684_v3, %v5683_v1  ;;  %v5686_v5 = vmax.f32 %v6802_v26, 0.0 }
 0x39f   :  { %5937 = vst [vmem:[%s10486_s3 + $0x110] sm:$0xff] %v6625_v4  ;;  %v6626_v44 = vpack.c.bf16 %v5686_v5, %v5685_v27 }
 0x3a1   :  { %5938 = vst [vmem:[%s10486_s3 + $0x118] sm:$0xff] %v6626_v44 }

// kernel: forward.8
= control target key start
LH: loop header
LB: loop body
LE: loop exit
PB: predicated region body
PF: predicated region fallthrough
CT: control target
= control target key end

     0   :  { %s761_s1 = inlined_call_operand.vmem [shape: bf16[512,128], index: 1, kind: input, shape index: {}]   ;;  %s762_s0 = inlined_call_operand.vmem [shape: bf16[32,512], index: 0, kind: input, shape index: {}]   ;;  %s763_s2 = inlined_call_operand.vmem [shape: f32[1,128], index: 2, kind: input, shape index: {}]   ;;  %s764_s3 = inlined_call_operand.vmem [shape: bf16[32,128], index: 3, kind: output, shape index: {}]  }
   0x1   :  { %v568_v0 = vld [vmem:[%s761_s1 + $0x40] sm:$0xff]   ;;  %v572_v4 = vld [vmem:[%s761_s1 + $0x48] sm:$0xff]   ;;  %v576_v8 = vld [vmem:[%s761_s1 + $0x50] sm:$0xff]  }
   0x2   :  { %v569_v1 = vld [vmem:[%s761_s1 + $0xc0] sm:$0xff]   ;;  %512 = vmatprep.subr.bf16.mxu0 %v568_v0  ;;  %v573_v5 = vld [vmem:[%s761_s1 + $0xc8] sm:$0xff]   ;;  %v577_v9 = vld [vmem:[%s761_s1 + $0xd0] sm:$0xff]  }
   0x3   :  { %v570_v2 = vld [vmem:[%s761_s1] sm:$0xff]   ;;  %540 = vmatprep.subr.bf16.mxu1 %v569_v1  ;;  %v574_v6 = vld [vmem:[%s761_s1 + $0x8] sm:$0xff]   ;;  %v578_v10 = vld [vmem:[%s761_s1 + $0x10] sm:$0xff]  }
   0x4   :  { %v571_v3 = vld [vmem:[%s761_s1 + $0x80] sm:$0xff]   ;;  %513 = vmatpush3.bf16.msra.mxu0 %v570_v2  ;;  %v575_v7 = vld [vmem:[%s761_s1 + $0x88] sm:$0xff]   ;;  %v579_v11 = vld [vmem:[%s761_s1 + $0x90] sm:$0xff]  }
   0x5   :  { %541 = vmatpush3.bf16.msra.mxu1 %v571_v3  ;;  %514 = vmatprep.subr.bf16.mxu0 %v572_v4  ;;  %v580_v12 = vld [vmem:[%s761_s1 + $0x58] sm:$0xff]   ;;  %v584_v16 = vld [vmem:[%s761_s1 + $0x60] sm:$0xff]   ;;  %v588_v20 = vld [vmem:[%s761_s1 + $0x68] sm:$0xff]  }
   0x6   :  { %542 = vmatprep.subr.bf16.mxu1 %v573_v5  ;;  %v581_v13 = vld [vmem:[%s761_s1 + $0xd8] sm:$0xff]   ;;  %v585_v17 = vld [vmem:[%s761_s1 + $0xe0] sm:$0xff]   ;;  %v589_v21 = vld [vmem:[%s761_s1 + $0xe8] sm:$0xff]  }
   0x7   :  { %v582_v14 = vld [vmem:[%s761_s1 + $0x18] sm:$0xff]   ;;  %v586_v18 = vld [vmem:[%s761_s1 + $0x20] sm:$0xff]   ;;  %v590_v22 = vld [vmem:[%s761_s1 + $0x28] sm:$0xff]  }
   0x8   :  { %515 = vmatpush3.bf16.msra.mxu0 %v574_v6  ;;  %v583_v15 = vld [vmem:[%s761_s1 + $0x98] sm:$0xff]   ;;  %v587_v19 = vld [vmem:[%s761_s1 + $0xa0] sm:$0xff]   ;;  %v591_v23 = vld [vmem:[%s761_s1 + $0xa8] sm:$0xff]  }
   0x9   :  { %543 = vmatpush3.bf16.msra.mxu1 %v575_v7  ;;  %516 = vmatprep.subr.bf16.mxu0 %v576_v8  ;;  %v592_v24 = vld [vmem:[%s761_s1 + $0x70] sm:$0xff]   ;;  %v596_v28 = vld [vmem:[%s761_s1 + $0x78] sm:$0xff]   ;;  %v452_v42 = vld [vmem:[%s763_s2] ss:$0 sm:$0xff] }
   0xa   :  { %544 = vmatprep.subr.bf16.mxu1 %v577_v9  ;;  %v593_v25 = vld [vmem:[%s761_s1 + $0xf0] sm:$0xff]   ;;  %v597_v29 = vld [vmem:[%s761_s1 + $0xf8] sm:$0xff]  }
   0xb   :  { %v594_v26 = vld [vmem:[%s761_s1 + $0x30] sm:$0xff]   ;;  %v598_v30 = vld [vmem:[%s761_s1 + $0x38] sm:$0xff]  }
   0xc   :  { %517 = vmatpush3.bf16.msra.mxu0 %v578_v10  ;;  %v595_v27 = vld [vmem:[%s761_s1 + $0xb0] sm:$0xff]   ;;  %v599_v31 = vld [vmem:[%s761_s1 + $0xb8] sm:$0xff]  }
   0xd   :  { %545 = vmatpush3.bf16.msra.mxu1 %v579_v11  ;;  %518 = vmatprep.subr.bf16.mxu0 %v580_v12  ;;  %v600_v32 = vld [vmem:[%s762_s0] ss:$16 sps:$4 sm:$0xff]   ;;  %v602_v33 = vld [vmem:[%s762_s0 + $0x4] ss:$16 sps:$4 sm:$0xff]   ;;  %v603_v34 = vld [vmem:[%s762_s0 + $0x8] ss:$16 sps:$4 sm:$0xff]  }
   0xe   :  { %546 = vmatprep.subr.bf16.mxu1 %v581_v13  ;;  %v605_v35 = vld [vmem:[%s762_s0 + $0xc] ss:$16 sps:$4 sm:$0xff]   ;;  %358 = vmatprep.mubr.bf16.mxu0 %v602_v33  ;;  %v606_v36 = vld [vmem:[%s762_s0 + $0x24] ss:$16 sps:$4 sm:$0xff]   ;;  %v610_v38 = vld [vmem:[%s762_s0 + $0x20] ss:$16 sps:$4 sm:$0xff]  }
   0xf   :  { %407 = vmatprep.mubr.bf16.mxu1 %v605_v35  ;;  %v608_v37 = vld [vmem:[%s762_s0 + $0x2c] ss:$16 sps:$4 sm:$0xff]   ;;  %v611_v39 = vld [vmem:[%s762_s0 + $0x28] ss:$16 sps:$4 sm:$0xff]  }
  0x10   :  { %519 = vmatpush3.bf16.msra.mxu0 %v582_v14 }
  0x11   :  { %547 = vmatpush3.bf16.msra.mxu1 %v583_v15  ;;  %520 = vmatprep.subr.bf16.mxu0 %v584_v16 }
  0x12   :  { %548 = vmatprep.subr.bf16.mxu1 %v585_v17 }
  0x14   :  { %521 = vmatpush3.bf16.msra.mxu0 %v586_v18 }
  0x15   :  { %549 = vmatpush3.bf16.msra.mxu1 %v587_v19  ;;  %522 = vmatprep.subr.bf16.mxu0 %v588_v20 }
  0x16   :  { %550 = vmatprep.subr.bf16.mxu1 %v589_v21 }
  0x18   :  { %523 = vmatpush3.bf16.msra.mxu0 %v590_v22 }
  0x19   :  { %551 = vmatpush3.bf16.msra.mxu1 %v591_v23  ;;  %524 = vmatprep.subr.bf16.mxu0 %v592_v24 }
  0x1a   :  { %552 = vmatprep.subr.bf16.mxu1 %v593_v25 }
  0x1c   :  { %525 = vmatpush3.bf16.msra.mxu0 %v594_v26 }
  0x1d   :  { %553 = vmatpush3.bf16.msra.mxu1 %v595_v27  ;;  %526 = vmatprep.subr.bf16.mxu0 %v596_v28 }
  0x1e   :  { %554 = vmatprep.subr.bf16.mxu1 %v597_v29 }
  0x20   :  { %527 = vmatpush3.bf16.msra.mxu0 %v598_v30 }
  0x21   :  { %555 = vmatpush3.bf16.msra.mxu1 %v599_v31 }
  0x23   :  { %359 = vmatmul.mubr.bf16.vlgmr.msra.gmra.mrb[0].mxu0 %v600_v32 }
  0x24   :  { %408 = vmatmul.mubr.bf16.vlgmr.msra.gmra.mrb[0].mxu1 %v603_v34  ;;  %366 = vmatprep.mubr.bf16.mxu0 %v606_v36 }
  0x25   :  { %415 = vmatprep.mubr.bf16.mxu1 %v608_v37 }
  0x2b   :  { %367 = vmatmul.mubr.bf16.gmra.mrb[4].mxu0 %v610_v38 }
  0x2c   :  { %416 = vmatmul.mubr.bf16.gmra.mrb[4].mxu1 %v611_v39 }
  0xf6   :  { %v528_v40 = vpop.f32.mrb[0].mxu0 }
  0xf7   :  { %v556_v41 = vpop.f32.mrb[0].mxu1  ;;  %v529_v43 = vpop.f32.mrb[1].mxu0 }
  0xf8   :  { %v530_v44 = vadd.f32 %v529_v43, %v528_v40  ;;  %v557_v45 = vpop.f32.mrb[1].mxu1  ;;  %v531_v46 = vpop.f32.mrb[2].mxu0 }
  0xf9   :  { %v558_v47 = vadd.f32 %v557_v45, %v556_v41  ;;  %v559_v48 = vpop.f32.mrb[2].mxu1  ;;  %v532_v49 = vpop.f32.mrb[3].mxu0 }
  0xfa   :  { %v361_v50 = vadd.f32 %v530_v44, %v452_v42  ;;  %v533_v51 = vadd.f32 %v532_v49, %v531_v46  ;;  %v560_v52 = vpop.f32.mrb[3].mxu1 }
  0xfb   :  { %v561_v53 = vadd.f32 %v560_v52, %v559_v48 }
  0xfc   :  { %v410_v54 = vadd.f32 %v558_v47, %v361_v50  ;;  %v364_v55 = vadd.f32 %v533_v51, %v452_v42 }
  0xfe   :  { %v413_v56 = vadd.f32 %v561_v53, %v364_v55  ;;  %v534_v57 = vpop.f32.mrb[4].mxu0  ;;  %v424_v60 = vmax.f32 %v410_v54, 0.0 }
  0xff   :  { %v562_v58 = vpop.f32.mrb[4].mxu1  ;;  %v535_v59 = vpop.f32.mrb[5].mxu0 }
 0x100   :  { %v425_v61 = vmax.f32 %v413_v56, 0.0  ;;  %v536_v62 = vadd.f32 %v535_v59, %v534_v57  ;;  %v563_v63 = vpop.f32.mrb[5].mxu1  ;;  %v537_v0 = vpop.f32.mrb[6].mxu0 }
 0x101   :  { %v564_v1 = vadd.f32 %v563_v63, %v562_v58  ;;  %v565_v2 = vpop.f32.mrb[6].mxu1  ;;  %v538_v3 = vpop.f32.mrb[7].mxu0 }
 0x102   :  { %v504_v4 = vpack.c.bf16 %v425_v61, %v424_v60  ;;  %v369_v5 = vadd.f32 %v536_v62, %v452_v42  ;;  %v539_v6 = vadd.f32 %v538_v3, %v537_v0  ;;  %v566_v7 = vpop.f32.mrb[7].mxu1 }
 0x103   :  { %v567_v8 = vadd.f32 %v566_v7, %v565_v2 }
 0x104   :  { %505 = vst [vmem:[%s764_s3] sm:$0xff] %v504_v4   ;;  %v418_v9 = vadd.f32 %v564_v1, %v369_v5  ;;  %v372_v10 = vadd.f32 %v539_v6, %v452_v42 }
 0x106   :  { %v421_v11 = vadd.f32 %v567_v8, %v372_v10  ;;  %v426_v12 = vmax.f32 %v418_v9, 0.0 }
 0x108   :  { %v427_v13 = vmax.f32 %v421_v11, 0.0 }
 0x10a   :  { %v509_v14 = vpack.c.bf16 %v427_v13, %v426_v12 }
 0x10c   :  { %511 = vst [vmem:[%s764_s3 + $0x8] sm:$0xff] %v509_v14  }

// kernel: forward.7
= control target key start
LH: loop header
LB: loop body
LE: loop exit
PB: predicated region body
PF: predicated region fallthrough
CT: control target
= control target key end

     0   :  { %s1696_s1 = inlined_call_operand.vmem [shape: bf16[1024,128], index: 1, kind: input, shape index: {}]   ;;  %s1697_s0 = inlined_call_operand.vmem [shape: bf16[50,1024], index: 0, kind: input, shape index: {}]   ;;  %s1698_s2 = inlined_call_operand.vmem [shape: f32[1,128], index: 2, kind: input, shape index: {}]   ;;  %s1699_s3 = inlined_call_operand.vmem [shape: bf16[50,128], index: 3, kind: output, shape index: {}]  }
   0x1   :  { %v1301_v0 = vld [vmem:[%s1696_s1 + $0x40] sm:$0xff]   ;;  %v1305_v4 = vld [vmem:[%s1696_s1 + $0x48] sm:$0xff]   ;;  %v1309_v8 = vld [vmem:[%s1696_s1 + $0x50] sm:$0xff]  }
   0x2   :  { %v1302_v1 = vld [vmem:[%s1696_s1 + $0xc0] sm:$0xff]   ;;  %1141 = vmatprep.subr.bf16.mxu0 %v1301_v0  ;;  %v1306_v5 = vld [vmem:[%s1696_s1 + $0xc8] sm:$0xff]   ;;  %v1310_v9 = vld [vmem:[%s1696_s1 + $0xd0] sm:$0xff]  }
   0x3   :  { %v1303_v2 = vld [vmem:[%s1696_s1] sm:$0xff]   ;;  %1181 = vmatprep.subr.bf16.mxu1 %v1302_v1  ;;  %v1307_v6 = vld [vmem:[%s1696_s1 + $0x8] sm:$0xff]   ;;  %v1311_v10 = vld [vmem:[%s1696_s1 + $0x10] sm:$0xff]  }
   0x4   :  { %v1304_v3 = vld [vmem:[%s1696_s1 + $0x80] sm:$0xff]   ;;  %1142 = vmatpush3.bf16.msra.mxu0 %v1303_v2  ;;  %v1308_v7 = vld [vmem:[%s1696_s1 + $0x88] sm:$0xff]   ;;  %v1312_v11 = vld [vmem:[%s1696_s1 + $0x90] sm:$0xff]  }
   0x5   :  { %1182 = vmatpush3.bf16.msra.mxu1 %v1304_v3  ;;  %1143 = vmatprep.subr.bf16.mxu0 %v1305_v4  ;;  %v1313_v12 = vld [vmem:[%s1696_s1 + $0x58] sm:$0xff]   ;;  %v1317_v16 = vld [vmem:[%s1696_s1 + $0x60] sm:$0xff]   ;;  %v1321_v20 = vld [vmem:[%s1696_s1 + $0x68] sm:$0xff]  }
   0x6   :  { %1183 = vmatprep.subr.bf16.mxu1 %v1306_v5  ;;  %v1314_v13 = vld [vmem:[%s1696_s1 + $0xd8] sm:$0xff]   ;;  %v1318_v17 = vld [vmem:[%s1696_s1 + $0xe0] sm:$0xff]   ;;  %v1322_v21 = vld [vmem:[%s1696_s1 + $0xe8] sm:$0xff]  }
   0x7   :  { %v1315_v14 = vld [vmem:[%s1696_s1 + $0x18] sm:$0xff]   ;;  %v1319_v18 = vld [vmem:[%s1696_s1 + $0x20] sm:$0xff]   ;;  %v1323_v22 = vld [vmem:[%s1696_s1 + $0x28] sm:$0xff]  }
   0x8   :  { %1144 = vmatpush3.bf16.msra.mxu0 %v1307_v6  ;;  %v1316_v15 = vld [vmem:[%s1696_s1 + $0x98] sm:$0xff]   ;;  %v1320_v19 = vld [vmem:[%s1696_s1 + $0xa0] sm:$0xff]   ;;  %v1324_v23 = vld [vmem:[%s1696_s1 + $0xa8] sm:$0xff]  }
   0x9   :  { %1184 = vmatpush3.bf16.msra.mxu1 %v1308_v7  ;;  %1145 = vmatprep.subr.bf16.mxu0 %v1309_v8  ;;  %v1325_v24 = vld [vmem:[%s1696_s1 + $0x70] sm:$0xff]   ;;  %v1329_v28 = vld [vmem:[%s1696_s1 + $0x78] sm:$0xff]   ;;  %v15_v32 = vld [vmem:[%s1697_s0] sm:$0xff] }
   0xa   :  { %1185 = vmatprep.subr.bf16.mxu1 %v1310_v9  ;;  %v1326_v25 = vld [vmem:[%s1696_s1 + $0xf0] sm:$0xff]   ;;  %v1330_v29 = vld [vmem:[%s1696_s1 + $0xf8] sm:$0xff]   ;;  %v19_v33 = vld [vmem:[%s1697_s0 + $0x20] sm:$0xff] }
   0xb   :  { %v1327_v26 = vld [vmem:[%s1696_s1 + $0x30] sm:$0xff]   ;;  %v1331_v30 = vld [vmem:[%s1696_s1 + $0x38] sm:$0xff]   ;;  %v16_v34 = vld [vmem:[%s1697_s0 + $0x8] sm:$0xff]  ;;  %v1014_v35 = vcombine.low %v15_v32, %v19_v33  ;;  %v1015_v36 = vcombine.high %v15_v32, %v19_v33 }
   0xc   :  { %1146 = vmatpush3.bf16.msra.mxu0 %v1311_v10  ;;  %v1328_v27 = vld [vmem:[%s1696_s1 + $0xb0] sm:$0xff]   ;;  %v1332_v31 = vld [vmem:[%s1696_s1 + $0xb8] sm:$0xff]   ;;  %v20_v37 = vld [vmem:[%s1697_s0 + $0x28] sm:$0xff] }
   0xd   :  { %1186 = vmatpush3.bf16.msra.mxu1 %v1312_v11  ;;  %1147 = vmatprep.subr.bf16.mxu0 %v1313_v12  ;;  %v1016_v38 = vcombine.low %v16_v34, %v20_v37  ;;  %v1017_v39 = vcombine.high %v16_v34, %v20_v37  ;;  %v1333_v40 = vld [vmem:[%s1696_s1 + $0x140] sm:$0xff]   ;;  %v1337_v44 = vld [vmem:[%s1696_s1 + $0x148] sm:$0xff]   ;;  %v1341_v56 = vld [vmem:[%s1696_s1 + $0x150] sm:$0xff]  }
   0xe   :  { %1187 = vmatprep.subr.bf16.mxu1 %v1314_v13  ;;  %742 = vmatprep.mubr.bf16.mxu0 %v1015_v36  ;;  %v1334_v41 = vld [vmem:[%s1696_s1 + $0x1c0] sm:$0xff]   ;;  %v1338_v45 = vld [vmem:[%s1696_s1 + $0x1c8] sm:$0xff]   ;;  %v1342_v57 = vld [vmem:[%s1696_s1 + $0x1d0] sm:$0xff]  }
   0xf   :  { %806 = vmatprep.mubr.bf16.mxu1 %v1017_v39  ;;  %v1335_v42 = vld [vmem:[%s1696_s1 + $0x100] sm:$0xff]   ;;  %v1339_v46 = vld [vmem:[%s1696_s1 + $0x108] sm:$0xff]   ;;  %v1343_v58 = vld [vmem:[%s1696_s1 + $0x110] sm:$0xff]  }
  0x10   :  { %1148 = vmatpush3.bf16.msra.mxu0 %v1315_v14  ;;  %v1336_v43 = vld [vmem:[%s1696_s1 + $0x180] sm:$0xff]   ;;  %v1340_v47 = vld [vmem:[%s1696_s1 + $0x188] sm:$0xff]   ;;  %v1344_v59 = vld [vmem:[%s1696_s1 + $0x190] sm:$0xff]  }
  0x11   :  { %1188 = vmatpush3.bf16.msra.mxu1 %v1316_v15  ;;  %1149 = vmatprep.subr.bf16.mxu0 %v1317_v16  ;;  %v23_v48 = vld [vmem:[%s1697_s0 + $0x40] sm:$0xff]  ;;  %v24_v51 = vld [vmem:[%s1697_s0 + $0x48] sm:$0xff]  ;;  %v1345_v60 = vld [vmem:[%s1696_s1 + $0x158] sm:$0xff]  }
  0x12   :  { %1189 = vmatprep.subr.bf16.mxu1 %v1318_v17  ;;  %v27_v49 = vld [vmem:[%s1697_s0 + $0x60] sm:$0xff]  ;;  %v28_v52 = vld [vmem:[%s1697_s0 + $0x68] sm:$0xff]  ;;  %v1346_v61 = vld [vmem:[%s1696_s1 + $0x1d8] sm:$0xff]  }
  0x13   :  { %v1023_v50 = vcombine.high %v23_v48, %v27_v49  ;;  %v1022_v53 = vcombine.low %v23_v48, %v27_v49  ;;  %v1025_v54 = vcombine.high %v24_v51, %v28_v52  ;;  %v1024_v55 = vcombine.low %v24_v51, %v28_v52  ;;  %v1347_v62 = vld [vmem:[%s1696_s1 + $0x118] sm:$0xff]   ;;  %v31_v0 = vld [vmem:[%s1697_s0 + $0x80] sm:$0xff]  ;;  %v32_v2 = vld [vmem:[%s1697_s0 + $0x88] sm:$0xff] }
  0x14   :  { %1150 = vmatpush3.bf16.msra.mxu0 %v1319_v18  ;;  %v1348_v63 = vld [vmem:[%s1696_s1 + $0x198] sm:$0xff]   ;;  %v35_v1 = vld [vmem:[%s1697_s0 + $0xa0] sm:$0xff]  ;;  %v36_v3 = vld [vmem:[%s1697_s0 + $0xa8] sm:$0xff] }
  0x15   :  { %1190 = vmatpush3.bf16.msra.mxu1 %v1320_v19  ;;  %1151 = vmatprep.subr.bf16.mxu0 %v1321_v20  ;;  %v1031_v4 = vcombine.high %v31_v0, %v35_v1  ;;  %v1033_v5 = vcombine.high %v32_v2, %v36_v3  ;;  %v1030_v6 = vcombine.low %v31_v0, %v35_v1  ;;  %v1349_v8 = vld [vmem:[%s1696_s1 + $0x160] sm:$0xff]   ;;  %v1353_v12 = vld [vmem:[%s1696_s1 + $0x168] sm:$0xff]   ;;  %v18_v32 = vld [vmem:[%s1697_s0 + $0x18] sm:$0xff] }
  0x16   :  { %1191 = vmatprep.subr.bf16.mxu1 %v1322_v21  ;;  %v1032_v7 = vcombine.low %v32_v2, %v36_v3  ;;  %v1350_v9 = vld [vmem:[%s1696_s1 + $0x1e0] sm:$0xff]   ;;  %v1354_v13 = vld [vmem:[%s1696_s1 + $0x1e8] sm:$0xff]   ;;  %v1361_v21 = vld [vmem:[%s1696_s1 + $0x170] sm:$0xff]  }
  0x17   :  { %v1351_v10 = vld [vmem:[%s1696_s1 + $0x120] sm:$0xff]   ;;  %v1355_v14 = vld [vmem:[%s1696_s1 + $0x128] sm:$0xff]   ;;  %v22_v33 = vld [vmem:[%s1697_s0 + $0x38] sm:$0xff] }
  0x18   :  { %1152 = vmatpush3.bf16.msra.mxu0 %v1323_v22  ;;  %v1352_v11 = vld [vmem:[%s1696_s1 + $0x1a0] sm:$0xff]   ;;  %v1356_v15 = vld [vmem:[%s1696_s1 + $0x1a8] sm:$0xff]   ;;  %v1020_v36 = vcombine.low %v18_v32, %v22_v33  ;;  %v25_v37 = vld [vmem:[%s1697_s0 + $0x50] sm:$0xff] }
  0x19   :  { %1192 = vmatpush3.bf16.msra.mxu1 %v1324_v23  ;;  %1153 = vmatprep.subr.bf16.mxu0 %v1325_v24  ;;  %v39_v16 = vld [vmem:[%s1697_s0 + $0xc0] sm:$0x11]  ;;  %v40_v17 = vld [vmem:[%s1697_s0 + $0xc8] sm:$0x11]  ;;  %v1362_v23 = vld [vmem:[%s1696_s1 + $0x1f0] sm:$0xff]  }
  0x1a   :  { %1193 = vmatprep.subr.bf16.mxu1 %v1326_v25  ;;  %v1039_v18 = vcombine.high %v39_v16, %v39_v16  ;;  %v1041_v19 = vcombine.high %v40_v17, %v40_v17  ;;  %v1038_v20 = vcombine.low %v39_v16, %v39_v16  ;;  %v1040_v22 = vcombine.low %v40_v17, %v40_v17  ;;  %v1363_v24 = vld [vmem:[%s1696_s1 + $0x130] sm:$0xff]   ;;  %v26_v39 = vld [vmem:[%s1697_s0 + $0x58] sm:$0xff] }
  0x1b   :  { %v1364_v25 = vld [vmem:[%s1696_s1 + $0x1b0] sm:$0xff]  }
  0x1c   :  { %1154 = vmatpush3.bf16.msra.mxu0 %v1327_v26  ;;  %v1365_v26 = vld [vmem:[%s1696_s1 + $0x178] sm:$0xff]   ;;  %v41_v52 = vld [vmem:[%s1697_s0 + $0xd0] sm:$0x11] }
  0x1d   :  { %1194 = vmatpush3.bf16.msra.mxu1 %v1328_v27  ;;  %1155 = vmatprep.subr.bf16.mxu0 %v1329_v28  ;;  %v1366_v27 = vld [vmem:[%s1696_s1 + $0x1f8] sm:$0xff]  }
  0x1e   :  { %1195 = vmatprep.subr.bf16.mxu1 %v1330_v29  ;;  %v1367_v28 = vld [vmem:[%s1696_s1 + $0x138] sm:$0xff]  }
  0x1f   :  { %v1368_v29 = vld [vmem:[%s1696_s1 + $0x1b8] sm:$0xff]  }
  0x20   :  { %1156 = vmatpush3.bf16.msra.mxu0 %v1331_v30  ;;  %v17_v30 = vld [vmem:[%s1697_s0 + $0x10] sm:$0xff] }
  0x21   :  { %1196 = vmatpush3.bf16.msra.mxu1 %v1332_v31  ;;  %1221 = vmatprep.subr.bf16.mxu0 %v1333_v40  ;;  %v21_v31 = vld [vmem:[%s1697_s0 + $0x30] sm:$0xff]  ;;  %v1021_v40 = vcombine.high %v18_v32, %v22_v33 }
  0x22   :  { %1261 = vmatprep.subr.bf16.mxu1 %v1334_v41  ;;  %v1018_v34 = vcombine.low %v17_v30, %v21_v31 }
  0x23   :  { %743 = vmatmul.mubr.bf16.vlgmr.msra.gmra.mrb[0].mxu0 %v1014_v35  ;;  %v1019_v35 = vcombine.high %v17_v30, %v21_v31 }
  0x24   :  { %807 = vmatmul.mubr.bf16.vlgmr.msra.gmra.mrb[0].mxu1 %v1016_v38  ;;  %1222 = vmatpush3.bf16.msra.mxu0 %v1335_v42  ;;  %v29_v38 = vld [vmem:[%s1697_s0 + $0x70] sm:$0xff]  ;;  %v30_v42 = vld [vmem:[%s1697_s0 + $0x78] sm:$0xff] }
  0x25   :  { %1262 = vmatpush3.bf16.msra.mxu1 %v1336_v43  ;;  %1223 = vmatprep.subr.bf16.mxu0 %v1337_v44  ;;  %v1027_v41 = vcombine.high %v25_v37, %v29_v38  ;;  %v1029_v43 = vcombine.high %v26_v39, %v30_v42  ;;  %v33_v44 = vld [vmem:[%s1697_s0 + $0x90] sm:$0xff]  ;;  %v1026_v48 = vcombine.low %v25_v37, %v29_v38 }
  0x26   :  { %1263 = vmatprep.subr.bf16.mxu1 %v1338_v45  ;;  %750 = vmatprep.mubr.bf16.mxu0 %v1023_v50  ;;  %v37_v45 = vld [vmem:[%s1697_s0 + $0xb0] sm:$0xff]  ;;  %v1028_v49 = vcombine.low %v26_v39, %v30_v42 }
  0x27   :  { %814 = vmatprep.mubr.bf16.mxu1 %v1025_v54  ;;  %v1035_v50 = vcombine.high %v33_v44, %v37_v45  ;;  %v1034_v54 = vcombine.low %v33_v44, %v37_v45 }
  0x28   :  { %1224 = vmatpush3.bf16.msra.mxu0 %v1339_v46  ;;  %v34_v46 = vld [vmem:[%s1697_s0 + $0x98] sm:$0xff] }
  0x29   :  { %1264 = vmatpush3.bf16.msra.mxu1 %v1340_v47  ;;  %1225 = vmatprep.subr.bf16.mxu0 %v1341_v56  ;;  %v38_v47 = vld [vmem:[%s1697_s0 + $0xb8] sm:$0xff]  ;;  %v1043_v56 = vcombine.high %v41_v52, %v41_v52 }
  0x2a   :  { %1265 = vmatprep.subr.bf16.mxu1 %v1342_v57  ;;  %v1037_v51 = vcombine.high %v34_v46, %v38_v47 }
  0x2b   :  { %751 = vmatmul.mubr.bf16.gmra.mrb[4].mxu0 %v1022_v53  ;;  %v42_v53 = vld [vmem:[%s1697_s0 + $0xd8] sm:$0x11] }
  0x2c   :  { %815 = vmatmul.mubr.bf16.gmra.mrb[4].mxu1 %v1024_v55  ;;  %1226 = vmatpush3.bf16.msra.mxu0 %v1343_v58  ;;  %v1036_v55 = vcombine.low %v34_v46, %v38_v47  ;;  %v1045_v57 = vcombine.high %v42_v53, %v42_v53  ;;  %v1042_v58 = vcombine.low %v41_v52, %v41_v52 }
  0x2d   :  { %1266 = vmatpush3.bf16.msra.mxu1 %v1344_v59  ;;  %1227 = vmatprep.subr.bf16.mxu0 %v1345_v60  ;;  %v1044_v59 = vcombine.low %v42_v53, %v42_v53 }
  0x2e   :  { %1267 = vmatprep.subr.bf16.mxu1 %v1346_v61  ;;  %758 = vmatprep.mubr.bf16.mxu0 %v1031_v4 }
  0x2f   :  { %822 = vmatprep.mubr.bf16.mxu1 %v1033_v5 }
  0x30   :  { %1228 = vmatpush3.bf16.msra.mxu0 %v1347_v62  ;;  %v1013_v62 = vld [vmem:[%s1698_s2] ss:$0 sm:$0xff] }
  0x31   :  { %1268 = vmatpush3.bf16.msra.mxu1 %v1348_v63  ;;  %1229 = vmatprep.subr.bf16.mxu0 %v1349_v8 }
  0x32   :  { %1269 = vmatprep.subr.bf16.mxu1 %v1350_v9 }
  0x33   :  { %759 = vmatmul.mubr.bf16.gmra.mrb[8].mxu0 %v1030_v6 }
  0x34   :  { %823 = vmatmul.mubr.bf16.gmra.mrb[8].mxu1 %v1032_v7  ;;  %1230 = vmatpush3.bf16.msra.mxu0 %v1351_v10 }
  0x35   :  { %1270 = vmatpush3.bf16.msra.mxu1 %v1352_v11  ;;  %1231 = vmatprep.subr.bf16.mxu0 %v1353_v12 }
  0x36   :  { %1271 = vmatprep.subr.bf16.mxu1 %v1354_v13  ;;  %766 = vmatprep.mubr.bf16.mxu0 %v1039_v18 }
  0x37   :  { %830 = vmatprep.mubr.bf16.mxu1 %v1041_v19 }
  0x38   :  { %1232 = vmatpush3.bf16.msra.mxu0 %v1355_v14 }
  0x39   :  { %1272 = vmatpush3.bf16.msra.mxu1 %v1356_v15  ;;  %1233 = vmatprep.subr.bf16.mxu0 %v1361_v21 }
  0x3a   :  { %1273 = vmatprep.subr.bf16.mxu1 %v1362_v23 }
  0x3b   :  { %767 = vmatmul.mubr.bf16.gmra.mrb[12].mxu0 %v1038_v20 }
  0x3c   :  { %831 = vmatmul.mubr.bf16.gmra.mrb[12].mxu1 %v1040_v22  ;;  %1234 = vmatpush3.bf16.msra.mxu0 %v1363_v24 }
  0x3d   :  { %1274 = vmatpush3.bf16.msra.mxu1 %v1364_v25  ;;  %1235 = vmatprep.subr.bf16.mxu0 %v1365_v26 }
  0x3e   :  { %1275 = vmatprep.subr.bf16.mxu1 %v1366_v27  ;;  %870 = vmatprep.mubr.bf16.mxu0 %v1019_v35 }
  0x3f   :  { %934 = vmatprep.mubr.bf16.mxu1 %v1021_v40 }
  0x40   :  { %1236 = vmatpush3.bf16.msra.mxu0 %v1367_v28 }
  0x41   :  { %1276 = vmatpush3.bf16.msra.mxu1 %v1368_v29 }
  0x43   :  { %871 = vmatmul.mubr.bf16.vlgmr.msra.gmra.mrb[16].mxu0 %v1018_v34 }
  0x44   :  { %935 = vmatmul.mubr.bf16.vlgmr.msra.gmra.mrb[16].mxu1 %v1020_v36  ;;  %878 = vmatprep.mubr.bf16.mxu0 %v1027_v41 }
  0x45   :  { %942 = vmatprep.mubr.bf16.mxu1 %v1029_v43 }
  0x4b   :  { %879 = vmatmul.mubr.bf16.gmra.mrb[20].mxu0 %v1026_v48 }
  0x4c   :  { %943 = vmatmul.mubr.bf16.gmra.mrb[20].mxu1 %v1028_v49  ;;  %886 = vmatprep.mubr.bf16.mxu0 %v1035_v50 }
  0x4d   :  { %950 = vmatprep.mubr.bf16.mxu1 %v1037_v51 }
  0x53   :  { %887 = vmatmul.mubr.bf16.gmra.mrb[24].mxu0 %v1034_v54 }
  0x54   :  { %951 = vmatmul.mubr.bf16.gmra.mrb[24].mxu1 %v1036_v55  ;;  %894 = vmatprep.mubr.bf16.mxu0 %v1043_v56 }
  0x55   :  { %958 = vmatprep.mubr.bf16.mxu1 %v1045_v57 }
  0x5b   :  { %895 = vmatmul.mubr.bf16.gmra.mrb[28].mxu0 %v1042_v58 }
  0x5c   :  { %959 = vmatmul.mubr.bf16.gmra.mrb[28].mxu1 %v1044_v59 }
  0xf6   :  { %v1157_v60 = vpop.f32.mrb[0].mxu0 }
  0xf7   :  { %v1197_v61 = vpop.f32.mrb[0].mxu1  ;;  %v1158_v63 = vpop.f32.mrb[1].mxu0 }
  0xf8   :  { %v1159_v0 = vadd.f32 %v1158_v63, %v1157_v60  ;;  %v1198_v1 = vpop.f32.mrb[1].mxu1  ;;  %v1160_v2 = vpop.f32.mrb[2].mxu0 }
  0xf9   :  { %v1199_v3 = vadd.f32 %v1198_v1, %v1197_v61  ;;  %v1200_v4 = vpop.f32.mrb[2].mxu1  ;;  %v1161_v5 = vpop.f32.mrb[3].mxu0 }
  0xfa   :  { %v745_v6 = vadd.f32 %v1159_v0, %v1013_v62  ;;  %v1162_v7 = vadd.f32 %v1161_v5, %v1160_v2  ;;  %v1201_v8 = vpop.f32.mrb[3].mxu1 }
  0xfb   :  { %v1202_v9 = vadd.f32 %v1201_v8, %v1200_v4 }
  0xfc   :  { %v809_v10 = vadd.f32 %v1199_v3, %v745_v6  ;;  %v748_v11 = vadd.f32 %v1162_v7, %v1013_v62 }
  0xfe   :  { %v812_v12 = vadd.f32 %v1202_v9, %v748_v11  ;;  %v1163_v13 = vpop.f32.mrb[4].mxu0 }
  0xff   :  { %v1203_v14 = vpop.f32.mrb[4].mxu1  ;;  %v1164_v15 = vpop.f32.mrb[5].mxu0 }
 0x100   :  { %v1165_v16 = vadd.f32 %v1164_v15, %v1163_v13  ;;  %v1204_v17 = vpop.f32.mrb[5].mxu1  ;;  %v1166_v18 = vpop.f32.mrb[6].mxu0 }
 0x101   :  { %v1205_v19 = vadd.f32 %v1204_v17, %v1203_v14  ;;  %v1206_v20 = vpop.f32.mrb[6].mxu1  ;;  %v1167_v21 = vpop.f32.mrb[7].mxu0 }
 0x102   :  { %v753_v22 = vadd.f32 %v1165_v16, %v1013_v62  ;;  %v1168_v23 = vadd.f32 %v1167_v21, %v1166_v18  ;;  %v1207_v24 = vpop.f32.mrb[7].mxu1 }
 0x103   :  { %v1208_v25 = vadd.f32 %v1207_v24, %v1206_v20 }
 0x104   :  { %v817_v26 = vadd.f32 %v1205_v19, %v753_v22  ;;  %v756_v27 = vadd.f32 %v1168_v23, %v1013_v62 }
 0x106   :  { %v1672_v28 = vadd.f32 %v1208_v25, %v756_v27  ;;  %v1169_v29 = vpop.f32.mrb[8].mxu0 }
 0x107   :  { %v1209_v30 = vpop.f32.mrb[8].mxu1  ;;  %v1170_v31 = vpop.f32.mrb[9].mxu0 }
 0x108   :  { %v1210_v32 = vpop.f32.mrb[9].mxu1  ;;  %v1171_v33 = vadd.f32 %v1170_v31, %v1169_v29  ;;  %v1172_v35 = vpop.f32.mrb[10].mxu0 }
 0x109   :  { %v1211_v34 = vadd.f32 %v1210_v32, %v1209_v30  ;;  %v1212_v36 = vpop.f32.mrb[10].mxu1  ;;  %v1173_v37 = vpop.f32.mrb[11].mxu0 }
 0x10a   :  { %v1213_v38 = vpop.f32.mrb[11].mxu1  ;;  %v761_v39 = vadd.f32 %v1171_v33, %v1013_v62  ;;  %v1174_v40 = vadd.f32 %v1173_v37, %v1172_v35 }
 0x10b   :  { %v1214_v41 = vadd.f32 %v1213_v38, %v1212_v36 }
 0x10c   :  { %v1674_v42 = vadd.f32 %v1211_v34, %v761_v39  ;;  %v764_v43 = vadd.f32 %v1174_v40, %v1013_v62 }
 0x10e   :  { %v1676_v44 = vadd.f32 %v1214_v41, %v764_v43  ;;  %v1175_v45 = vpop.f32.mrb[12].mxu0 }
 0x10f   :  { %v1215_v46 = vpop.f32.mrb[12].mxu1  ;;  %v1176_v47 = vpop.f32.mrb[13].mxu0 }
 0x110   :  { %v1216_v48 = vpop.f32.mrb[13].mxu1  ;;  %v1177_v49 = vadd.f32 %v1176_v47, %v1175_v45  ;;  %v1178_v51 = vpop.f32.mrb[14].mxu0 }
 0x111   :  { %v1217_v50 = vadd.f32 %v1216_v48, %v1215_v46  ;;  %v1218_v52 = vpop.f32.mrb[14].mxu1  ;;  %v1179_v53 = vpop.f32.mrb[15].mxu0 }
 0x112   :  { %v1219_v54 = vpop.f32.mrb[15].mxu1  ;;  %v769_v55 = vadd.f32 %v1177_v49, %v1013_v62 }
 0x114   :  { %v1678_v56 = vadd.f32 %v1217_v50, %v769_v55 }
 0x116   :  { %v1237_v57 = vpop.f32.mrb[16].mxu0 }
 0x117   :  { %v1277_v58 = vpop.f32.mrb[16].mxu1  ;;  %v1238_v59 = vpop.f32.mrb[17].mxu0 }
 0x118   :  { %v1239_v60 = vadd.f32 %v1238_v59, %v1237_v57  ;;  %v1278_v61 = vpop.f32.mrb[17].mxu1  ;;  %v1240_v63 = vpop.f32.mrb[18].mxu0 }
 0x119   :  { %v1279_v0 = vadd.f32 %v1278_v61, %v1277_v58  ;;  %v1280_v1 = vpop.f32.mrb[18].mxu1  ;;  %v1241_v2 = vpop.f32.mrb[19].mxu0 }
 0x11a   :  { %v873_v3 = vadd.f32 %v1239_v60, %v809_v10  ;;  %v1242_v4 = vadd.f32 %v1241_v2, %v1240_v63  ;;  %v1281_v5 = vpop.f32.mrb[19].mxu1 }
 0x11b   :  { %v1282_v6 = vadd.f32 %v1281_v5, %v1280_v1 }
 0x11c   :  { %v937_v7 = vadd.f32 %v1279_v0, %v873_v3  ;;  %v876_v8 = vadd.f32 %v1242_v4, %v812_v12 }
 0x11e   :  { %v940_v9 = vadd.f32 %v1282_v6, %v876_v8  ;;  %v1243_v11 = vpop.f32.mrb[20].mxu0  ;;  %v966_v14 = vmax.f32 %v937_v7, 0.0 }
 0x11f   :  { %v1283_v62 = vpop.f32.mrb[20].mxu1  ;;  %v1244_v13 = vpop.f32.mrb[21].mxu0 }
 0x120   :  { %v967_v15 = vmax.f32 %v940_v9, 0.0  ;;  %v1245_v16 = vadd.f32 %v1244_v13, %v1243_v11  ;;  %v1284_v17 = vpop.f32.mrb[21].mxu1  ;;  %v1246_v18 = vpop.f32.mrb[22].mxu0 }
 0x121   :  { %v1285_v19 = vadd.f32 %v1284_v17, %v1283_v62  ;;  %v1286_v20 = vpop.f32.mrb[22].mxu1  ;;  %v1247_v21 = vpop.f32.mrb[23].mxu0 }
 0x122   :  { %v1127_v22 = vpack.c.bf16 %v967_v15, %v966_v14  ;;  %v881_v23 = vadd.f32 %v1245_v16, %v817_v26  ;;  %v1248_v10 = vadd.f32 %v1247_v21, %v1246_v18  ;;  %v1287_v24 = vpop.f32.mrb[23].mxu1 }
 0x123   :  { %v1288_v25 = vadd.f32 %v1287_v24, %v1286_v20 }
 0x124   :  { %1128 = vst [vmem:[%s1699_s3] sm:$0xff] %v1127_v22   ;;  %v945_v12 = vadd.f32 %v1285_v19, %v881_v23  ;;  %v884_v27 = vadd.f32 %v1248_v10, %v1672_v28 }
 0x126   :  { %v948_v29 = vadd.f32 %v1288_v25, %v884_v27  ;;  %v1249_v30 = vpop.f32.mrb[24].mxu0  ;;  %v968_v33 = vmax.f32 %v945_v12, 0.0 }
 0x127   :  { %v1289_v31 = vpop.f32.mrb[24].mxu1  ;;  %v1250_v32 = vpop.f32.mrb[25].mxu0 }
 0x128   :  { %v969_v34 = vmax.f32 %v948_v29, 0.0  ;;  %v1251_v35 = vadd.f32 %v1250_v32, %v1249_v30  ;;  %v1290_v36 = vpop.f32.mrb[25].mxu1  ;;  %v1252_v37 = vpop.f32.mrb[26].mxu0 }
 0x129   :  { %v1291_v26 = vadd.f32 %v1290_v36, %v1289_v31  ;;  %v1292_v38 = vpop.f32.mrb[26].mxu1  ;;  %v1253_v39 = vpop.f32.mrb[27].mxu0 }
 0x12a   :  { %v1132_v40 = vpack.c.bf16 %v969_v34, %v968_v33  ;;  %v889_v41 = vadd.f32 %v1251_v35, %v1674_v42  ;;  %v1254_v43 = vadd.f32 %v1253_v39, %v1252_v37  ;;  %v1293_v45 = vpop.f32.mrb[27].mxu1 }
 0x12b   :  { %v1294_v46 = vadd.f32 %v1293_v45, %v1292_v38 }
 0x12c   :  { %1139 = vst [vmem:[%s1699_s3 + $0x8] sm:$0xff] %v1132_v40   ;;  %v953_v28 = vadd.f32 %v1291_v26, %v889_v41  ;;  %v892_v47 = vadd.f32 %v1254_v43, %v1676_v44 }
 0x12e   :  { %v956_v48 = vadd.f32 %v1294_v46, %v892_v47  ;;  %v1255_v49 = vpop.f32.mrb[28].mxu0  ;;  %v970_v52 = vmax.f32 %v953_v28, 0.0 }
 0x12f   :  { %v1295_v50 = vpop.f32.mrb[28].mxu1  ;;  %v1256_v51 = vpop.f32.mrb[29].mxu0 }
 0x130   :  { %v971_v53 = vmax.f32 %v956_v48, 0.0  ;;  %v1257_v54 = vadd.f32 %v1256_v51, %v1255_v49  ;;  %v1296_v55 = vpop.f32.mrb[29].mxu1  ;;  %v1258_v57 = vpop.f32.mrb[30].mxu0 }
 0x131   :  { %v1297_v42 = vadd.f32 %v1296_v55, %v1295_v50  ;;  %v1298_v58 = vpop.f32.mrb[30].mxu1  ;;  %v1259_v59 = vpop.f32.mrb[31].mxu0 }
 0x132   :  { %v1137_v60 = vpack.c.bf16 %v971_v53, %v970_v52  ;;  %v897_v61 = vadd.f32 %v1257_v54, %v1678_v56  ;;  %v1299_v63 = vpop.f32.mrb[31].mxu1 }
 0x134   :  { %1140 = vst [vmem:[%s1699_s3 + $0x10] sm:$0xff] %v1137_v60   ;;  %v961_v44 = vadd.f32 %v1297_v42, %v897_v61 }
 0x136   :  { %v972_v0 = vmax.f32 %v961_v44, 0.0 }
 0x138   :  { %v1123_v1 = vpack.c.bf16 %v972_v0, %v972_v0 }
 0x13a   :  { %1008 = vst [vmem:[%s1699_s3 + $0x18] sm:$0x1] %v1123_v1 }

// kernel: forward.9
= control target key start
LH: loop header
LB: loop body
LE: loop exit
PB: predicated region body
PF: predicated region fallthrough
CT: control target
= control target key end

     0   :  { %v159_v38 = vlaneseq  ;;  %v1964_v39 = vmov 1966171168   ;;  %s2541_s0 = inlined_call_operand.vmem [shape: bf16[2,512], index: 0, kind: input, shape index: {}]   ;;  %s2542_s1 = inlined_call_operand.vmem [shape: bf16[512,512], index: 1, kind: input, shape index: {}]   ;;  %s2543_s2 = inlined_call_operand.vmem [shape: f32[1,512], index: 2, kind: input, shape index: {}]   ;;  %s2544_s3 = inlined_call_operand.vmem [shape: bf16[512,40], index: 3, kind: input, shape index: {}]   ;;  %s2545_s4 = inlined_call_operand.vmem [shape: f32[1,40], index: 4, kind: input, shape index: {}]   ;;  %s2546_s5 = inlined_call_operand.vmem [shape: f32[40,10], index: 5, kind: input, shape index: {}]   ;;  %s2547_s6 = inlined_call_operand.vmem [shape: f32[1,10], index: 6, kind: input, shape index: {}]   ;;  %s2548_s7 = inlined_call_operand.hbm [shape: f32[2,10], index: 7, kind: output, shape index: {}]  }
   0x1   :  { %v1716_v0 = vld [vmem:[%s2542_s1 + $0x4] ss:$16 sps:$4 sm:$0xff]   ;;  %v1718_v1 = vld [vmem:[%s2542_s1 + $0xc] ss:$16 sps:$4 sm:$0xff]   ;;  %v1720_v2 = vld [vmem:[%s2542_s1] ss:$16 sps:$4 sm:$0xff]   ;;  %v189_v40 = vunpack.c.l.s4 %v1964_v39 }
   0x2   :  { %848 = vmatprep.subr.bf16.mxu0 %v1716_v0  ;;  %v1721_v3 = vld [vmem:[%s2542_s1 + $0x8] ss:$16 sps:$4 sm:$0xff]   ;;  %930 = vmatprep.subr.bf16.mxu1 %v1718_v1  ;;  %v1722_v4 = vld [vmem:[%s2542_s1 + $0x24] ss:$16 sps:$4 sm:$0xff]   ;;  %v1724_v5 = vld [vmem:[%s2542_s1 + $0x2c] ss:$16 sps:$4 sm:$0xff]  }
   0x3   :  { %849 = vmatpush1.bf16.msra.mxu0 %v1720_v2  ;;  %931 = vmatpush1.bf16.msra.mxu1 %v1721_v3  ;;  %v1726_v6 = vld [vmem:[%s2542_s1 + $0x20] ss:$16 sps:$4 sm:$0xff]   ;;  %v1727_v7 = vld [vmem:[%s2542_s1 + $0x28] ss:$16 sps:$4 sm:$0xff]   ;;  %v1728_v8 = vld [vmem:[%s2542_s1 + $0x44] ss:$16 sps:$4 sm:$0xff]   ;;  %v190_v46 = vunpack.c.0.s8 %v189_v40 }
   0x4   :  { %850 = vmatprep.subr.bf16.mxu0 %v1722_v4  ;;  %932 = vmatprep.subr.bf16.mxu1 %v1724_v5  ;;  %v1730_v9 = vld [vmem:[%s2542_s1 + $0x4c] ss:$16 sps:$4 sm:$0xff]   ;;  %v1732_v10 = vld [vmem:[%s2542_s1 + $0x40] ss:$16 sps:$4 sm:$0xff]   ;;  %v1733_v11 = vld [vmem:[%s2542_s1 + $0x48] ss:$16 sps:$4 sm:$0xff]  }
   0x5   :  { %v1734_v12 = vld [vmem:[%s2542_s1 + $0x64] ss:$16 sps:$4 sm:$0xff]   ;;  %v1736_v13 = vld [vmem:[%s2542_s1 + $0x6c] ss:$16 sps:$4 sm:$0xff]   ;;  %v1738_v14 = vld [vmem:[%s2542_s1 + $0x60] ss:$16 sps:$4 sm:$0xff]  }
   0x6   :  { %v1739_v15 = vld [vmem:[%s2542_s1 + $0x68] ss:$16 sps:$4 sm:$0xff]   ;;  %v1740_v16 = vld [vmem:[%s2542_s1 + $0x84] ss:$16 sps:$4 sm:$0xff]   ;;  %v1742_v17 = vld [vmem:[%s2542_s1 + $0x8c] ss:$16 sps:$4 sm:$0xff]  }
   0x7   :  { %851 = vmatpush1.bf16.msra.mxu0 %v1726_v6  ;;  %933 = vmatpush1.bf16.msra.mxu1 %v1727_v7  ;;  %v1744_v18 = vld [vmem:[%s2542_s1 + $0x80] ss:$16 sps:$4 sm:$0xff]   ;;  %v1745_v19 = vld [vmem:[%s2542_s1 + $0x88] ss:$16 sps:$4 sm:$0xff]   ;;  %v1746_v20 = vld [vmem:[%s2542_s1 + $0xa4] ss:$16 sps:$4 sm:$0xff]  }
   0x8   :  { %852 = vmatprep.subr.bf16.mxu0 %v1728_v8  ;;  %934 = vmatprep.subr.bf16.mxu1 %v1730_v9  ;;  %v1748_v21 = vld [vmem:[%s2542_s1 + $0xac] ss:$16 sps:$4 sm:$0xff]   ;;  %v1750_v22 = vld [vmem:[%s2542_s1 + $0xa0] ss:$16 sps:$4 sm:$0xff]   ;;  %v1751_v23 = vld [vmem:[%s2542_s1 + $0xa8] ss:$16 sps:$4 sm:$0xff]  }
   0x9   :  { %v1752_v24 = vld [vmem:[%s2542_s1 + $0xc4] ss:$16 sps:$4 sm:$0xff]   ;;  %v1754_v25 = vld [vmem:[%s2542_s1 + $0xcc] ss:$16 sps:$4 sm:$0xff]   ;;  %v1756_v26 = vld [vmem:[%s2542_s1 + $0xc0] ss:$16 sps:$4 sm:$0xff]  }
   0xa   :  { %v1757_v27 = vld [vmem:[%s2542_s1 + $0xc8] ss:$16 sps:$4 sm:$0xff]   ;;  %v1758_v28 = vld [vmem:[%s2542_s1 + $0xe4] ss:$16 sps:$4 sm:$0xff]   ;;  %v1760_v29 = vld [vmem:[%s2542_s1 + $0xec] ss:$16 sps:$4 sm:$0xff]  }
   0xb   :  { %853 = vmatpush1.bf16.msra.mxu0 %v1732_v10  ;;  %935 = vmatpush1.bf16.msra.mxu1 %v1733_v11  ;;  %v1762_v30 = vld [vmem:[%s2542_s1 + $0xe0] ss:$16 sps:$4 sm:$0xff]   ;;  %v1763_v31 = vld [vmem:[%s2542_s1 + $0xe8] ss:$16 sps:$4 sm:$0xff]   ;;  %v1764_v32 = vld [vmem:[%s2542_s1 + $0x104] ss:$16 sps:$4 sm:$0xff]  }
   0xc   :  { %854 = vmatprep.subr.bf16.mxu0 %v1734_v12  ;;  %936 = vmatprep.subr.bf16.mxu1 %v1736_v13  ;;  %v1766_v33 = vld [vmem:[%s2542_s1 + $0x10c] ss:$16 sps:$4 sm:$0xff]   ;;  %v1768_v34 = vld [vmem:[%s2542_s1 + $0x100] ss:$16 sps:$4 sm:$0xff]   ;;  %v1769_v35 = vld [vmem:[%s2542_s1 + $0x108] ss:$16 sps:$4 sm:$0xff]  }
   0xd   :  { %v1770_v36 = vld [vmem:[%s2542_s1 + $0x124] ss:$16 sps:$4 sm:$0xff]   ;;  %v1772_v37 = vld [vmem:[%s2542_s1 + $0x12c] ss:$16 sps:$4 sm:$0xff]   ;;  %v1774_v41 = vld [vmem:[%s2542_s1 + $0x120] ss:$16 sps:$4 sm:$0xff]  }
   0xe   :  { %v1775_v42 = vld [vmem:[%s2542_s1 + $0x128] ss:$16 sps:$4 sm:$0xff]   ;;  %v1776_v43 = vld [vmem:[%s2542_s1 + $0x144] ss:$16 sps:$4 sm:$0xff]   ;;  %v1778_v44 = vld [vmem:[%s2542_s1 + $0x14c] ss:$16 sps:$4 sm:$0xff]  }
   0xf   :  { %855 = vmatpush1.bf16.msra.mxu0 %v1738_v14  ;;  %937 = vmatpush1.bf16.msra.mxu1 %v1739_v15  ;;  %v2135_v45 = vshrl.u32 %v159_v38, 7  ;;  %v1780_v47 = vld [vmem:[%s2542_s1 + $0x140] ss:$16 sps:$4 sm:$0xff]   ;;  %v1781_v48 = vld [vmem:[%s2542_s1 + $0x148] ss:$16 sps:$4 sm:$0xff]  }
  0x10   :  { %856 = vmatprep.subr.bf16.mxu0 %v1740_v16  ;;  %938 = vmatprep.subr.bf16.mxu1 %v1742_v17  ;;  %v1782_v49 = vld [vmem:[%s2542_s1 + $0x164] ss:$16 sps:$4 sm:$0xff]   ;;  %v1784_v50 = vld [vmem:[%s2542_s1 + $0x16c] ss:$16 sps:$4 sm:$0xff]   ;;  %v1786_v53 = vld [vmem:[%s2542_s1 + $0x160] ss:$16 sps:$4 sm:$0xff]  }
  0x11   :  { %v193_v51 = vsub.s32 %v190_v46, %v2135_v45  ;;  %v1466_v52 = vld.sshfl [vmem:[%s2541_s0] sm:$0x33 pattern:$0x75316420]  ;;  %v1787_v54 = vld [vmem:[%s2542_s1 + $0x168] ss:$16 sps:$4 sm:$0xff]  }
  0x12   :  { %v187_v55 = vcombine.high %v1466_v52, %v1466_v52  ;;  %v1788_v56 = vld [vmem:[%s2542_s1 + $0x184] ss:$16 sps:$4 sm:$0xff]   ;;  %v1790_v57 = vld [vmem:[%s2542_s1 + $0x18c] ss:$16 sps:$4 sm:$0xff]   ;;  %v1792_v59 = vld [vmem:[%s2542_s1 + $0x180] ss:$16 sps:$4 sm:$0xff]  }
  0x13   :  { %857 = vmatpush1.bf16.msra.mxu0 %v1744_v18  ;;  %939 = vmatpush1.bf16.msra.mxu1 %v1745_v19  ;;  %v1793_v60 = vld [vmem:[%s2542_s1 + $0x188] ss:$16 sps:$4 sm:$0xff]   ;;  %v1794_v61 = vld [vmem:[%s2542_s1 + $0x1a4] ss:$16 sps:$4 sm:$0xff]   ;;  %v1796_v62 = vld [vmem:[%s2542_s1 + $0x1ac] ss:$16 sps:$4 sm:$0xff]   ;;  %v2216_v12 = vrot.slane %v1466_v52, %v193_v51 }
  0x14   :  { %858 = vmatprep.subr.bf16.mxu0 %v1746_v20  ;;  %940 = vmatprep.subr.bf16.mxu1 %v1748_v21  ;;  %v201_v58 = vrot.slane %v187_v55, %v193_v51  ;;  %v1798_v63 = vld [vmem:[%s2542_s1 + $0x1a0] ss:$16 sps:$4 sm:$0xff]   ;;  %v1799_v0 = vld [vmem:[%s2542_s1 + $0x1a8] ss:$16 sps:$4 sm:$0xff]   ;;  %v1800_v1 = vld [vmem:[%s2542_s1 + $0x1c4] ss:$16 sps:$4 sm:$0xff]  }
  0x15   :  { %v1802_v2 = vld [vmem:[%s2542_s1 + $0x1cc] ss:$16 sps:$4 sm:$0xff]   ;;  %v1804_v3 = vld [vmem:[%s2542_s1 + $0x1c0] ss:$16 sps:$4 sm:$0xff]   ;;  %v1805_v4 = vld [vmem:[%s2542_s1 + $0x1c8] ss:$16 sps:$4 sm:$0xff]  }
  0x16   :  { %880 = vmatprep.mubr.bf16.mxu0 %v201_v58  ;;  %962 = vmatprep.mubr.bf16.mxu1 %v201_v58  ;;  %v1806_v5 = vld [vmem:[%s2542_s1 + $0x1e4] ss:$16 sps:$4 sm:$0xff]   ;;  %v1808_v6 = vld [vmem:[%s2542_s1 + $0x1ec] ss:$16 sps:$4 sm:$0xff]   ;;  %v1810_v7 = vld [vmem:[%s2542_s1 + $0x1e0] ss:$16 sps:$4 sm:$0xff]   ;;  %v203_v16 = vcombine.high %v201_v58, %v201_v58 }
  0x17   :  { %859 = vmatpush1.bf16.msra.mxu0 %v1750_v22  ;;  %941 = vmatpush1.bf16.msra.mxu1 %v1751_v23  ;;  %v1811_v8 = vld [vmem:[%s2542_s1 + $0x1e8] ss:$16 sps:$4 sm:$0xff]   ;;  %v1814_v9 = vld [vmem:[%s2542_s1 + $0x204] ss:$16 sps:$4 sm:$0xff]   ;;  %v1817_v10 = vld [vmem:[%s2542_s1 + $0x20c] ss:$16 sps:$4 sm:$0xff]  }
  0x18   :  { %860 = vmatprep.subr.bf16.mxu0 %v1752_v24  ;;  %942 = vmatprep.subr.bf16.mxu1 %v1754_v25  ;;  %v1812_v11 = vld [vmem:[%s2542_s1 + $0x200] ss:$16 sps:$4 sm:$0xff]   ;;  %v1815_v13 = vld [vmem:[%s2542_s1 + $0x208] ss:$16 sps:$4 sm:$0xff]   ;;  %v1820_v14 = vld [vmem:[%s2542_s1 + $0x224] ss:$16 sps:$4 sm:$0xff]  }
  0x19   :  { %v1823_v15 = vld [vmem:[%s2542_s1 + $0x22c] ss:$16 sps:$4 sm:$0xff]   ;;  %v1818_v17 = vld [vmem:[%s2542_s1 + $0x220] ss:$16 sps:$4 sm:$0xff]   ;;  %v1821_v18 = vld [vmem:[%s2542_s1 + $0x228] ss:$16 sps:$4 sm:$0xff]  }
  0x1a   :  { %v1826_v19 = vld [vmem:[%s2542_s1 + $0x244] ss:$16 sps:$4 sm:$0xff]   ;;  %v1829_v20 = vld [vmem:[%s2542_s1 + $0x24c] ss:$16 sps:$4 sm:$0xff]   ;;  %v1824_v21 = vld [vmem:[%s2542_s1 + $0x240] ss:$16 sps:$4 sm:$0xff]  }
  0x1b   :  { %861 = vmatpush1.bf16.msra.mxu0 %v1756_v26  ;;  %943 = vmatpush1.bf16.msra.mxu1 %v1757_v27  ;;  %v1827_v22 = vld [vmem:[%s2542_s1 + $0x248] ss:$16 sps:$4 sm:$0xff]   ;;  %v1832_v23 = vld [vmem:[%s2542_s1 + $0x264] ss:$16 sps:$4 sm:$0xff]   ;;  %v1835_v24 = vld [vmem:[%s2542_s1 + $0x26c] ss:$16 sps:$4 sm:$0xff]  }
  0x1c   :  { %862 = vmatprep.subr.bf16.mxu0 %v1758_v28  ;;  %944 = vmatprep.subr.bf16.mxu1 %v1760_v29  ;;  %v1830_v25 = vld [vmem:[%s2542_s1 + $0x260] ss:$16 sps:$4 sm:$0xff]   ;;  %v1833_v26 = vld [vmem:[%s2542_s1 + $0x268] ss:$16 sps:$4 sm:$0xff]   ;;  %v1838_v27 = vld [vmem:[%s2542_s1 + $0x284] ss:$16 sps:$4 sm:$0xff]  }
  0x1d   :  { %v1841_v28 = vld [vmem:[%s2542_s1 + $0x28c] ss:$16 sps:$4 sm:$0xff]   ;;  %v1836_v29 = vld [vmem:[%s2542_s1 + $0x280] ss:$16 sps:$4 sm:$0xff]   ;;  %v1851_v38 = vld [vmem:[%s2542_s1 + $0x2c8] ss:$16 sps:$4 sm:$0xff]  }
  0x1e   :  { %v1856_v39 = vld [vmem:[%s2542_s1 + $0x2e4] ss:$16 sps:$4 sm:$0xff]   ;;  %v1859_v40 = vld [vmem:[%s2542_s1 + $0x2ec] ss:$16 sps:$4 sm:$0xff]   ;;  %v1860_v46 = vld [vmem:[%s2542_s1 + $0x300] ss:$16 sps:$4 sm:$0xff]  }
  0x1f   :  { %863 = vmatpush1.bf16.msra.mxu0 %v1762_v30  ;;  %945 = vmatpush1.bf16.msra.mxu1 %v1763_v31  ;;  %v1839_v30 = vld [vmem:[%s2542_s1 + $0x288] ss:$16 sps:$4 sm:$0xff]   ;;  %v1844_v31 = vld [vmem:[%s2542_s1 + $0x2a4] ss:$16 sps:$4 sm:$0xff]   ;;  %v1878_v58 = vld [vmem:[%s2542_s1 + $0x360] ss:$16 sps:$4 sm:$0xff]  }
  0x20   :  { %864 = vmatprep.subr.bf16.mxu0 %v1764_v32  ;;  %946 = vmatprep.subr.bf16.mxu1 %v1766_v33  ;;  %v1847_v32 = vld [vmem:[%s2542_s1 + $0x2ac] ss:$16 sps:$4 sm:$0xff]   ;;  %v1842_v33 = vld [vmem:[%s2542_s1 + $0x2a0] ss:$16 sps:$4 sm:$0xff]   ;;  %v1869_v51 = vld [vmem:[%s2542_s1 + $0x328] ss:$16 sps:$4 sm:$0xff]  }
  0x21   :  { %v1874_v52 = vld [vmem:[%s2542_s1 + $0x344] ss:$16 sps:$4 sm:$0xff]   ;;  %v1875_v55 = vld [vmem:[%s2542_s1 + $0x348] ss:$16 sps:$4 sm:$0xff]  }
  0x23   :  { %865 = vmatpush1.bf16.msra.mxu0 %v1768_v34  ;;  %947 = vmatpush1.bf16.msra.mxu1 %v1769_v35  ;;  %v1845_v34 = vld [vmem:[%s2542_s1 + $0x2a8] ss:$16 sps:$4 sm:$0xff]   ;;  %v1850_v35 = vld [vmem:[%s2542_s1 + $0x2c4] ss:$16 sps:$4 sm:$0xff]  }
  0x24   :  { %866 = vmatprep.subr.bf16.mxu0 %v1770_v36  ;;  %948 = vmatprep.subr.bf16.mxu1 %v1772_v37  ;;  %v1853_v36 = vld [vmem:[%s2542_s1 + $0x2cc] ss:$16 sps:$4 sm:$0xff]   ;;  %v1848_v37 = vld [vmem:[%s2542_s1 + $0x2c0] ss:$16 sps:$4 sm:$0xff]  }
  0x27   :  { %867 = vmatpush1.bf16.msra.mxu0 %v1774_v41  ;;  %949 = vmatpush1.bf16.msra.mxu1 %v1775_v42  ;;  %v1854_v41 = vld [vmem:[%s2542_s1 + $0x2e0] ss:$16 sps:$4 sm:$0xff]   ;;  %v1857_v42 = vld [vmem:[%s2542_s1 + $0x2e8] ss:$16 sps:$4 sm:$0xff]  }
  0x28   :  { %868 = vmatprep.subr.bf16.mxu0 %v1776_v43  ;;  %950 = vmatprep.subr.bf16.mxu1 %v1778_v44  ;;  %v1862_v43 = vld [vmem:[%s2542_s1 + $0x304] ss:$16 sps:$4 sm:$0xff]   ;;  %v1865_v44 = vld [vmem:[%s2542_s1 + $0x30c] ss:$16 sps:$4 sm:$0xff]  }
  0x2b   :  { %869 = vmatpush1.bf16.msra.mxu0 %v1780_v47  ;;  %951 = vmatpush1.bf16.msra.mxu1 %v1781_v48  ;;  %v1863_v47 = vld [vmem:[%s2542_s1 + $0x308] ss:$16 sps:$4 sm:$0xff]   ;;  %v1868_v48 = vld [vmem:[%s2542_s1 + $0x324] ss:$16 sps:$4 sm:$0xff]  }
  0x2c   :  { %870 = vmatprep.subr.bf16.mxu0 %v1782_v49  ;;  %952 = vmatprep.subr.bf16.mxu1 %v1784_v50  ;;  %v1871_v49 = vld [vmem:[%s2542_s1 + $0x32c] ss:$16 sps:$4 sm:$0xff]   ;;  %v1866_v50 = vld [vmem:[%s2542_s1 + $0x320] ss:$16 sps:$4 sm:$0xff]  }
  0x2f   :  { %871 = vmatpush1.bf16.msra.mxu0 %v1786_v53  ;;  %953 = vmatpush1.bf16.msra.mxu1 %v1787_v54  ;;  %v1877_v53 = vld [vmem:[%s2542_s1 + $0x34c] ss:$16 sps:$4 sm:$0xff]   ;;  %v1872_v54 = vld [vmem:[%s2542_s1 + $0x340] ss:$16 sps:$4 sm:$0xff]  }
  0x30   :  { %872 = vmatprep.subr.bf16.mxu0 %v1788_v56  ;;  %954 = vmatprep.subr.bf16.mxu1 %v1790_v57  ;;  %v1880_v56 = vld [vmem:[%s2542_s1 + $0x364] ss:$16 sps:$4 sm:$0xff]   ;;  %v1883_v57 = vld [vmem:[%s2542_s1 + $0x36c] ss:$16 sps:$4 sm:$0xff]  }
  0x33   :  { %873 = vmatpush1.bf16.msra.mxu0 %v1792_v59  ;;  %955 = vmatpush1.bf16.msra.mxu1 %v1793_v60  ;;  %v1881_v59 = vld [vmem:[%s2542_s1 + $0x368] ss:$16 sps:$4 sm:$0xff]   ;;  %v1886_v60 = vld [vmem:[%s2542_s1 + $0x384] ss:$16 sps:$4 sm:$0xff]  }
  0x34   :  { %874 = vmatprep.subr.bf16.mxu0 %v1794_v61  ;;  %956 = vmatprep.subr.bf16.mxu1 %v1796_v62  ;;  %v1889_v61 = vld [vmem:[%s2542_s1 + $0x38c] ss:$16 sps:$4 sm:$0xff]   ;;  %v1884_v62 = vld [vmem:[%s2542_s1 + $0x380] ss:$16 sps:$4 sm:$0xff]  }
  0x37   :  { %875 = vmatpush1.bf16.msra.mxu0 %v1798_v63  ;;  %957 = vmatpush1.bf16.msra.mxu1 %v1799_v0  ;;  %v1887_v63 = vld [vmem:[%s2542_s1 + $0x388] ss:$16 sps:$4 sm:$0xff]   ;;  %v1892_v0 = vld [vmem:[%s2542_s1 + $0x3a4] ss:$16 sps:$4 sm:$0xff]  }
  0x38   :  { %876 = vmatprep.subr.bf16.mxu0 %v1800_v1  ;;  %958 = vmatprep.subr.bf16.mxu1 %v1802_v2  ;;  %v1895_v1 = vld [vmem:[%s2542_s1 + $0x3ac] ss:$16 sps:$4 sm:$0xff]  }
  0x3b   :  { %877 = vmatpush1.bf16.msra.mxu0 %v1804_v3  ;;  %959 = vmatpush1.bf16.msra.mxu1 %v1805_v4 }
  0x3c   :  { %878 = vmatprep.subr.bf16.mxu0 %v1806_v5  ;;  %960 = vmatprep.subr.bf16.mxu1 %v1808_v6 }
  0x3f   :  { %879 = vmatpush1.bf16.msra.mxu0 %v1810_v7  ;;  %961 = vmatpush1.bf16.msra.mxu1 %v1811_v8 }
  0x40   :  { %889 = vmatprep.subr.bf16.mxu0 %v1814_v9  ;;  %971 = vmatprep.subr.bf16.mxu1 %v1817_v10 }
  0x42   :  { %881 = vmatmul.mubr.bf16.vlgmr.msra.gmra.mrb[0].mxu0 %v2216_v12  ;;  %963 = vmatmul.mubr.bf16.vlgmr.msra.gmra.mrb[0].mxu1 %v2216_v12 }
  0x43   :  { %890 = vmatpush1.bf16.msra.mxu0 %v1812_v11  ;;  %972 = vmatpush1.bf16.msra.mxu1 %v1815_v13 }
  0x44   :  { %891 = vmatprep.subr.bf16.mxu0 %v1820_v14  ;;  %973 = vmatprep.subr.bf16.mxu1 %v1823_v15 }
  0x45   :  { %921 = vmatprep.mubr.bf16.mxu0 %v203_v16  ;;  %1003 = vmatprep.mubr.bf16.mxu1 %v203_v16 }
  0x47   :  { %892 = vmatpush1.bf16.msra.mxu0 %v1818_v17  ;;  %974 = vmatpush1.bf16.msra.mxu1 %v1821_v18 }
  0x48   :  { %893 = vmatprep.subr.bf16.mxu0 %v1826_v19  ;;  %975 = vmatprep.subr.bf16.mxu1 %v1829_v20 }
  0x4b   :  { %894 = vmatpush1.bf16.msra.mxu0 %v1824_v21  ;;  %976 = vmatpush1.bf16.msra.mxu1 %v1827_v22 }
  0x4c   :  { %895 = vmatprep.subr.bf16.mxu0 %v1832_v23  ;;  %977 = vmatprep.subr.bf16.mxu1 %v1835_v24 }
  0x4f   :  { %896 = vmatpush1.bf16.msra.mxu0 %v1830_v25  ;;  %978 = vmatpush1.bf16.msra.mxu1 %v1833_v26 }
  0x50   :  { %897 = vmatprep.subr.bf16.mxu0 %v1838_v27  ;;  %979 = vmatprep.subr.bf16.mxu1 %v1841_v28 }
  0x53   :  { %898 = vmatpush1.bf16.msra.mxu0 %v1836_v29  ;;  %980 = vmatpush1.bf16.msra.mxu1 %v1839_v30 }
  0x54   :  { %899 = vmatprep.subr.bf16.mxu0 %v1844_v31  ;;  %981 = vmatprep.subr.bf16.mxu1 %v1847_v32 }
  0x57   :  { %900 = vmatpush1.bf16.msra.mxu0 %v1842_v33  ;;  %982 = vmatpush1.bf16.msra.mxu1 %v1845_v34 }
  0x58   :  { %901 = vmatprep.subr.bf16.mxu0 %v1850_v35  ;;  %983 = vmatprep.subr.bf16.mxu1 %v1853_v36 }
  0x5b   :  { %902 = vmatpush1.bf16.msra.mxu0 %v1848_v37  ;;  %984 = vmatpush1.bf16.msra.mxu1 %v1851_v38 }
  0x5c   :  { %903 = vmatprep.subr.bf16.mxu0 %v1856_v39  ;;  %985 = vmatprep.subr.bf16.mxu1 %v1859_v40 }
  0x5f   :  { %904 = vmatpush1.bf16.msra.mxu0 %v1854_v41  ;;  %986 = vmatpush1.bf16.msra.mxu1 %v1857_v42 }
  0x60   :  { %905 = vmatprep.subr.bf16.mxu0 %v1862_v43  ;;  %987 = vmatprep.subr.bf16.mxu1 %v1865_v44 }
  0x63   :  { %906 = vmatpush1.bf16.msra.mxu0 %v1860_v46  ;;  %988 = vmatpush1.bf16.msra.mxu1 %v1863_v47 }
  0x64   :  { %907 = vmatprep.subr.bf16.mxu0 %v1868_v48  ;;  %989 = vmatprep.subr.bf16.mxu1 %v1871_v49 }
  0x67   :  { %908 = vmatpush1.bf16.msra.mxu0 %v1866_v50  ;;  %990 = vmatpush1.bf16.msra.mxu1 %v1869_v51 }
  0x68   :  { %909 = vmatprep.subr.bf16.mxu0 %v1874_v52  ;;  %991 = vmatprep.subr.bf16.mxu1 %v1877_v53 }
  0x6b   :  { %910 = vmatpush1.bf16.msra.mxu0 %v1872_v54  ;;  %992 = vmatpush1.bf16.msra.mxu1 %v1875_v55 }
  0x6c   :  { %911 = vmatprep.subr.bf16.mxu0 %v1880_v56  ;;  %993 = vmatprep.subr.bf16.mxu1 %v1883_v57 }
  0x6f   :  { %912 = vmatpush1.bf16.msra.mxu0 %v1878_v58  ;;  %994 = vmatpush1.bf16.msra.mxu1 %v1881_v59 }
  0x70   :  { %913 = vmatprep.subr.bf16.mxu0 %v1886_v60  ;;  %995 = vmatprep.subr.bf16.mxu1 %v1889_v61 }
  0x71   :  { %12 = vsyncpa [#allocation3], 0  ;;  %v1890_v2 = vld [vmem:[%s2542_s1 + $0x3a0] ss:$16 sps:$4 sm:$0xff]   ;;  %v1893_v3 = vld [vmem:[%s2542_s1 + $0x3a8] ss:$16 sps:$4 sm:$0xff]   ;;  %v202_v15 = vcombine.high %v2216_v12, %v2216_v12 }
  0x72   :  { %v1898_v4 = vld [vmem:[%s2542_s1 + $0x3c4] ss:$16 sps:$4 sm:$0xff]   ;;  %v1901_v5 = vld [vmem:[%s2542_s1 + $0x3cc] ss:$16 sps:$4 sm:$0xff]   ;;  %v1896_v6 = vld [vmem:[%s2542_s1 + $0x3c0] ss:$16 sps:$4 sm:$0xff]  }
  0x73   :  { %914 = vmatpush1.bf16.msra.mxu0 %v1884_v62  ;;  %996 = vmatpush1.bf16.msra.mxu1 %v1887_v63  ;;  %v1899_v7 = vld [vmem:[%s2542_s1 + $0x3c8] ss:$16 sps:$4 sm:$0xff]   ;;  %v1904_v8 = vld [vmem:[%s2542_s1 + $0x3e4] ss:$16 sps:$4 sm:$0xff]   ;;  %v1907_v9 = vld [vmem:[%s2542_s1 + $0x3ec] ss:$16 sps:$4 sm:$0xff]  }
  0x74   :  { %915 = vmatprep.subr.bf16.mxu0 %v1892_v0  ;;  %997 = vmatprep.subr.bf16.mxu1 %v1895_v1  ;;  %v1902_v10 = vld [vmem:[%s2542_s1 + $0x3e0] ss:$16 sps:$4 sm:$0xff]   ;;  %v1905_v11 = vld [vmem:[%s2542_s1 + $0x3e8] ss:$16 sps:$4 sm:$0xff]   ;;  %v1965_v46 = vmov 0.0|0.0   ;;  %v161_v47 = vsub.s32 0, %v2135_v45 }
  0x75   :  { %v1908_v13 = vld [vmem:[%s2544_s3 + $0x40] sm:$0xff]   ;;  %v1912_v18 = vld [vmem:[%s2544_s3 + $0x48] sm:$0xff]   ;;  %v1916_v21 = vld [vmem:[%s2544_s3 + $0x50] sm:$0xff]   ;;  %v169_v48 = vsub.s32 2, %v2135_v45  ;;  %v165_v50 = vsub.s32 1, %v2135_v45  ;;  %v173_v51 = vsub.s32 3, %v2135_v45 }
  0x76   :  { %v1909_v14 = vld [vmem:[%s2544_s3 + $0xc0] sm:$0xff]   ;;  %v1913_v12 = vld [vmem:[%s2544_s3 + $0xc8] sm:$0xff]   ;;  %v1917_v22 = vld [vmem:[%s2544_s3 + $0xd0] sm:$0xff]   ;;  %vm1967_vm0 = vmmov 0   ;;  %vm1376_vm1 = vcmask 326656   ;;  %s1968_s24 = smov [#allocation2]  }
  0x77   :  { %916 = vmatpush1.bf16.msra.mxu0 %v1890_v2  ;;  %998 = vmatpush1.bf16.msra.mxu1 %v1893_v3  ;;  %v1910_v16 = vld [vmem:[%s2544_s3] sm:$0xff]   ;;  %v1914_v19 = vld [vmem:[%s2544_s3 + $0x8] sm:$0xff]   ;;  %v1918_v23 = vld [vmem:[%s2544_s3 + $0x10] sm:$0xff]   ;;  %s1458_s25 = sshll.u32 %s1968_s24, 4  ;;  %vm1450_vm2 = vcmask 74752   ;;  %s1459_s25 = int_to_ptr.vmem [resolvable:$true] %s1458_s25 }
  0x78   :  { %917 = vmatprep.subr.bf16.mxu0 %v1898_v4  ;;  %999 = vmatprep.subr.bf16.mxu1 %v1901_v5  ;;  %v1911_v17 = vld [vmem:[%s2544_s3 + $0x80] sm:$0xff]   ;;  %v1915_v20 = vld [vmem:[%s2544_s3 + $0x88] sm:$0xff]   ;;  %v1919_v24 = vld [vmem:[%s2544_s3 + $0x90] sm:$0xff]   ;;  %p1945_p1 = scmp.lt.s32.totalorder %s1459_s25, %s1459_s25 }
  0x79   :  { %v1920_v25 = vld [vmem:[%s2544_s3 + $0x58] sm:$0xff]   ;;  %v1924_v29 = vld [vmem:[%s2544_s3 + $0x60] sm:$0xff]   ;;  %v1928_v33 = vld [vmem:[%s2544_s3 + $0x68] sm:$0xff]  }
  0x7a   :  { %v1921_v26 = vld [vmem:[%s2544_s3 + $0xd8] sm:$0xff]   ;;  %v1925_v30 = vld [vmem:[%s2544_s3 + $0xe0] sm:$0xff]   ;;  %v1929_v34 = vld [vmem:[%s2544_s3 + $0xe8] sm:$0xff]  }
  0x7b   :  { %918 = vmatpush1.bf16.msra.mxu0 %v1896_v6  ;;  %1000 = vmatpush1.bf16.msra.mxu1 %v1899_v7  ;;  %v1922_v27 = vld [vmem:[%s2544_s3 + $0x18] sm:$0xff]   ;;  %v1926_v31 = vld [vmem:[%s2544_s3 + $0x20] sm:$0xff]   ;;  %v1930_v35 = vld [vmem:[%s2544_s3 + $0x28] sm:$0xff]  }
  0x7c   :  { %919 = vmatprep.subr.bf16.mxu0 %v1904_v8  ;;  %1001 = vmatprep.subr.bf16.mxu1 %v1907_v9  ;;  %v1923_v28 = vld [vmem:[%s2544_s3 + $0x98] sm:$0xff]   ;;  %v1927_v32 = vld [vmem:[%s2544_s3 + $0xa0] sm:$0xff]   ;;  %v1931_v36 = vld [vmem:[%s2544_s3 + $0xa8] sm:$0xff]  }
  0x7d   :  { %v1932_v37 = vld [vmem:[%s2544_s3 + $0x70] sm:$0xff]   ;;  %v1936_v41 = vld [vmem:[%s2544_s3 + $0x78] sm:$0xff]   ;;  %v157_v49 = vld [vmem:[%s2543_s2] sm:$0xf] }
  0x7e   :  { %v1933_v38 = vld [vmem:[%s2544_s3 + $0xf0] sm:$0xff]   ;;  %v1937_v42 = vld [vmem:[%s2544_s3 + $0xf8] sm:$0xff]   ;;  %v162_v52 = vrot.slane %v157_v49, %v161_v47  ;;  %v170_v53 = vrot.slane %v157_v49, %v169_v48  ;;  %v166_v54 = vrot.slane %v157_v49, %v165_v50  ;;  %v174_v55 = vrot.slane %v157_v49, %v173_v51 }
  0x7f   :  { %920 = vmatpush1.bf16.msra.mxu0 %v1902_v10  ;;  %1002 = vmatpush1.bf16.msra.mxu1 %v1905_v11  ;;  %v1934_v39 = vld [vmem:[%s2544_s3 + $0x30] sm:$0xff]   ;;  %v1938_v43 = vld [vmem:[%s2544_s3 + $0x38] sm:$0xff]   ;;  %v1364_v11 = vld [vmem:[%s2546_s5] sm:$0xff] }
  0x80   :  { %1630 = vmatprep.subr.bf16.mxu0 %v1908_v13  ;;  %1652 = vmatprep.subr.bf16.mxu1 %v1909_v14  ;;  %v1935_v40 = vld [vmem:[%s2544_s3 + $0xb0] sm:$0xff]   ;;  %v1939_v44 = vld [vmem:[%s2544_s3 + $0xb8] sm:$0xff]   ;;  %v1365_v13 = vld [vmem:[%s2546_s5 + $0x8] sm:$0xff] }
  0x81   :  { %v1694_v14 = vpack.c.bf16 %v1365_v13, %v1364_v11 }
  0x82   :  { %922 = vmatmul.mubr.bf16.vlgmr.msra.gmra.mrb[0].mxu0 %v202_v15  ;;  %1004 = vmatmul.mubr.bf16.vlgmr.msra.gmra.mrb[0].mxu1 %v202_v15  ;;  %v1366_v15 = vld [vmem:[%s2546_s5 + $0x10] sm:$0xff] }
  0x83   :  { %1631 = vmatpush3.bf16.msra.mxu0 %v1910_v16  ;;  %1653 = vmatpush3.bf16.msra.mxu1 %v1911_v17  ;;  %v1367_v16 = vld [vmem:[%s2546_s5 + $0x18] sm:$0xff] }
  0x84   :  { %1632 = vmatprep.subr.bf16.mxu0 %v1912_v18  ;;  %1654 = vmatprep.subr.bf16.mxu1 %v1913_v12  ;;  %v1697_v17 = vpack.c.bf16 %v1367_v16, %v1366_v15  ;;  %v1966_v18 = vmov 0.0   ;;  %v1368_v12 = vld [vmem:[%s2546_s5 + $0x20] sm:$0xff] }
  0x87   :  { %1633 = vmatpush3.bf16.msra.mxu0 %v1914_v19  ;;  %1655 = vmatpush3.bf16.msra.mxu1 %v1915_v20 }
  0x88   :  { %1634 = vmatprep.subr.bf16.mxu0 %v1916_v21  ;;  %1656 = vmatprep.subr.bf16.mxu1 %v1917_v22  ;;  %v1595_v21 = vld [vmem:[%s2545_s4] ss:$0 sm:$0xff]  ;;  %s1940_s4 = scalar_lea.vmem %s1459_s25, 32 }
  0x89   :  { %p1941_p0 = scmp.ne.s32.totalorder %s1459_s25, %s1940_s4  ;;  %p1946_p2 = scmp.lt.s32.totalorder %s1940_s4, %s1940_s4 }
  0x8b   :  { %1635 = vmatpush3.bf16.msra.mxu0 %v1918_v23  ;;  %1657 = vmatpush3.bf16.msra.mxu1 %v1919_v24  ;;  %p1947_p3 = por %p1946_p2, %p1945_p1 }
  0x8c   :  { %1636 = vmatprep.subr.bf16.mxu0 %v1920_v25  ;;  %1658 = vmatprep.subr.bf16.mxu1 %v1921_v26 }
  0x8d   :  { %p1948_p4 = pnand %p1947_p3, %p1941_p0 }
  0x8f   :  { %1637 = vmatpush3.bf16.msra.mxu0 %v1922_v27  ;;  %1659 = vmatpush3.bf16.msra.mxu1 %v1923_v28 }
  0x90   :  { %1638 = vmatprep.subr.bf16.mxu0 %v1924_v29  ;;  %1660 = vmatprep.subr.bf16.mxu1 %v1925_v30 }
  0x93   :  { %1639 = vmatpush3.bf16.msra.mxu0 %v1926_v31  ;;  %1661 = vmatpush3.bf16.msra.mxu1 %v1927_v32 }
  0x94   :  { %1640 = vmatprep.subr.bf16.mxu0 %v1928_v33  ;;  %1662 = vmatprep.subr.bf16.mxu1 %v1929_v34  ;;  %v1628_v33 = vld [vmem:[%s2547_s6] ss:$0 sm:$0xff] }
  0x97   :  { %1641 = vmatpush3.bf16.msra.mxu0 %v1930_v35  ;;  %1663 = vmatpush3.bf16.msra.mxu1 %v1931_v36 }
  0x98   :  { %1642 = vmatprep.subr.bf16.mxu0 %v1932_v37  ;;  %1664 = vmatprep.subr.bf16.mxu1 %v1933_v38 }
  0x9b   :  { %1643 = vmatpush3.bf16.msra.mxu0 %v1934_v39  ;;  %1665 = vmatpush3.bf16.msra.mxu1 %v1935_v40 }
  0x9c   :  { %1644 = vmatprep.subr.bf16.mxu0 %v1936_v41  ;;  %1666 = vmatprep.subr.bf16.mxu1 %v1937_v42 }
  0x9f   :  { %1645 = vmatpush3.bf16.msra.mxu0 %v1938_v43  ;;  %1667 = vmatpush3.bf16.msra.mxu1 %v1939_v44 }
  0xa0   :  { %1693 = vmatprep.subr.bf16.mxu0 %v1965_v46 }
 0x155   :  { %v923_v56 = vpop.f32.mrb[0].mxu0  ;;  %v1005_v57 = vpop.f32.mrb[0].mxu1 }
 0x156   :  { %v1699_v58 = vadd.f32 %v923_v56, %v162_v52  ;;  %v1701_v59 = vadd.f32 %v1005_v57, %v170_v53  ;;  %v925_v60 = vpop.f32.mrb[1].mxu0  ;;  %v1007_v61 = vpop.f32.mrb[1].mxu1 }
 0x157   :  { %v1700_v62 = vadd.f32 %v925_v60, %v166_v54  ;;  %v1702_v63 = vadd.f32 %v1007_v61, %v174_v55  ;;  %v927_v0 = vpop.f32.mrb[2].mxu0  ;;  %v1009_v1 = vpop.f32.mrb[2].mxu1 }
 0x158   :  { %v1012_v2 = vmax.f32 %v1699_v58, 0.0  ;;  %v1014_v3 = vmax.f32 %v1701_v59, 0.0  ;;  %v928_v4 = vpop.f32.mrb[3].mxu0  ;;  %v1010_v5 = vpop.f32.mrb[3].mxu1 }
 0x159   :  { %v1013_v6 = vmax.f32 %v1700_v62, 0.0  ;;  %v1015_v45 = vmax.f32 %v1702_v63, 0.0 }
 0x15a   :  { %v1016_v9 = vpack.c.bf16 %v1012_v2, %v1012_v2  ;;  %v1018_v10 = vpack.c.bf16 %v1014_v3, %v1014_v3 }
 0x15b   :  { %v1017_v7 = vpack.c.bf16 %v1013_v6, %v1013_v6  ;;  %v1019_v8 = vpack.c.bf16 %v1015_v45, %v1015_v45 }
 0x15d   :  { %1315 = vmatprep.mubr.bf16.mxu0 %v1017_v7  ;;  %1355 = vmatprep.mubr.bf16.mxu1 %v1019_v8 }
 0x15e   :  { %1316 = vmatmul.mubr.bf16.vlgmr.msra.gmra.mrb[4].mxu0 %v1016_v9  ;;  %1356 = vmatmul.mubr.bf16.vlgmr.msra.gmra.mrb[4].mxu1 %v1018_v10 }
 0x15f   :  { %1695 = vmatpush3.bf16.msra.mxu0 %v1694_v14  ;;  %1690 = vmatprep.mubr.msk.f32.mxu0 %vm1967_vm0, %v1966_v18 }
 0x160   :  { %1696 = vmatprep.subr.bf16.mxu0 %v1965_v46 }
 0x163   :  { %1698 = vmatpush3.bf16.msra.mxu0 %v1697_v17 }
 0x164   :  { %1688 = vmatprep.subr.mxu0 %v1966_v18 }
 0x167   :  { %1689 = vmatpush3.msra.mxu0 %v1368_v12 }
 0x231   :  { %v1646_v19 = vpop.f32.mrb[4].mxu0  ;;  %v1668_v20 = vpop.f32.mrb[4].mxu1 }
 0x232   :  { %v1647_v22 = vpop.f32.mrb[5].mxu0  ;;  %v1669_v23 = vpop.f32.mrb[5].mxu1 }
 0x233   :  { %v1648_v24 = vadd.f32 %v1647_v22, %v1646_v19  ;;  %v1670_v25 = vadd.f32 %v1669_v23, %v1668_v20  ;;  %v1649_v26 = vpop.f32.mrb[6].mxu0  ;;  %v1671_v27 = vpop.f32.mrb[6].mxu1 }
 0x234   :  { %v1650_v28 = vpop.f32.mrb[7].mxu0  ;;  %v1672_v29 = vpop.f32.mrb[7].mxu1 }
 0x235   :  { %v1318_v30 = vadd.f32 %v1648_v24, %v1595_v21 }
 0x237   :  { %v1358_v31 = vadd.f32 %v1670_v25, %v1318_v30 }
 0x239   :  { %v1363_v32 = vmax.f32 %v1358_v31, 0.0 }
 0x23b   :  { %1691 = vmatmul.mubr.msk.f32.vlgmr.msra.gmra.mrb[8].mxu0 %vm1376_vm1, %v1363_v32 }
 0x30e   :  { %v1446_v34 = vpop.f32.mrb[8].mxu0 }
 0x30f   :  { %v1447_v35 = vadd.f32 %v1628_v33, %v1446_v34  ;;  %v1692_v36 = vpop.f32.mrb[9].mxu0 }
 0x311   :  { %1451 = vst.msk [vmem:[#allocation2] sm:$0x3] %vm1450_vm2, %v1447_v35 }
 0x312   :  { %1951 = shalt.err (!%p1948_p4)
}
 0x313   :  { %s1952_s1 = scalar_lea.hbm %s2548_s7, 32 }
 0x314   :  { %p1953_p5 = scmp.ne.s32.totalorder %s2548_s7, %s1952_s1  ;;  %p1956_p6 = scmp.lt.u32.totalorder %s1952_s1, %s2548_s7 }
 0x316   :  { %p1958_p7 = pnand %p1956_p6, %p1953_p5 }
 0x318   :  { %1961 = shalt.err (!%p1958_p7)
}
 0x319   :  { %1461 = dma.vmem_to_hbm [thread:$0]  %s1459_s25, 32, %s2548_s7, [#allocation3]  }
 0x31a   :  { %1962 = dma.done.wait [#allocation3], 32  }
 0x31b   :  { %1963 = vsyncadd [#allocation3], 4294967264 }
 0x31c   :  { %1465 = vsyncpa [#allocation3], 1 }

</bundles_post_ra>
